<compile_context>
chip_gen: v7x
topology: tpu7x:2x2x1
jax: 0.10.0
libtpu: 0.0.40
codegen_flags: <defaults>
</compile_context>

<pallas_src>
import numpy as np
import jax
import jax.numpy as jnp
from jax import lax
from jax.experimental import pallas as pl
from jax.experimental.pallas import tpu as pltpu

# ---------------- sizes ----------------
B = 2     # batch
T = 8     # sequence length
C = 4     # num_components (model_cfg.input_size)
E = 8     # rnn.input_embedding_size
H = 32    # rnn.hidden_embedding_size
A = 16    # attention.hidden_dim
OUT = 3   # output_size


# ---------------- single-launch recurrent kernel: GRU cell + self-attention over time ----------------
def recurrent_kernel(x_ref, emb_wb_ref, W_gi_ref, W_gh_ref, b_g_ref,
                     W_qk1_ref, W_qk23_ref, b_qk_ref,
                     gate_b_ref, mask_ref, w_pred_ref, b_pred_ref,
                     mix_ref, pred_ref):
    Tx = x_ref.shape[0]          # time steps
    BC = x_ref.shape[1]          # batch * components (flattened)
    Hh = W_gh_ref.shape[0]       # GRU hidden size
    Ah = W_qk1_ref.shape[1] // 2  # attention hidden dim

    f32 = jnp.float32

    def dot(a, b):
        return jnp.dot(a, b, preferred_element_type=f32)

    # ---- hoist all loop-invariant loads out of the time loop ----
    w_emb = emb_wb_ref[0:1, :]          # (1, E)   nn.Linear(1, E) weight (row)
    b_emb = emb_wb_ref[1:2, :]          # (1, E)
    W_gi = W_gi_ref[...]                # (E, 3H)  [W_ir | W_iz | W_in]
    W_gh = W_gh_ref[...]                # (H, 3H)  [W_hr | W_hz | W_hn]
    b_gi = b_g_ref[0:1, :]              # (1, 3H)
    b_gh = b_g_ref[1:2, :]              # (1, 3H)
    W_qk1 = W_qk1_ref[...]              # (H, 2A)  [Wq1 | Wk1]
    W_qk2 = W_qk23_ref[0]               # (2A,2A)  blockdiag(Wq2, Wk2)
    W_qk3 = W_qk23_ref[1]               # (2A,2A)  blockdiag(Wq3, Wk3)
    b_qk1 = b_qk_ref[0:1, :]            # (1, 2A)
    b_qk2 = b_qk_ref[1:2, :]
    b_qk3 = b_qk_ref[2:3, :]
    gate_b = gate_b_ref[...]            # (BC, BC) gate bias tiled over batch blocks
    mask = mask_ref[...]                # (BC, BC) block-diagonal batch mask
    w_pred = w_pred_ref[...]            # (1, H)
    b_pred = b_pred_ref[...]            # (1, 1)

    def step(t, h):
        # --- embedding: nn.Linear(1, E) applied to each scalar x[b, t, c] ---
        x_col = x_ref[t]                                  # (BC, 1)
        emb = x_col * w_emb + b_emb                       # (BC, E)

        # --- fused GRU cell: one (BC,E)@(E,3H) and one (BC,H)@(H,3H) matmul ---
        gi = dot(emb, W_gi) + b_gi                        # (BC, 3H)
        gh = dot(h, W_gh) + b_gh                          # (BC, 3H)
        r = jax.nn.sigmoid(gi[:, :Hh] + gh[:, :Hh])
        z = jax.nn.sigmoid(gi[:, Hh:2 * Hh] + gh[:, Hh:2 * Hh])
        n = jnp.tanh(gi[:, 2 * Hh:] + r * gh[:, 2 * Hh:])
        h_gru = (1.0 - z) * n + z * h                     # (BC, H)

        # --- SelfAttention query/key MLPs, fused (q || k share each matmul) ---
        qk = jnp.maximum(dot(h_gru, W_qk1) + b_qk1, 0.0)
        qk = jnp.maximum(dot(qk, W_qk2) + b_qk2, 0.0)
        qk = dot(qk, W_qk3) + b_qk3                       # (BC, 2A): [:, :A]=q, [:, A:]=k
        q = qk[:, :Ah]
        k = qk[:, Ah:]

        # --- batched attention as one masked (BC,BC) matmul ---
        scores = lax.dot_general(q, k, (((1,), (1,)), ((), ())),
                                 preferred_element_type=f32) * mask   # (BC, BC)
        s2 = scores * scores
        # per-batch Frobenius norm broadcast to that batch's rows (mask @ row-sums)
        sumsq = dot(mask, jnp.sum(s2, axis=-1, keepdims=True))        # (BC, 1)
        scores = scores * lax.rsqrt(sumsq)                            # EUP rsqrt
        scores = jnp.tanh(scores)                                     # use_tan == 'after'
        gate = jax.nn.sigmoid(jnp.abs(scores) + gate_b)               # Gate module
        transfer = scores * gate                                      # off-block stays 0
        next_states = dot(transfer, h_gru)                            # (BC, H)

        # per-step outputs (written into resident VMEM output blocks)
        mix_ref[t] = transfer
        pred_ref[t] = jnp.sum(next_states * w_pred, axis=-1, keepdims=True) + b_pred

        # carry attention output as the next GRU hidden state
        return next_states

    h0 = jnp.zeros((BC, Hh), f32)
    lax.fori_loop(0, Tx, step, h0, unroll=True)


# ---------------- wrapper ----------------
@jax.jit
def multivariate_ts_forward(x, p):
    """x: (B, T, C) float32. Returns (logits, DNC, mixing, predicted, orig_x[:,1:,:])."""
    Bx, Tx, Cx = x.shape
    BC = Bx * Cx
    Af = p['Wq1'].shape[1]

    # time-major, flattened batch*component rows, scalar feature as trailing dim
    x_tm = jnp.transpose(x, (1, 0, 2)).reshape(Tx, BC, 1)

    # ---- pack weights into a few lane-dense slabs (one-time, outside the kernel) ----
    emb_wb = jnp.concatenate([p['w_emb'], p['b_emb']], axis=0)                 # (2, E)
    W_gi = jnp.concatenate([p['W_ir'], p['W_iz'], p['W_in']], axis=1)          # (E, 3H)
    W_gh = jnp.concatenate([p['W_hr'], p['W_hz'], p['W_hn']], axis=1)          # (H, 3H)
    b_g = jnp.concatenate([
        jnp.concatenate([p['b_ir'], p['b_iz'], p['b_in']], axis=1),
        jnp.concatenate([p['b_hr'], p['b_hz'], p['b_hn']], axis=1)], axis=0)   # (2, 3H)
    W_qk1 = jnp.concatenate([p['Wq1'], p['Wk1']], axis=1)                      # (H, 2A)
    zero = jnp.zeros((Af, Af), jnp.float32)
    W_qk23 = jnp.stack([jnp.block([[p['Wq2'], zero], [zero, p['Wk2']]]),
                        jnp.block([[p['Wq3'], zero], [zero, p['Wk3']]])], 0)   # (2, 2A, 2A)
    b_qk = jnp.concatenate([
        jnp.concatenate([p['bq1'], p['bk1']], axis=1),
        jnp.concatenate([p['bq2'], p['bk2']], axis=1),
        jnp.concatenate([p['bq3'], p['bk3']], axis=1)], axis=0)                # (3, 2A)
    gate_b_tiled = jnp.tile(p['gate_b'], (Bx, Bx))                             # (BC, BC)
    batch_ids = jnp.repeat(jnp.arange(BC) // Cx, 1)
    mask = (batch_ids[:, None] == batch_ids[None, :]).astype(jnp.float32)      # (BC, BC)

    inputs = [x_tm, emb_wb, W_gi, W_gh, b_g, W_qk1, W_qk23, b_qk,
              gate_b_tiled, mask, p['w_pred'], p['b_pred']]

    vspec = pl.BlockSpec(memory_space=pltpu.MemorySpace.VMEM)
    mix_full, pred_full = pl.pallas_call(
        recurrent_kernel,
        out_shape=(jax.ShapeDtypeStruct((Tx, BC, BC), jnp.float32),
                   jax.ShapeDtypeStruct((Tx, BC, 1), jnp.float32)),
        in_specs=[vspec] * len(inputs),
        out_specs=(vspec, vspec),
    )(*inputs)

    # extract per-batch diagonal blocks: (T, B*C, B*C) -> (B, T, C, C)
    bidx = jnp.arange(Bx)
    mixing = mix_full.reshape(Tx, Bx, Cx, Bx, Cx)[:, bidx, :, bidx, :]         # (B, T, C, C)
    predicted = jnp.transpose(pred_full.reshape(Tx, Bx, Cx), (1, 0, 2))[:, 1:, :]

    # ---- classifier head + temporal means: tiny (~2 KFLOP), folded into plain jnp ----
    gta = mixing.reshape(Bx, Tx, Cx * Cx)
    dnc = jnp.mean(gta, axis=1).reshape(Bx, Cx, Cx)
    h1 = jnp.maximum(gta @ p['Wc1'] + p['bc1'], 0.0)
    h2 = jnp.maximum(h1 @ p['Wc2'] + p['bc2'], 0.0)   # Dropout1d(p=0.3): inference identity
    logits = jnp.mean(h2 @ p['Wc3'] + p['bc3'], axis=1)
    return logits, dnc, mixing, predicted, x[:, 1:, :]


# ---------------- pure-JAX reference (mirrors the PyTorch forward) ----------------
def reference_forward(x, p):
    Bx, Tx, Cx = x.shape
    h = jnp.zeros((Bx * Cx, H), jnp.float32)
    mixes, hs = [], []
    for t in range(Tx):
        emb = x[:, t, :].reshape(Bx * Cx, 1) * p['w_emb'] + p['b_emb']
        r = jax.nn.sigmoid(emb @ p['W_ir'] + p['b_ir'] + h @ p['W_hr'] + p['b_hr'])
        z = jax.nn.sigmoid(emb @ p['W_iz'] + p['b_iz'] + h @ p['W_hz'] + p['b_hz'])
        n = jnp.tanh(emb @ p['W_in'] + p['b_in'] + r * (h @ p['W_hn'] + p['b_hn']))
        hg = (1.0 - z) * n + z * h
        q = jnp.maximum(hg @ p['Wq1'] + p['bq1'], 0.0)
        q = jnp.maximum(q @ p['Wq2'] + p['bq2'], 0.0)
        q = q @ p['Wq3'] + p['bq3']
        k = jnp.maximum(hg @ p['Wk1'] + p['bk1'], 0.0)
        k = jnp.maximum(k @ p['Wk2'] + p['bk2'], 0.0)
        k = k @ p['Wk3'] + p['bk3']
        q3, k3, h3 = q.reshape(Bx, Cx, -1), k.reshape(Bx, Cx, -1), hg.reshape(Bx, Cx, H)
        sc = jnp.einsum('bqa,bka->bqk', q3, k3)
        nrm = jnp.sqrt(jnp.sum(sc * sc, axis=(1, 2), keepdims=True))
        sc = jnp.tanh(sc / nrm)
        gate = jax.nn.sigmoid(jnp.abs(sc) + p['gate_b'][None])
        tr = sc * gate
        ns = jnp.einsum('bqk,bkh->bqh', tr, h3)
        mixes.append(tr)
        hs.append(ns)
        h = ns.reshape(Bx * Cx, H)
    mixing = jnp.stack(mixes, axis=1)                       # (B, T, C, C)
    hidden = jnp.stack(hs, axis=1)[:, 1:]                   # (B, T-1, C, H)
    predicted = jnp.einsum('btch,h->btc', hidden, p['w_pred'][0]) + p['b_pred'][0, 0]
    gta = mixing.reshape(Bx, Tx, -1)
    dnc = jnp.mean(gta, axis=1).reshape(Bx, Cx, Cx)
    h1 = jnp.maximum(gta @ p['Wc1'] + p['bc1'], 0.0)
    h2 = jnp.maximum(h1 @ p['Wc2'] + p['bc2'], 0.0)
    logits = jnp.mean(h2 @ p['Wc3'] + p['bc3'], axis=1)
    return logits, dnc, mixing, predicted, x[:, 1:, :]


# ---------------- deterministic parameter init ----------------
def init_params(key):
    keys = iter(jax.random.split(key, 40))

    def lin(fan_in, shape):
        return (jax.random.normal(next(keys), shape, jnp.float32)
                / np.sqrt(float(fan_in))).astype(jnp.float32)

    p = {}
    # embeddings: nn.Linear(1, E)
    p['w_emb'] = lin(1, (1, E))
    p['b_emb'] = lin(1, (1, E))
    # GRU (weights stored transposed for x @ W)
    for nm, fi, sh in [('W_ir', E, (E, H)), ('W_iz', E, (E, H)), ('W_in', E, (E, H)),
                       ('W_hr', H, (H, H)), ('W_hz', H, (H, H)), ('W_hn', H, (H, H)),
                       ('b_ir', H, (1, H)), ('b_iz', H, (1, H)), ('b_in', H, (1, H)),
                       ('b_hr', H, (1, H)), ('b_hz', H, (1, H)), ('b_hn', H, (1, H))]:
        p[nm] = lin(fi, sh)
    # attention query / key MLPs
    for nm, fi, sh in [('Wq1', H, (H, A)), ('bq1', H, (1, A)),
                       ('Wq2', A, (A, A)), ('bq2', A, (1, A)),
                       ('Wq3', A, (A, A)), ('bq3', A, (1, A)),
                       ('Wk1', H, (H, A)), ('bk1', H, (1, A)),
                       ('Wk2', A, (A, A)), ('bk2', A, (1, A)),
                       ('Wk3', A, (A, A)), ('bk3', A, (1, A))]:
        p[nm] = lin(fi, sh)
    # gate bias: torch.randn(C, C)
    p['gate_b'] = jax.random.normal(next(keys), (C, C), jnp.float32)
    # predictor: nn.Linear(H, 1)
    p['w_pred'] = lin(H, (1, H))
    p['b_pred'] = lin(H, (1, 1))
    # clf: Linear(C^2, C^2//2) -> ReLU -> Dropout -> Linear(.., C^2//4) -> ReLU -> Linear(.., OUT)
    f1, f2 = C * C, (C * C) // 2
    f3 = (C * C) // 4
    p['Wc1'] = lin(f1, (f1, f2)); p['bc1'] = lin(f1, (1, f2))
    p['Wc2'] = lin(f2, (f2, f3)); p['bc2'] = lin(f2, (1, f3))
    p['Wc3'] = lin(f3, (f3, OUT)); p['bc3'] = lin(f3, (1, OUT))
    return p


if __name__ == "__main__":
    key = jax.random.PRNGKey(0)
    kx, kp = jax.random.split(key)
    x = jax.random.normal(kx, (B, T, C), jnp.float32)
    params = init_params(kp)

    outs = multivariate_ts_forward(x, params)
    outs = jax.block_until_ready(outs)

    refs = jax.block_until_ready(reference_forward(x, params))
    for got, ref in zip(outs, refs):
        np.testing.assert_allclose(np.asarray(got), np.asarray(ref), rtol=2e-2, atol=2e-2)

    # sanity on shapes
    logits, dnc, mixing, predicted, orig_tail = outs
    assert logits.shape == (B, OUT)
    assert dnc.shape == (B, C, C)
    assert mixing.shape == (B, T, C, C)
    assert predicted.shape == (B, T - 1, C)
    assert orig_tail.shape == (B, T - 1, C)

    print("KERNEL_OK")
</pallas_src>

<mosaic_0001>
module attributes {stable_mosaic.version = 11 : i64} {
  func.func @recurrent_kernel(%arg0: memref<8x8x1xf32, #tpu.memory_space<vmem>>, %arg1: memref<2x8xf32, #tpu.memory_space<vmem>>, %arg2: memref<8x96xf32, #tpu.memory_space<vmem>>, %arg3: memref<32x96xf32, #tpu.memory_space<vmem>>, %arg4: memref<2x96xf32, #tpu.memory_space<vmem>>, %arg5: memref<32x32xf32, #tpu.memory_space<vmem>>, %arg6: memref<2x32x32xf32, #tpu.memory_space<vmem>>, %arg7: memref<3x32xf32, #tpu.memory_space<vmem>>, %arg8: memref<8x8xf32, #tpu.memory_space<vmem>>, %arg9: memref<8x8xf32, #tpu.memory_space<vmem>>, %arg10: memref<1x32xf32, #tpu.memory_space<vmem>>, %arg11: memref<1x1xf32, #tpu.memory_space<vmem>>, %arg12: memref<8x8x8xf32, #tpu.memory_space<vmem>>, %arg13: memref<8x8x1xf32, #tpu.memory_space<vmem>>) attributes {dimension_semantics = [], scalar_prefetch = 0 : i64, scratch_operands = 0 : i64, tpu.core_type = #tpu.core_type<tc>} {
    %c0 = arith.constant 0 : index
    %c0_0 = arith.constant 0 : index
    %0 = vector.load %arg1[%c0, %c0_0] : memref<2x8xf32, #tpu.memory_space<vmem>>, vector<1x8xf32>
    %c1 = arith.constant 1 : index
    %c0_1 = arith.constant 0 : index
    %1 = vector.load %arg1[%c1, %c0_1] : memref<2x8xf32, #tpu.memory_space<vmem>>, vector<1x8xf32>
    %c0_2 = arith.constant 0 : index
    %c0_3 = arith.constant 0 : index
    %2 = vector.load %arg2[%c0_2, %c0_3] : memref<8x96xf32, #tpu.memory_space<vmem>>, vector<8x96xf32>
    %c0_4 = arith.constant 0 : index
    %c0_5 = arith.constant 0 : index
    %3 = vector.load %arg3[%c0_4, %c0_5] : memref<32x96xf32, #tpu.memory_space<vmem>>, vector<32x96xf32>
    %c0_6 = arith.constant 0 : index
    %c0_7 = arith.constant 0 : index
    %4 = vector.load %arg4[%c0_6, %c0_7] : memref<2x96xf32, #tpu.memory_space<vmem>>, vector<1x96xf32>
    %c1_8 = arith.constant 1 : index
    %c0_9 = arith.constant 0 : index
    %5 = vector.load %arg4[%c1_8, %c0_9] : memref<2x96xf32, #tpu.memory_space<vmem>>, vector<1x96xf32>
    %c0_10 = arith.constant 0 : index
    %c0_11 = arith.constant 0 : index
    %6 = vector.load %arg5[%c0_10, %c0_11] : memref<32x32xf32, #tpu.memory_space<vmem>>, vector<32x32xf32>
    %c0_12 = arith.constant 0 : index
    %c0_13 = arith.constant 0 : index
    %c0_14 = arith.constant 0 : index
    %7 = vector.load %arg6[%c0_12, %c0_13, %c0_14] : memref<2x32x32xf32, #tpu.memory_space<vmem>>, vector<1x32x32xf32>
    %8 = vector.shape_cast %7 : vector<1x32x32xf32> to vector<32x32xf32>
    %c1_15 = arith.constant 1 : index
    %c0_16 = arith.constant 0 : index
    %c0_17 = arith.constant 0 : index
    %9 = vector.load %arg6[%c1_15, %c0_16, %c0_17] : memref<2x32x32xf32, #tpu.memory_space<vmem>>, vector<1x32x32xf32>
    %10 = vector.shape_cast %9 : vector<1x32x32xf32> to vector<32x32xf32>
    %c0_18 = arith.constant 0 : index
    %c0_19 = arith.constant 0 : index
    %11 = vector.load %arg7[%c0_18, %c0_19] : memref<3x32xf32, #tpu.memory_space<vmem>>, vector<1x32xf32>
    %c1_20 = arith.constant 1 : index
    %c0_21 = arith.constant 0 : index
    %12 = vector.load %arg7[%c1_20, %c0_21] : memref<3x32xf32, #tpu.memory_space<vmem>>, vector<1x32xf32>
    %c2 = arith.constant 2 : index
    %c0_22 = arith.constant 0 : index
    %13 = vector.load %arg7[%c2, %c0_22] : memref<3x32xf32, #tpu.memory_space<vmem>>, vector<1x32xf32>
    %c0_23 = arith.constant 0 : index
    %c0_24 = arith.constant 0 : index
    %14 = vector.load %arg8[%c0_23, %c0_24] : memref<8x8xf32, #tpu.memory_space<vmem>>, vector<8x8xf32>
    %c0_25 = arith.constant 0 : index
    %c0_26 = arith.constant 0 : index
    %15 = vector.load %arg9[%c0_25, %c0_26] : memref<8x8xf32, #tpu.memory_space<vmem>>, vector<8x8xf32>
    %c0_27 = arith.constant 0 : index
    %c0_28 = arith.constant 0 : index
    %16 = vector.load %arg10[%c0_27, %c0_28] : memref<1x32xf32, #tpu.memory_space<vmem>>, vector<1x32xf32>
    %c0_29 = arith.constant 0 : index
    %c0_30 = arith.constant 0 : index
    %17 = vector.load %arg11[%c0_29, %c0_30] : memref<1x1xf32, #tpu.memory_space<vmem>>, vector<1x1xf32>
    %cst = arith.constant 0.000000e+00 : f32
    %18 = vector.broadcast %cst : f32 to vector<8x32xf32>
    %c0_i32 = arith.constant 0 : i32
    %19 = arith.index_cast %c0_i32 : i32 to index
    %c0_31 = arith.constant 0 : index
    %c0_32 = arith.constant 0 : index
    %20 = vector.load %arg0[%19, %c0_31, %c0_32] : memref<8x8x1xf32, #tpu.memory_space<vmem>>, vector<1x8x1xf32>
    %21 = vector.shape_cast %20 : vector<1x8x1xf32> to vector<8x1xf32>
    %22 = vector.broadcast %21 : vector<8x1xf32> to vector<8x8xf32>
    %23 = vector.broadcast %0 : vector<1x8xf32> to vector<8x8xf32>
    %24 = arith.mulf %22, %23 : vector<8x8xf32>
    %25 = vector.broadcast %1 : vector<1x8xf32> to vector<8x8xf32>
    %26 = arith.addf %24, %25 : vector<8x8xf32>
    %cst_33 = arith.constant dense<0.000000e+00> : vector<8x96xf32>
    %27 = tpu.matmul %26, %2, %cst_33 {dimension_numbers = #tpu.dot_dimension_numbers<[1], [0], [0], [1], [0, 0, 1, 1], [], []>} : vector<8x8xf32>, vector<8x96xf32>, vector<8x96xf32> -> vector<8x96xf32>
    %28 = vector.broadcast %4 : vector<1x96xf32> to vector<8x96xf32>
    %29 = arith.addf %27, %28 : vector<8x96xf32>
    %cst_34 = arith.constant dense<0.000000e+00> : vector<8x96xf32>
    %30 = tpu.matmul %18, %3, %cst_34 {dimension_numbers = #tpu.dot_dimension_numbers<[1], [0], [0], [1], [0, 0, 1, 1], [], []>} : vector<8x32xf32>, vector<32x96xf32>, vector<8x96xf32> -> vector<8x96xf32>
    %31 = vector.broadcast %5 : vector<1x96xf32> to vector<8x96xf32>
    %32 = arith.addf %30, %31 : vector<8x96xf32>
    %33 = vector.extract_strided_slice %29 {offsets = [0, 0], sizes = [8, 32], strides = [1, 1]} : vector<8x96xf32> to vector<8x32xf32>
    %34 = vector.extract_strided_slice %32 {offsets = [0, 0], sizes = [8, 32], strides = [1, 1]} : vector<8x96xf32> to vector<8x32xf32>
    %35 = arith.addf %33, %34 : vector<8x32xf32>
    %36 = arith.negf %35 : vector<8x32xf32>
    %37 = math.exp %36 : vector<8x32xf32>
    %cst_35 = arith.constant 1.000000e+00 : f32
    %38 = vector.broadcast %cst_35 : f32 to vector<8x32xf32>
    %39 = arith.addf %38, %37 : vector<8x32xf32>
    %40 = arith.divf %38, %39 : vector<8x32xf32>
    %41 = vector.extract_strided_slice %29 {offsets = [0, 32], sizes = [8, 32], strides = [1, 1]} : vector<8x96xf32> to vector<8x32xf32>
    %42 = vector.extract_strided_slice %32 {offsets = [0, 32], sizes = [8, 32], strides = [1, 1]} : vector<8x96xf32> to vector<8x32xf32>
    %43 = arith.addf %41, %42 : vector<8x32xf32>
    %44 = arith.negf %43 : vector<8x32xf32>
    %45 = math.exp %44 : vector<8x32xf32>
    %cst_36 = arith.constant 1.000000e+00 : f32
    %46 = vector.broadcast %cst_36 : f32 to vector<8x32xf32>
    %47 = arith.addf %46, %45 : vector<8x32xf32>
    %48 = arith.divf %46, %47 : vector<8x32xf32>
    %49 = vector.extract_strided_slice %29 {offsets = [0, 64], sizes = [8, 32], strides = [1, 1]} : vector<8x96xf32> to vector<8x32xf32>
    %50 = vector.extract_strided_slice %32 {offsets = [0, 64], sizes = [8, 32], strides = [1, 1]} : vector<8x96xf32> to vector<8x32xf32>
    %51 = arith.mulf %40, %50 : vector<8x32xf32>
    %52 = arith.addf %49, %51 : vector<8x32xf32>
    %53 = math.tanh %52 : vector<8x32xf32>
    %cst_37 = arith.constant 1.000000e+00 : f32
    %54 = vector.broadcast %cst_37 : f32 to vector<8x32xf32>
    %55 = arith.subf %54, %48 : vector<8x32xf32>
    %56 = arith.mulf %55, %53 : vector<8x32xf32>
    %57 = arith.mulf %48, %18 : vector<8x32xf32>
    %58 = arith.addf %56, %57 : vector<8x32xf32>
    %cst_38 = arith.constant dense<0.000000e+00> : vector<8x32xf32>
    %59 = tpu.matmul %58, %6, %cst_38 {dimension_numbers = #tpu.dot_dimension_numbers<[1], [0], [0], [1], [0, 0, 1, 1], [], []>} : vector<8x32xf32>, vector<32x32xf32>, vector<8x32xf32> -> vector<8x32xf32>
    %60 = vector.broadcast %11 : vector<1x32xf32> to vector<8x32xf32>
    %61 = arith.addf %59, %60 : vector<8x32xf32>
    %cst_39 = arith.constant 0.000000e+00 : f32
    %62 = vector.broadcast %cst_39 : f32 to vector<8x32xf32>
    %63 = arith.maximumf %61, %62 : vector<8x32xf32>
    %cst_40 = arith.constant dense<0.000000e+00> : vector<8x32xf32>
    %64 = tpu.matmul %63, %8, %cst_40 {dimension_numbers = #tpu.dot_dimension_numbers<[1], [0], [0], [1], [0, 0, 1, 1], [], []>} : vector<8x32xf32>, vector<32x32xf32>, vector<8x32xf32> -> vector<8x32xf32>
    %65 = vector.broadcast %12 : vector<1x32xf32> to vector<8x32xf32>
    %66 = arith.addf %64, %65 : vector<8x32xf32>
    %cst_41 = arith.constant 0.000000e+00 : f32
    %67 = vector.broadcast %cst_41 : f32 to vector<8x32xf32>
    %68 = arith.maximumf %66, %67 : vector<8x32xf32>
    %cst_42 = arith.constant dense<0.000000e+00> : vector<8x32xf32>
    %69 = tpu.matmul %68, %10, %cst_42 {dimension_numbers = #tpu.dot_dimension_numbers<[1], [0], [0], [1], [0, 0, 1, 1], [], []>} : vector<8x32xf32>, vector<32x32xf32>, vector<8x32xf32> -> vector<8x32xf32>
    %70 = vector.broadcast %13 : vector<1x32xf32> to vector<8x32xf32>
    %71 = arith.addf %69, %70 : vector<8x32xf32>
    %72 = vector.extract_strided_slice %71 {offsets = [0, 0], sizes = [8, 16], strides = [1, 1]} : vector<8x32xf32> to vector<8x16xf32>
    %73 = vector.extract_strided_slice %71 {offsets = [0, 16], sizes = [8, 16], strides = [1, 1]} : vector<8x32xf32> to vector<8x16xf32>
    %cst_43 = arith.constant dense<0.000000e+00> : vector<8x8xf32>
    %74 = tpu.matmul %72, %73, %cst_43 {dimension_numbers = #tpu.dot_dimension_numbers<[1], [1], [0], [0], [0, 0, 1, 0], [], []>} : vector<8x16xf32>, vector<8x16xf32>, vector<8x8xf32> -> vector<8x8xf32>
    %75 = arith.mulf %74, %15 : vector<8x8xf32>
    %76 = arith.mulf %75, %75 : vector<8x8xf32>
    %cst_44 = arith.constant dense<0.000000e+00> : vector<8xf32>
    %77 = vector.multi_reduction <add>, %76, %cst_44 [1] : vector<8x8xf32> to vector<8xf32>
    %78 = vector.shape_cast %77 : vector<8xf32> to vector<8x1xf32>
    %cst_45 = arith.constant dense<0.000000e+00> : vector<8x1xf32>
    %79 = tpu.matmul %15, %78, %cst_45 {dimension_numbers = #tpu.dot_dimension_numbers<[1], [0], [0], [1], [0, 0, 1, 1], [], []>} : vector<8x8xf32>, vector<8x1xf32>, vector<8x1xf32> -> vector<8x1xf32>
    %80 = math.rsqrt %79 : vector<8x1xf32>
    %81 = vector.broadcast %80 : vector<8x1xf32> to vector<8x8xf32>
    %82 = arith.mulf %75, %81 : vector<8x8xf32>
    %83 = math.tanh %82 : vector<8x8xf32>
    %84 = math.absf %83 : vector<8x8xf32>
    %85 = arith.addf %84, %14 : vector<8x8xf32>
    %86 = arith.negf %85 : vector<8x8xf32>
    %87 = math.exp %86 : vector<8x8xf32>
    %cst_46 = arith.constant 1.000000e+00 : f32
    %88 = vector.broadcast %cst_46 : f32 to vector<8x8xf32>
    %89 = arith.addf %88, %87 : vector<8x8xf32>
    %90 = arith.divf %88, %89 : vector<8x8xf32>
    %91 = arith.mulf %83, %90 : vector<8x8xf32>
    %cst_47 = arith.constant dense<0.000000e+00> : vector<8x32xf32>
    %92 = tpu.matmul %91, %58, %cst_47 {dimension_numbers = #tpu.dot_dimension_numbers<[1], [0], [0], [1], [0, 0, 1, 1], [], []>} : vector<8x8xf32>, vector<8x32xf32>, vector<8x32xf32> -> vector<8x32xf32>
    %93 = arith.index_cast %c0_i32 : i32 to index
    %c0_48 = arith.constant 0 : index
    %c0_49 = arith.constant 0 : index
    %94 = vector.load %arg12[%93, %c0_48, %c0_49] : memref<8x8x8xf32, #tpu.memory_space<vmem>>, vector<1x8x8xf32>
    %95 = vector.shape_cast %94 : vector<1x8x8xf32> to vector<8x8xf32>
    %96 = vector.shape_cast %91 : vector<8x8xf32> to vector<1x8x8xf32>
    tpu.vector_store %arg12[%93, %c0_48, %c0_49], %96 {strides = array<i32>} : memref<8x8x8xf32, #tpu.memory_space<vmem>>, vector<1x8x8xf32>,
    %97 = vector.broadcast %16 : vector<1x32xf32> to vector<8x32xf32>
    %98 = arith.mulf %92, %97 : vector<8x32xf32>
    %cst_50 = arith.constant dense<0.000000e+00> : vector<8xf32>
    %99 = vector.multi_reduction <add>, %98, %cst_50 [1] : vector<8x32xf32> to vector<8xf32>
    %100 = vector.shape_cast %99 : vector<8xf32> to vector<8x1xf32>
    %101 = vector.broadcast %17 : vector<1x1xf32> to vector<8x1xf32>
    %102 = arith.addf %100, %101 : vector<8x1xf32>
    %103 = arith.index_cast %c0_i32 : i32 to index
    %c0_51 = arith.constant 0 : index
    %c0_52 = arith.constant 0 : index
    %104 = vector.load %arg13[%103, %c0_51, %c0_52] : memref<8x8x1xf32, #tpu.memory_space<vmem>>, vector<1x8x1xf32>
    %105 = vector.shape_cast %104 : vector<1x8x1xf32> to vector<8x1xf32>
    %106 = vector.shape_cast %102 : vector<8x1xf32> to vector<1x8x1xf32>
    tpu.vector_store %arg13[%103, %c0_51, %c0_52], %106 {strides = array<i32>} : memref<8x8x1xf32, #tpu.memory_space<vmem>>, vector<1x8x1xf32>,
    %c1_i32 = arith.constant 1 : i32
    %107 = arith.index_cast %c1_i32 : i32 to index
    %c0_53 = arith.constant 0 : index
    %c0_54 = arith.constant 0 : index
    %108 = vector.load %arg0[%107, %c0_53, %c0_54] : memref<8x8x1xf32, #tpu.memory_space<vmem>>, vector<1x8x1xf32>
    %109 = vector.shape_cast %108 : vector<1x8x1xf32> to vector<8x1xf32>
    %110 = vector.broadcast %109 : vector<8x1xf32> to vector<8x8xf32>
    %111 = vector.broadcast %0 : vector<1x8xf32> to vector<8x8xf32>
    %112 = arith.mulf %110, %111 : vector<8x8xf32>
    %113 = vector.broadcast %1 : vector<1x8xf32> to vector<8x8xf32>
    %114 = arith.addf %112, %113 : vector<8x8xf32>
    %cst_55 = arith.constant dense<0.000000e+00> : vector<8x96xf32>
    %115 = tpu.matmul %114, %2, %cst_55 {dimension_numbers = #tpu.dot_dimension_numbers<[1], [0], [0], [1], [0, 0, 1, 1], [], []>} : vector<8x8xf32>, vector<8x96xf32>, vector<8x96xf32> -> vector<8x96xf32>
    %116 = vector.broadcast %4 : vector<1x96xf32> to vector<8x96xf32>
    %117 = arith.addf %115, %116 : vector<8x96xf32>
    %cst_56 = arith.constant dense<0.000000e+00> : vector<8x96xf32>
    %118 = tpu.matmul %92, %3, %cst_56 {dimension_numbers = #tpu.dot_dimension_numbers<[1], [0], [0], [1], [0, 0, 1, 1], [], []>} : vector<8x32xf32>, vector<32x96xf32>, vector<8x96xf32> -> vector<8x96xf32>
    %119 = vector.broadcast %5 : vector<1x96xf32> to vector<8x96xf32>
    %120 = arith.addf %118, %119 : vector<8x96xf32>
    %121 = vector.extract_strided_slice %117 {offsets = [0, 0], sizes = [8, 32], strides = [1, 1]} : vector<8x96xf32> to vector<8x32xf32>
    %122 = vector.extract_strided_slice %120 {offsets = [0, 0], sizes = [8, 32], strides = [1, 1]} : vector<8x96xf32> to vector<8x32xf32>
    %123 = arith.addf %121, %122 : vector<8x32xf32>
    %124 = arith.negf %123 : vector<8x32xf32>
    %125 = math.exp %124 : vector<8x32xf32>
    %cst_57 = arith.constant 1.000000e+00 : f32
    %126 = vector.broadcast %cst_57 : f32 to vector<8x32xf32>
    %127 = arith.addf %126, %125 : vector<8x32xf32>
    %128 = arith.divf %126, %127 : vector<8x32xf32>
    %129 = vector.extract_strided_slice %117 {offsets = [0, 32], sizes = [8, 32], strides = [1, 1]} : vector<8x96xf32> to vector<8x32xf32>
    %130 = vector.extract_strided_slice %120 {offsets = [0, 32], sizes = [8, 32], strides = [1, 1]} : vector<8x96xf32> to vector<8x32xf32>
    %131 = arith.addf %129, %130 : vector<8x32xf32>
    %132 = arith.negf %131 : vector<8x32xf32>
    %133 = math.exp %132 : vector<8x32xf32>
    %cst_58 = arith.constant 1.000000e+00 : f32
    %134 = vector.broadcast %cst_58 : f32 to vector<8x32xf32>
    %135 = arith.addf %134, %133 : vector<8x32xf32>
    %136 = arith.divf %134, %135 : vector<8x32xf32>
    %137 = vector.extract_strided_slice %117 {offsets = [0, 64], sizes = [8, 32], strides = [1, 1]} : vector<8x96xf32> to vector<8x32xf32>
    %138 = vector.extract_strided_slice %120 {offsets = [0, 64], sizes = [8, 32], strides = [1, 1]} : vector<8x96xf32> to vector<8x32xf32>
    %139 = arith.mulf %128, %138 : vector<8x32xf32>
    %140 = arith.addf %137, %139 : vector<8x32xf32>
    %141 = math.tanh %140 : vector<8x32xf32>
    %cst_59 = arith.constant 1.000000e+00 : f32
    %142 = vector.broadcast %cst_59 : f32 to vector<8x32xf32>
    %143 = arith.subf %142, %136 : vector<8x32xf32>
    %144 = arith.mulf %143, %141 : vector<8x32xf32>
    %145 = arith.mulf %136, %92 : vector<8x32xf32>
    %146 = arith.addf %144, %145 : vector<8x32xf32>
    %cst_60 = arith.constant dense<0.000000e+00> : vector<8x32xf32>
    %147 = tpu.matmul %146, %6, %cst_60 {dimension_numbers = #tpu.dot_dimension_numbers<[1], [0], [0], [1], [0, 0, 1, 1], [], []>} : vector<8x32xf32>, vector<32x32xf32>, vector<8x32xf32> -> vector<8x32xf32>
    %148 = vector.broadcast %11 : vector<1x32xf32> to vector<8x32xf32>
    %149 = arith.addf %147, %148 : vector<8x32xf32>
    %cst_61 = arith.constant 0.000000e+00 : f32
    %150 = vector.broadcast %cst_61 : f32 to vector<8x32xf32>
    %151 = arith.maximumf %149, %150 : vector<8x32xf32>
    %cst_62 = arith.constant dense<0.000000e+00> : vector<8x32xf32>
    %152 = tpu.matmul %151, %8, %cst_62 {dimension_numbers = #tpu.dot_dimension_numbers<[1], [0], [0], [1], [0, 0, 1, 1], [], []>} : vector<8x32xf32>, vector<32x32xf32>, vector<8x32xf32> -> vector<8x32xf32>
    %153 = vector.broadcast %12 : vector<1x32xf32> to vector<8x32xf32>
    %154 = arith.addf %152, %153 : vector<8x32xf32>
    %cst_63 = arith.constant 0.000000e+00 : f32
    %155 = vector.broadcast %cst_63 : f32 to vector<8x32xf32>
    %156 = arith.maximumf %154, %155 : vector<8x32xf32>
    %cst_64 = arith.constant dense<0.000000e+00> : vector<8x32xf32>
    %157 = tpu.matmul %156, %10, %cst_64 {dimension_numbers = #tpu.dot_dimension_numbers<[1], [0], [0], [1], [0, 0, 1, 1], [], []>} : vector<8x32xf32>, vector<32x32xf32>, vector<8x32xf32> -> vector<8x32xf32>
    %158 = vector.broadcast %13 : vector<1x32xf32> to vector<8x32xf32>
    %159 = arith.addf %157, %158 : vector<8x32xf32>
    %160 = vector.extract_strided_slice %159 {offsets = [0, 0], sizes = [8, 16], strides = [1, 1]} : vector<8x32xf32> to vector<8x16xf32>
    %161 = vector.extract_strided_slice %159 {offsets = [0, 16], sizes = [8, 16], strides = [1, 1]} : vector<8x32xf32> to vector<8x16xf32>
    %cst_65 = arith.constant dense<0.000000e+00> : vector<8x8xf32>
    %162 = tpu.matmul %160, %161, %cst_65 {dimension_numbers = #tpu.dot_dimension_numbers<[1], [1], [0], [0], [0, 0, 1, 0], [], []>} : vector<8x16xf32>, vector<8x16xf32>, vector<8x8xf32> -> vector<8x8xf32>
    %163 = arith.mulf %162, %15 : vector<8x8xf32>
    %164 = arith.mulf %163, %163 : vector<8x8xf32>
    %cst_66 = arith.constant dense<0.000000e+00> : vector<8xf32>
    %165 = vector.multi_reduction <add>, %164, %cst_66 [1] : vector<8x8xf32> to vector<8xf32>
    %166 = vector.shape_cast %165 : vector<8xf32> to vector<8x1xf32>
    %cst_67 = arith.constant dense<0.000000e+00> : vector<8x1xf32>
    %167 = tpu.matmul %15, %166, %cst_67 {dimension_numbers = #tpu.dot_dimension_numbers<[1], [0], [0], [1], [0, 0, 1, 1], [], []>} : vector<8x8xf32>, vector<8x1xf32>, vector<8x1xf32> -> vector<8x1xf32>
    %168 = math.rsqrt %167 : vector<8x1xf32>
    %169 = vector.broadcast %168 : vector<8x1xf32> to vector<8x8xf32>
    %170 = arith.mulf %163, %169 : vector<8x8xf32>
    %171 = math.tanh %170 : vector<8x8xf32>
    %172 = math.absf %171 : vector<8x8xf32>
    %173 = arith.addf %172, %14 : vector<8x8xf32>
    %174 = arith.negf %173 : vector<8x8xf32>
    %175 = math.exp %174 : vector<8x8xf32>
    %cst_68 = arith.constant 1.000000e+00 : f32
    %176 = vector.broadcast %cst_68 : f32 to vector<8x8xf32>
    %177 = arith.addf %176, %175 : vector<8x8xf32>
    %178 = arith.divf %176, %177 : vector<8x8xf32>
    %179 = arith.mulf %171, %178 : vector<8x8xf32>
    %cst_69 = arith.constant dense<0.000000e+00> : vector<8x32xf32>
    %180 = tpu.matmul %179, %146, %cst_69 {dimension_numbers = #tpu.dot_dimension_numbers<[1], [0], [0], [1], [0, 0, 1, 1], [], []>} : vector<8x8xf32>, vector<8x32xf32>, vector<8x32xf32> -> vector<8x32xf32>
    %181 = arith.index_cast %c1_i32 : i32 to index
    %c0_70 = arith.constant 0 : index
    %c0_71 = arith.constant 0 : index
    %182 = vector.load %arg12[%181, %c0_70, %c0_71] : memref<8x8x8xf32, #tpu.memory_space<vmem>>, vector<1x8x8xf32>
    %183 = vector.shape_cast %182 : vector<1x8x8xf32> to vector<8x8xf32>
    %184 = vector.shape_cast %179 : vector<8x8xf32> to vector<1x8x8xf32>
    tpu.vector_store %arg12[%181, %c0_70, %c0_71], %184 {strides = array<i32>} : memref<8x8x8xf32, #tpu.memory_space<vmem>>, vector<1x8x8xf32>,
    %185 = vector.broadcast %16 : vector<1x32xf32> to vector<8x32xf32>
    %186 = arith.mulf %180, %185 : vector<8x32xf32>
    %cst_72 = arith.constant dense<0.000000e+00> : vector<8xf32>
    %187 = vector.multi_reduction <add>, %186, %cst_72 [1] : vector<8x32xf32> to vector<8xf32>
    %188 = vector.shape_cast %187 : vector<8xf32> to vector<8x1xf32>
    %189 = vector.broadcast %17 : vector<1x1xf32> to vector<8x1xf32>
    %190 = arith.addf %188, %189 : vector<8x1xf32>
    %191 = arith.index_cast %c1_i32 : i32 to index
    %c0_73 = arith.constant 0 : index
    %c0_74 = arith.constant 0 : index
    %192 = vector.load %arg13[%191, %c0_73, %c0_74] : memref<8x8x1xf32, #tpu.memory_space<vmem>>, vector<1x8x1xf32>
    %193 = vector.shape_cast %192 : vector<1x8x1xf32> to vector<8x1xf32>
    %194 = vector.shape_cast %190 : vector<8x1xf32> to vector<1x8x1xf32>
    tpu.vector_store %arg13[%191, %c0_73, %c0_74], %194 {strides = array<i32>} : memref<8x8x1xf32, #tpu.memory_space<vmem>>, vector<1x8x1xf32>,
    %c2_i32 = arith.constant 2 : i32
    %195 = arith.index_cast %c2_i32 : i32 to index
    %c0_75 = arith.constant 0 : index
    %c0_76 = arith.constant 0 : index
    %196 = vector.load %arg0[%195, %c0_75, %c0_76] : memref<8x8x1xf32, #tpu.memory_space<vmem>>, vector<1x8x1xf32>
    %197 = vector.shape_cast %196 : vector<1x8x1xf32> to vector<8x1xf32>
    %198 = vector.broadcast %197 : vector<8x1xf32> to vector<8x8xf32>
    %199 = vector.broadcast %0 : vector<1x8xf32> to vector<8x8xf32>
    %200 = arith.mulf %198, %199 : vector<8x8xf32>
    %201 = vector.broadcast %1 : vector<1x8xf32> to vector<8x8xf32>
    %202 = arith.addf %200, %201 : vector<8x8xf32>
    %cst_77 = arith.constant dense<0.000000e+00> : vector<8x96xf32>
    %203 = tpu.matmul %202, %2, %cst_77 {dimension_numbers = #tpu.dot_dimension_numbers<[1], [0], [0], [1], [0, 0, 1, 1], [], []>} : vector<8x8xf32>, vector<8x96xf32>, vector<8x96xf32> -> vector<8x96xf32>
    %204 = vector.broadcast %4 : vector<1x96xf32> to vector<8x96xf32>
    %205 = arith.addf %203, %204 : vector<8x96xf32>
    %cst_78 = arith.constant dense<0.000000e+00> : vector<8x96xf32>
    %206 = tpu.matmul %180, %3, %cst_78 {dimension_numbers = #tpu.dot_dimension_numbers<[1], [0], [0], [1], [0, 0, 1, 1], [], []>} : vector<8x32xf32>, vector<32x96xf32>, vector<8x96xf32> -> vector<8x96xf32>
    %207 = vector.broadcast %5 : vector<1x96xf32> to vector<8x96xf32>
    %208 = arith.addf %206, %207 : vector<8x96xf32>
    %209 = vector.extract_strided_slice %205 {offsets = [0, 0], sizes = [8, 32], strides = [1, 1]} : vector<8x96xf32> to vector<8x32xf32>
    %210 = vector.extract_strided_slice %208 {offsets = [0, 0], sizes = [8, 32], strides = [1, 1]} : vector<8x96xf32> to vector<8x32xf32>
    %211 = arith.addf %209, %210 : vector<8x32xf32>
    %212 = arith.negf %211 : vector<8x32xf32>
    %213 = math.exp %212 : vector<8x32xf32>
    %cst_79 = arith.constant 1.000000e+00 : f32
    %214 = vector.broadcast %cst_79 : f32 to vector<8x32xf32>
    %215 = arith.addf %214, %213 : vector<8x32xf32>
    %216 = arith.divf %214, %215 : vector<8x32xf32>
    %217 = vector.extract_strided_slice %205 {offsets = [0, 32], sizes = [8, 32], strides = [1, 1]} : vector<8x96xf32> to vector<8x32xf32>
    %218 = vector.extract_strided_slice %208 {offsets = [0, 32], sizes = [8, 32], strides = [1, 1]} : vector<8x96xf32> to vector<8x32xf32>
    %219 = arith.addf %217, %218 : vector<8x32xf32>
    %220 = arith.negf %219 : vector<8x32xf32>
    %221 = math.exp %220 : vector<8x32xf32>
    %cst_80 = arith.constant 1.000000e+00 : f32
    %222 = vector.broadcast %cst_80 : f32 to vector<8x32xf32>
    %223 = arith.addf %222, %221 : vector<8x32xf32>
    %224 = arith.divf %222, %223 : vector<8x32xf32>
    %225 = vector.extract_strided_slice %205 {offsets = [0, 64], sizes = [8, 32], strides = [1, 1]} : vector<8x96xf32> to vector<8x32xf32>
    %226 = vector.extract_strided_slice %208 {offsets = [0, 64], sizes = [8, 32], strides = [1, 1]} : vector<8x96xf32> to vector<8x32xf32>
    %227 = arith.mulf %216, %226 : vector<8x32xf32>
    %228 = arith.addf %225, %227 : vector<8x32xf32>
    %229 = math.tanh %228 : vector<8x32xf32>
    %cst_81 = arith.constant 1.000000e+00 : f32
    %230 = vector.broadcast %cst_81 : f32 to vector<8x32xf32>
    %231 = arith.subf %230, %224 : vector<8x32xf32>
    %232 = arith.mulf %231, %229 : vector<8x32xf32>
    %233 = arith.mulf %224, %180 : vector<8x32xf32>
    %234 = arith.addf %232, %233 : vector<8x32xf32>
    %cst_82 = arith.constant dense<0.000000e+00> : vector<8x32xf32>
    %235 = tpu.matmul %234, %6, %cst_82 {dimension_numbers = #tpu.dot_dimension_numbers<[1], [0], [0], [1], [0, 0, 1, 1], [], []>} : vector<8x32xf32>, vector<32x32xf32>, vector<8x32xf32> -> vector<8x32xf32>
    %236 = vector.broadcast %11 : vector<1x32xf32> to vector<8x32xf32>
    %237 = arith.addf %235, %236 : vector<8x32xf32>
    %cst_83 = arith.constant 0.000000e+00 : f32
    %238 = vector.broadcast %cst_83 : f32 to vector<8x32xf32>
    %239 = arith.maximumf %237, %238 : vector<8x32xf32>
    %cst_84 = arith.constant dense<0.000000e+00> : vector<8x32xf32>
    %240 = tpu.matmul %239, %8, %cst_84 {dimension_numbers = #tpu.dot_dimension_numbers<[1], [0], [0], [1], [0, 0, 1, 1], [], []>} : vector<8x32xf32>, vector<32x32xf32>, vector<8x32xf32> -> vector<8x32xf32>
    %241 = vector.broadcast %12 : vector<1x32xf32> to vector<8x32xf32>
    %242 = arith.addf %240, %241 : vector<8x32xf32>
    %cst_85 = arith.constant 0.000000e+00 : f32
    %243 = vector.broadcast %cst_85 : f32 to vector<8x32xf32>
    %244 = arith.maximumf %242, %243 : vector<8x32xf32>
    %cst_86 = arith.constant dense<0.000000e+00> : vector<8x32xf32>
    %245 = tpu.matmul %244, %10, %cst_86 {dimension_numbers = #tpu.dot_dimension_numbers<[1], [0], [0], [1], [0, 0, 1, 1], [], []>} : vector<8x32xf32>, vector<32x32xf32>, vector<8x32xf32> -> vector<8x32xf32>
    %246 = vector.broadcast %13 : vector<1x32xf32> to vector<8x32xf32>
    %247 = arith.addf %245, %246 : vector<8x32xf32>
    %248 = vector.extract_strided_slice %247 {offsets = [0, 0], sizes = [8, 16], strides = [1, 1]} : vector<8x32xf32> to vector<8x16xf32>
    %249 = vector.extract_strided_slice %247 {offsets = [0, 16], sizes = [8, 16], strides = [1, 1]} : vector<8x32xf32> to vector<8x16xf32>
    %cst_87 = arith.constant dense<0.000000e+00> : vector<8x8xf32>
    %250 = tpu.matmul %248, %249, %cst_87 {dimension_numbers = #tpu.dot_dimension_numbers<[1], [1], [0], [0], [0, 0, 1, 0], [], []>} : vector<8x16xf32>, vector<8x16xf32>, vector<8x8xf32> -> vector<8x8xf32>
    %251 = arith.mulf %250, %15 : vector<8x8xf32>
    %252 = arith.mulf %251, %251 : vector<8x8xf32>
    %cst_88 = arith.constant dense<0.000000e+00> : vector<8xf32>
    %253 = vector.multi_reduction <add>, %252, %cst_88 [1] : vector<8x8xf32> to vector<8xf32>
    %254 = vector.shape_cast %253 : vector<8xf32> to vector<8x1xf32>
    %cst_89 = arith.constant dense<0.000000e+00> : vector<8x1xf32>
    %255 = tpu.matmul %15, %254, %cst_89 {dimension_numbers = #tpu.dot_dimension_numbers<[1], [0], [0], [1], [0, 0, 1, 1], [], []>} : vector<8x8xf32>, vector<8x1xf32>, vector<8x1xf32> -> vector<8x1xf32>
    %256 = math.rsqrt %255 : vector<8x1xf32>
    %257 = vector.broadcast %256 : vector<8x1xf32> to vector<8x8xf32>
    %258 = arith.mulf %251, %257 : vector<8x8xf32>
    %259 = math.tanh %258 : vector<8x8xf32>
    %260 = math.absf %259 : vector<8x8xf32>
    %261 = arith.addf %260, %14 : vector<8x8xf32>
    %262 = arith.negf %261 : vector<8x8xf32>
    %263 = math.exp %262 : vector<8x8xf32>
    %cst_90 = arith.constant 1.000000e+00 : f32
    %264 = vector.broadcast %cst_90 : f32 to vector<8x8xf32>
    %265 = arith.addf %264, %263 : vector<8x8xf32>
    %266 = arith.divf %264, %265 : vector<8x8xf32>
    %267 = arith.mulf %259, %266 : vector<8x8xf32>
    %cst_91 = arith.constant dense<0.000000e+00> : vector<8x32xf32>
    %268 = tpu.matmul %267, %234, %cst_91 {dimension_numbers = #tpu.dot_dimension_numbers<[1], [0], [0], [1], [0, 0, 1, 1], [], []>} : vector<8x8xf32>, vector<8x32xf32>, vector<8x32xf32> -> vector<8x32xf32>
    %269 = arith.index_cast %c2_i32 : i32 to index
    %c0_92 = arith.constant 0 : index
    %c0_93 = arith.constant 0 : index
    %270 = vector.load %arg12[%269, %c0_92, %c0_93] : memref<8x8x8xf32, #tpu.memory_space<vmem>>, vector<1x8x8xf32>
    %271 = vector.shape_cast %270 : vector<1x8x8xf32> to vector<8x8xf32>
    %272 = vector.shape_cast %267 : vector<8x8xf32> to vector<1x8x8xf32>
    tpu.vector_store %arg12[%269, %c0_92, %c0_93], %272 {strides = array<i32>} : memref<8x8x8xf32, #tpu.memory_space<vmem>>, vector<1x8x8xf32>,
    %273 = vector.broadcast %16 : vector<1x32xf32> to vector<8x32xf32>
    %274 = arith.mulf %268, %273 : vector<8x32xf32>
    %cst_94 = arith.constant dense<0.000000e+00> : vector<8xf32>
    %275 = vector.multi_reduction <add>, %274, %cst_94 [1] : vector<8x32xf32> to vector<8xf32>
    %276 = vector.shape_cast %275 : vector<8xf32> to vector<8x1xf32>
    %277 = vector.broadcast %17 : vector<1x1xf32> to vector<8x1xf32>
    %278 = arith.addf %276, %277 : vector<8x1xf32>
    %279 = arith.index_cast %c2_i32 : i32 to index
    %c0_95 = arith.constant 0 : index
    %c0_96 = arith.constant 0 : index
    %280 = vector.load %arg13[%279, %c0_95, %c0_96] : memref<8x8x1xf32, #tpu.memory_space<vmem>>, vector<1x8x1xf32>
    %281 = vector.shape_cast %280 : vector<1x8x1xf32> to vector<8x1xf32>
    %282 = vector.shape_cast %278 : vector<8x1xf32> to vector<1x8x1xf32>
    tpu.vector_store %arg13[%279, %c0_95, %c0_96], %282 {strides = array<i32>} : memref<8x8x1xf32, #tpu.memory_space<vmem>>, vector<1x8x1xf32>,
    %c3_i32 = arith.constant 3 : i32
    %283 = arith.index_cast %c3_i32 : i32 to index
    %c0_97 = arith.constant 0 : index
    %c0_98 = arith.constant 0 : index
    %284 = vector.load %arg0[%283, %c0_97, %c0_98] : memref<8x8x1xf32, #tpu.memory_space<vmem>>, vector<1x8x1xf32>
    %285 = vector.shape_cast %284 : vector<1x8x1xf32> to vector<8x1xf32>
    %286 = vector.broadcast %285 : vector<8x1xf32> to vector<8x8xf32>
    %287 = vector.broadcast %0 : vector<1x8xf32> to vector<8x8xf32>
    %288 = arith.mulf %286, %287 : vector<8x8xf32>
    %289 = vector.broadcast %1 : vector<1x8xf32> to vector<8x8xf32>
    %290 = arith.addf %288, %289 : vector<8x8xf32>
    %cst_99 = arith.constant dense<0.000000e+00> : vector<8x96xf32>
    %291 = tpu.matmul %290, %2, %cst_99 {dimension_numbers = #tpu.dot_dimension_numbers<[1], [0], [0], [1], [0, 0, 1, 1], [], []>} : vector<8x8xf32>, vector<8x96xf32>, vector<8x96xf32> -> vector<8x96xf32>
    %292 = vector.broadcast %4 : vector<1x96xf32> to vector<8x96xf32>
    %293 = arith.addf %291, %292 : vector<8x96xf32>
    %cst_100 = arith.constant dense<0.000000e+00> : vector<8x96xf32>
    %294 = tpu.matmul %268, %3, %cst_100 {dimension_numbers = #tpu.dot_dimension_numbers<[1], [0], [0], [1], [0, 0, 1, 1], [], []>} : vector<8x32xf32>, vector<32x96xf32>, vector<8x96xf32> -> vector<8x96xf32>
    %295 = vector.broadcast %5 : vector<1x96xf32> to vector<8x96xf32>
    %296 = arith.addf %294, %295 : vector<8x96xf32>
    %297 = vector.extract_strided_slice %293 {offsets = [0, 0], sizes = [8, 32], strides = [1, 1]} : vector<8x96xf32> to vector<8x32xf32>
    %298 = vector.extract_strided_slice %296 {offsets = [0, 0], sizes = [8, 32], strides = [1, 1]} : vector<8x96xf32> to vector<8x32xf32>
    %299 = arith.addf %297, %298 : vector<8x32xf32>
    %300 = arith.negf %299 : vector<8x32xf32>
    %301 = math.exp %300 : vector<8x32xf32>
    %cst_101 = arith.constant 1.000000e+00 : f32
    %302 = vector.broadcast %cst_101 : f32 to vector<8x32xf32>
    %303 = arith.addf %302, %301 : vector<8x32xf32>
    %304 = arith.divf %302, %303 : vector<8x32xf32>
    %305 = vector.extract_strided_slice %293 {offsets = [0, 32], sizes = [8, 32], strides = [1, 1]} : vector<8x96xf32> to vector<8x32xf32>
    %306 = vector.extract_strided_slice %296 {offsets = [0, 32], sizes = [8, 32], strides = [1, 1]} : vector<8x96xf32> to vector<8x32xf32>
    %307 = arith.addf %305, %306 : vector<8x32xf32>
    %308 = arith.negf %307 : vector<8x32xf32>
    %309 = math.exp %308 : vector<8x32xf32>
    %cst_102 = arith.constant 1.000000e+00 : f32
    %310 = vector.broadcast %cst_102 : f32 to vector<8x32xf32>
    %311 = arith.addf %310, %309 : vector<8x32xf32>
    %312 = arith.divf %310, %311 : vector<8x32xf32>
    %313 = vector.extract_strided_slice %293 {offsets = [0, 64], sizes = [8, 32], strides = [1, 1]} : vector<8x96xf32> to vector<8x32xf32>
    %314 = vector.extract_strided_slice %296 {offsets = [0, 64], sizes = [8, 32], strides = [1, 1]} : vector<8x96xf32> to vector<8x32xf32>
    %315 = arith.mulf %304, %314 : vector<8x32xf32>
    %316 = arith.addf %313, %315 : vector<8x32xf32>
    %317 = math.tanh %316 : vector<8x32xf32>
    %cst_103 = arith.constant 1.000000e+00 : f32
    %318 = vector.broadcast %cst_103 : f32 to vector<8x32xf32>
    %319 = arith.subf %318, %312 : vector<8x32xf32>
    %320 = arith.mulf %319, %317 : vector<8x32xf32>
    %321 = arith.mulf %312, %268 : vector<8x32xf32>
    %322 = arith.addf %320, %321 : vector<8x32xf32>
    %cst_104 = arith.constant dense<0.000000e+00> : vector<8x32xf32>
    %323 = tpu.matmul %322, %6, %cst_104 {dimension_numbers = #tpu.dot_dimension_numbers<[1], [0], [0], [1], [0, 0, 1, 1], [], []>} : vector<8x32xf32>, vector<32x32xf32>, vector<8x32xf32> -> vector<8x32xf32>
    %324 = vector.broadcast %11 : vector<1x32xf32> to vector<8x32xf32>
    %325 = arith.addf %323, %324 : vector<8x32xf32>
    %cst_105 = arith.constant 0.000000e+00 : f32
    %326 = vector.broadcast %cst_105 : f32 to vector<8x32xf32>
    %327 = arith.maximumf %325, %326 : vector<8x32xf32>
    %cst_106 = arith.constant dense<0.000000e+00> : vector<8x32xf32>
    %328 = tpu.matmul %327, %8, %cst_106 {dimension_numbers = #tpu.dot_dimension_numbers<[1], [0], [0], [1], [0, 0, 1, 1], [], []>} : vector<8x32xf32>, vector<32x32xf32>, vector<8x32xf32> -> vector<8x32xf32>
    %329 = vector.broadcast %12 : vector<1x32xf32> to vector<8x32xf32>
    %330 = arith.addf %328, %329 : vector<8x32xf32>
    %cst_107 = arith.constant 0.000000e+00 : f32
    %331 = vector.broadcast %cst_107 : f32 to vector<8x32xf32>
    %332 = arith.maximumf %330, %331 : vector<8x32xf32>
    %cst_108 = arith.constant dense<0.000000e+00> : vector<8x32xf32>
    %333 = tpu.matmul %332, %10, %cst_108 {dimension_numbers = #tpu.dot_dimension_numbers<[1], [0], [0], [1], [0, 0, 1, 1], [], []>} : vector<8x32xf32>, vector<32x32xf32>, vector<8x32xf32> -> vector<8x32xf32>
    %334 = vector.broadcast %13 : vector<1x32xf32> to vector<8x32xf32>
    %335 = arith.addf %333, %334 : vector<8x32xf32>
    %336 = vector.extract_strided_slice %335 {offsets = [0, 0], sizes = [8, 16], strides = [1, 1]} : vector<8x32xf32> to vector<8x16xf32>
    %337 = vector.extract_strided_slice %335 {offsets = [0, 16], sizes = [8, 16], strides = [1, 1]} : vector<8x32xf32> to vector<8x16xf32>
    %cst_109 = arith.constant dense<0.000000e+00> : vector<8x8xf32>
    %338 = tpu.matmul %336, %337, %cst_109 {dimension_numbers = #tpu.dot_dimension_numbers<[1], [1], [0], [0], [0, 0, 1, 0], [], []>} : vector<8x16xf32>, vector<8x16xf32>, vector<8x8xf32> -> vector<8x8xf32>
    %339 = arith.mulf %338, %15 : vector<8x8xf32>
    %340 = arith.mulf %339, %339 : vector<8x8xf32>
    %cst_110 = arith.constant dense<0.000000e+00> : vector<8xf32>
    %341 = vector.multi_reduction <add>, %340, %cst_110 [1] : vector<8x8xf32> to vector<8xf32>
    %342 = vector.shape_cast %341 : vector<8xf32> to vector<8x1xf32>
    %cst_111 = arith.constant dense<0.000000e+00> : vector<8x1xf32>
    %343 = tpu.matmul %15, %342, %cst_111 {dimension_numbers = #tpu.dot_dimension_numbers<[1], [0], [0], [1], [0, 0, 1, 1], [], []>} : vector<8x8xf32>, vector<8x1xf32>, vector<8x1xf32> -> vector<8x1xf32>
    %344 = math.rsqrt %343 : vector<8x1xf32>
    %345 = vector.broadcast %344 : vector<8x1xf32> to vector<8x8xf32>
    %346 = arith.mulf %339, %345 : vector<8x8xf32>
    %347 = math.tanh %346 : vector<8x8xf32>
    %348 = math.absf %347 : vector<8x8xf32>
    %349 = arith.addf %348, %14 : vector<8x8xf32>
    %350 = arith.negf %349 : vector<8x8xf32>
    %351 = math.exp %350 : vector<8x8xf32>
    %cst_112 = arith.constant 1.000000e+00 : f32
    %352 = vector.broadcast %cst_112 : f32 to vector<8x8xf32>
    %353 = arith.addf %352, %351 : vector<8x8xf32>
    %354 = arith.divf %352, %353 : vector<8x8xf32>
    %355 = arith.mulf %347, %354 : vector<8x8xf32>
    %cst_113 = arith.constant dense<0.000000e+00> : vector<8x32xf32>
    %356 = tpu.matmul %355, %322, %cst_113 {dimension_numbers = #tpu.dot_dimension_numbers<[1], [0], [0], [1], [0, 0, 1, 1], [], []>} : vector<8x8xf32>, vector<8x32xf32>, vector<8x32xf32> -> vector<8x32xf32>
    %357 = arith.index_cast %c3_i32 : i32 to index
    %c0_114 = arith.constant 0 : index
    %c0_115 = arith.constant 0 : index
    %358 = vector.load %arg12[%357, %c0_114, %c0_115] : memref<8x8x8xf32, #tpu.memory_space<vmem>>, vector<1x8x8xf32>
    %359 = vector.shape_cast %358 : vector<1x8x8xf32> to vector<8x8xf32>
    %360 = vector.shape_cast %355 : vector<8x8xf32> to vector<1x8x8xf32>
    tpu.vector_store %arg12[%357, %c0_114, %c0_115], %360 {strides = array<i32>} : memref<8x8x8xf32, #tpu.memory_space<vmem>>, vector<1x8x8xf32>,
    %361 = vector.broadcast %16 : vector<1x32xf32> to vector<8x32xf32>
    %362 = arith.mulf %356, %361 : vector<8x32xf32>
    %cst_116 = arith.constant dense<0.000000e+00> : vector<8xf32>
    %363 = vector.multi_reduction <add>, %362, %cst_116 [1] : vector<8x32xf32> to vector<8xf32>
    %364 = vector.shape_cast %363 : vector<8xf32> to vector<8x1xf32>
    %365 = vector.broadcast %17 : vector<1x1xf32> to vector<8x1xf32>
    %366 = arith.addf %364, %365 : vector<8x1xf32>
    %367 = arith.index_cast %c3_i32 : i32 to index
    %c0_117 = arith.constant 0 : index
    %c0_118 = arith.constant 0 : index
    %368 = vector.load %arg13[%367, %c0_117, %c0_118] : memref<8x8x1xf32, #tpu.memory_space<vmem>>, vector<1x8x1xf32>
    %369 = vector.shape_cast %368 : vector<1x8x1xf32> to vector<8x1xf32>
    %370 = vector.shape_cast %366 : vector<8x1xf32> to vector<1x8x1xf32>
    tpu.vector_store %arg13[%367, %c0_117, %c0_118], %370 {strides = array<i32>} : memref<8x8x1xf32, #tpu.memory_space<vmem>>, vector<1x8x1xf32>,
    %c4_i32 = arith.constant 4 : i32
    %371 = arith.index_cast %c4_i32 : i32 to index
    %c0_119 = arith.constant 0 : index
    %c0_120 = arith.constant 0 : index
    %372 = vector.load %arg0[%371, %c0_119, %c0_120] : memref<8x8x1xf32, #tpu.memory_space<vmem>>, vector<1x8x1xf32>
    %373 = vector.shape_cast %372 : vector<1x8x1xf32> to vector<8x1xf32>
    %374 = vector.broadcast %373 : vector<8x1xf32> to vector<8x8xf32>
    %375 = vector.broadcast %0 : vector<1x8xf32> to vector<8x8xf32>
    %376 = arith.mulf %374, %375 : vector<8x8xf32>
    %377 = vector.broadcast %1 : vector<1x8xf32> to vector<8x8xf32>
    %378 = arith.addf %376, %377 : vector<8x8xf32>
    %cst_121 = arith.constant dense<0.000000e+00> : vector<8x96xf32>
    %379 = tpu.matmul %378, %2, %cst_121 {dimension_numbers = #tpu.dot_dimension_numbers<[1], [0], [0], [1], [0, 0, 1, 1], [], []>} : vector<8x8xf32>, vector<8x96xf32>, vector<8x96xf32> -> vector<8x96xf32>
    %380 = vector.broadcast %4 : vector<1x96xf32> to vector<8x96xf32>
    %381 = arith.addf %379, %380 : vector<8x96xf32>
    %cst_122 = arith.constant dense<0.000000e+00> : vector<8x96xf32>
    %382 = tpu.matmul %356, %3, %cst_122 {dimension_numbers = #tpu.dot_dimension_numbers<[1], [0], [0], [1], [0, 0, 1, 1], [], []>} : vector<8x32xf32>, vector<32x96xf32>, vector<8x96xf32> -> vector<8x96xf32>
    %383 = vector.broadcast %5 : vector<1x96xf32> to vector<8x96xf32>
    %384 = arith.addf %382, %383 : vector<8x96xf32>
    %385 = vector.extract_strided_slice %381 {offsets = [0, 0], sizes = [8, 32], strides = [1, 1]} : vector<8x96xf32> to vector<8x32xf32>
    %386 = vector.extract_strided_slice %384 {offsets = [0, 0], sizes = [8, 32], strides = [1, 1]} : vector<8x96xf32> to vector<8x32xf32>
    %387 = arith.addf %385, %386 : vector<8x32xf32>
    %388 = arith.negf %387 : vector<8x32xf32>
    %389 = math.exp %388 : vector<8x32xf32>
    %cst_123 = arith.constant 1.000000e+00 : f32
    %390 = vector.broadcast %cst_123 : f32 to vector<8x32xf32>
    %391 = arith.addf %390, %389 : vector<8x32xf32>
    %392 = arith.divf %390, %391 : vector<8x32xf32>
    %393 = vector.extract_strided_slice %381 {offsets = [0, 32], sizes = [8, 32], strides = [1, 1]} : vector<8x96xf32> to vector<8x32xf32>
    %394 = vector.extract_strided_slice %384 {offsets = [0, 32], sizes = [8, 32], strides = [1, 1]} : vector<8x96xf32> to vector<8x32xf32>
    %395 = arith.addf %393, %394 : vector<8x32xf32>
    %396 = arith.negf %395 : vector<8x32xf32>
    %397 = math.exp %396 : vector<8x32xf32>
    %cst_124 = arith.constant 1.000000e+00 : f32
    %398 = vector.broadcast %cst_124 : f32 to vector<8x32xf32>
    %399 = arith.addf %398, %397 : vector<8x32xf32>
    %400 = arith.divf %398, %399 : vector<8x32xf32>
    %401 = vector.extract_strided_slice %381 {offsets = [0, 64], sizes = [8, 32], strides = [1, 1]} : vector<8x96xf32> to vector<8x32xf32>
    %402 = vector.extract_strided_slice %384 {offsets = [0, 64], sizes = [8, 32], strides = [1, 1]} : vector<8x96xf32> to vector<8x32xf32>
    %403 = arith.mulf %392, %402 : vector<8x32xf32>
    %404 = arith.addf %401, %403 : vector<8x32xf32>
    %405 = math.tanh %404 : vector<8x32xf32>
    %cst_125 = arith.constant 1.000000e+00 : f32
    %406 = vector.broadcast %cst_125 : f32 to vector<8x32xf32>
    %407 = arith.subf %406, %400 : vector<8x32xf32>
    %408 = arith.mulf %407, %405 : vector<8x32xf32>
    %409 = arith.mulf %400, %356 : vector<8x32xf32>
    %410 = arith.addf %408, %409 : vector<8x32xf32>
    %cst_126 = arith.constant dense<0.000000e+00> : vector<8x32xf32>
    %411 = tpu.matmul %410, %6, %cst_126 {dimension_numbers = #tpu.dot_dimension_numbers<[1], [0], [0], [1], [0, 0, 1, 1], [], []>} : vector<8x32xf32>, vector<32x32xf32>, vector<8x32xf32> -> vector<8x32xf32>
    %412 = vector.broadcast %11 : vector<1x32xf32> to vector<8x32xf32>
    %413 = arith.addf %411, %412 : vector<8x32xf32>
    %cst_127 = arith.constant 0.000000e+00 : f32
    %414 = vector.broadcast %cst_127 : f32 to vector<8x32xf32>
    %415 = arith.maximumf %413, %414 : vector<8x32xf32>
    %cst_128 = arith.constant dense<0.000000e+00> : vector<8x32xf32>
    %416 = tpu.matmul %415, %8, %cst_128 {dimension_numbers = #tpu.dot_dimension_numbers<[1], [0], [0], [1], [0, 0, 1, 1], [], []>} : vector<8x32xf32>, vector<32x32xf32>, vector<8x32xf32> -> vector<8x32xf32>
    %417 = vector.broadcast %12 : vector<1x32xf32> to vector<8x32xf32>
    %418 = arith.addf %416, %417 : vector<8x32xf32>
    %cst_129 = arith.constant 0.000000e+00 : f32
    %419 = vector.broadcast %cst_129 : f32 to vector<8x32xf32>
    %420 = arith.maximumf %418, %419 : vector<8x32xf32>
    %cst_130 = arith.constant dense<0.000000e+00> : vector<8x32xf32>
    %421 = tpu.matmul %420, %10, %cst_130 {dimension_numbers = #tpu.dot_dimension_numbers<[1], [0], [0], [1], [0, 0, 1, 1], [], []>} : vector<8x32xf32>, vector<32x32xf32>, vector<8x32xf32> -> vector<8x32xf32>
    %422 = vector.broadcast %13 : vector<1x32xf32> to vector<8x32xf32>
    %423 = arith.addf %421, %422 : vector<8x32xf32>
    %424 = vector.extract_strided_slice %423 {offsets = [0, 0], sizes = [8, 16], strides = [1, 1]} : vector<8x32xf32> to vector<8x16xf32>
    %425 = vector.extract_strided_slice %423 {offsets = [0, 16], sizes = [8, 16], strides = [1, 1]} : vector<8x32xf32> to vector<8x16xf32>
    %cst_131 = arith.constant dense<0.000000e+00> : vector<8x8xf32>
    %426 = tpu.matmul %424, %425, %cst_131 {dimension_numbers = #tpu.dot_dimension_numbers<[1], [1], [0], [0], [0, 0, 1, 0], [], []>} : vector<8x16xf32>, vector<8x16xf32>, vector<8x8xf32> -> vector<8x8xf32>
    %427 = arith.mulf %426, %15 : vector<8x8xf32>
    %428 = arith.mulf %427, %427 : vector<8x8xf32>
    %cst_132 = arith.constant dense<0.000000e+00> : vector<8xf32>
    %429 = vector.multi_reduction <add>, %428, %cst_132 [1] : vector<8x8xf32> to vector<8xf32>
    %430 = vector.shape_cast %429 : vector<8xf32> to vector<8x1xf32>
    %cst_133 = arith.constant dense<0.000000e+00> : vector<8x1xf32>
    %431 = tpu.matmul %15, %430, %cst_133 {dimension_numbers = #tpu.dot_dimension_numbers<[1], [0], [0], [1], [0, 0, 1, 1], [], []>} : vector<8x8xf32>, vector<8x1xf32>, vector<8x1xf32> -> vector<8x1xf32>
    %432 = math.rsqrt %431 : vector<8x1xf32>
    %433 = vector.broadcast %432 : vector<8x1xf32> to vector<8x8xf32>
    %434 = arith.mulf %427, %433 : vector<8x8xf32>
    %435 = math.tanh %434 : vector<8x8xf32>
    %436 = math.absf %435 : vector<8x8xf32>
    %437 = arith.addf %436, %14 : vector<8x8xf32>
    %438 = arith.negf %437 : vector<8x8xf32>
    %439 = math.exp %438 : vector<8x8xf32>
    %cst_134 = arith.constant 1.000000e+00 : f32
    %440 = vector.broadcast %cst_134 : f32 to vector<8x8xf32>
    %441 = arith.addf %440, %439 : vector<8x8xf32>
    %442 = arith.divf %440, %441 : vector<8x8xf32>
    %443 = arith.mulf %435, %442 : vector<8x8xf32>
    %cst_135 = arith.constant dense<0.000000e+00> : vector<8x32xf32>
    %444 = tpu.matmul %443, %410, %cst_135 {dimension_numbers = #tpu.dot_dimension_numbers<[1], [0], [0], [1], [0, 0, 1, 1], [], []>} : vector<8x8xf32>, vector<8x32xf32>, vector<8x32xf32> -> vector<8x32xf32>
    %445 = arith.index_cast %c4_i32 : i32 to index
    %c0_136 = arith.constant 0 : index
    %c0_137 = arith.constant 0 : index
    %446 = vector.load %arg12[%445, %c0_136, %c0_137] : memref<8x8x8xf32, #tpu.memory_space<vmem>>, vector<1x8x8xf32>
    %447 = vector.shape_cast %446 : vector<1x8x8xf32> to vector<8x8xf32>
    %448 = vector.shape_cast %443 : vector<8x8xf32> to vector<1x8x8xf32>
    tpu.vector_store %arg12[%445, %c0_136, %c0_137], %448 {strides = array<i32>} : memref<8x8x8xf32, #tpu.memory_space<vmem>>, vector<1x8x8xf32>,
    %449 = vector.broadcast %16 : vector<1x32xf32> to vector<8x32xf32>
    %450 = arith.mulf %444, %449 : vector<8x32xf32>
    %cst_138 = arith.constant dense<0.000000e+00> : vector<8xf32>
    %451 = vector.multi_reduction <add>, %450, %cst_138 [1] : vector<8x32xf32> to vector<8xf32>
    %452 = vector.shape_cast %451 : vector<8xf32> to vector<8x1xf32>
    %453 = vector.broadcast %17 : vector<1x1xf32> to vector<8x1xf32>
    %454 = arith.addf %452, %453 : vector<8x1xf32>
    %455 = arith.index_cast %c4_i32 : i32 to index
    %c0_139 = arith.constant 0 : index
    %c0_140 = arith.constant 0 : index
    %456 = vector.load %arg13[%455, %c0_139, %c0_140] : memref<8x8x1xf32, #tpu.memory_space<vmem>>, vector<1x8x1xf32>
    %457 = vector.shape_cast %456 : vector<1x8x1xf32> to vector<8x1xf32>
    %458 = vector.shape_cast %454 : vector<8x1xf32> to vector<1x8x1xf32>
    tpu.vector_store %arg13[%455, %c0_139, %c0_140], %458 {strides = array<i32>} : memref<8x8x1xf32, #tpu.memory_space<vmem>>, vector<1x8x1xf32>,
    %c5_i32 = arith.constant 5 : i32
    %459 = arith.index_cast %c5_i32 : i32 to index
    %c0_141 = arith.constant 0 : index
    %c0_142 = arith.constant 0 : index
    %460 = vector.load %arg0[%459, %c0_141, %c0_142] : memref<8x8x1xf32, #tpu.memory_space<vmem>>, vector<1x8x1xf32>
    %461 = vector.shape_cast %460 : vector<1x8x1xf32> to vector<8x1xf32>
    %462 = vector.broadcast %461 : vector<8x1xf32> to vector<8x8xf32>
    %463 = vector.broadcast %0 : vector<1x8xf32> to vector<8x8xf32>
    %464 = arith.mulf %462, %463 : vector<8x8xf32>
    %465 = vector.broadcast %1 : vector<1x8xf32> to vector<8x8xf32>
    %466 = arith.addf %464, %465 : vector<8x8xf32>
    %cst_143 = arith.constant dense<0.000000e+00> : vector<8x96xf32>
    %467 = tpu.matmul %466, %2, %cst_143 {dimension_numbers = #tpu.dot_dimension_numbers<[1], [0], [0], [1], [0, 0, 1, 1], [], []>} : vector<8x8xf32>, vector<8x96xf32>, vector<8x96xf32> -> vector<8x96xf32>
    %468 = vector.broadcast %4 : vector<1x96xf32> to vector<8x96xf32>
    %469 = arith.addf %467, %468 : vector<8x96xf32>
    %cst_144 = arith.constant dense<0.000000e+00> : vector<8x96xf32>
    %470 = tpu.matmul %444, %3, %cst_144 {dimension_numbers = #tpu.dot_dimension_numbers<[1], [0], [0], [1], [0, 0, 1, 1], [], []>} : vector<8x32xf32>, vector<32x96xf32>, vector<8x96xf32> -> vector<8x96xf32>
    %471 = vector.broadcast %5 : vector<1x96xf32> to vector<8x96xf32>
    %472 = arith.addf %470, %471 : vector<8x96xf32>
    %473 = vector.extract_strided_slice %469 {offsets = [0, 0], sizes = [8, 32], strides = [1, 1]} : vector<8x96xf32> to vector<8x32xf32>
    %474 = vector.extract_strided_slice %472 {offsets = [0, 0], sizes = [8, 32], strides = [1, 1]} : vector<8x96xf32> to vector<8x32xf32>
    %475 = arith.addf %473, %474 : vector<8x32xf32>
    %476 = arith.negf %475 : vector<8x32xf32>
    %477 = math.exp %476 : vector<8x32xf32>
    %cst_145 = arith.constant 1.000000e+00 : f32
    %478 = vector.broadcast %cst_145 : f32 to vector<8x32xf32>
    %479 = arith.addf %478, %477 : vector<8x32xf32>
    %480 = arith.divf %478, %479 : vector<8x32xf32>
    %481 = vector.extract_strided_slice %469 {offsets = [0, 32], sizes = [8, 32], strides = [1, 1]} : vector<8x96xf32> to vector<8x32xf32>
    %482 = vector.extract_strided_slice %472 {offsets = [0, 32], sizes = [8, 32], strides = [1, 1]} : vector<8x96xf32> to vector<8x32xf32>
    %483 = arith.addf %481, %482 : vector<8x32xf32>
    %484 = arith.negf %483 : vector<8x32xf32>
    %485 = math.exp %484 : vector<8x32xf32>
    %cst_146 = arith.constant 1.000000e+00 : f32
    %486 = vector.broadcast %cst_146 : f32 to vector<8x32xf32>
    %487 = arith.addf %486, %485 : vector<8x32xf32>
    %488 = arith.divf %486, %487 : vector<8x32xf32>
    %489 = vector.extract_strided_slice %469 {offsets = [0, 64], sizes = [8, 32], strides = [1, 1]} : vector<8x96xf32> to vector<8x32xf32>
    %490 = vector.extract_strided_slice %472 {offsets = [0, 64], sizes = [8, 32], strides = [1, 1]} : vector<8x96xf32> to vector<8x32xf32>
    %491 = arith.mulf %480, %490 : vector<8x32xf32>
    %492 = arith.addf %489, %491 : vector<8x32xf32>
    %493 = math.tanh %492 : vector<8x32xf32>
    %cst_147 = arith.constant 1.000000e+00 : f32
    %494 = vector.broadcast %cst_147 : f32 to vector<8x32xf32>
    %495 = arith.subf %494, %488 : vector<8x32xf32>
    %496 = arith.mulf %495, %493 : vector<8x32xf32>
    %497 = arith.mulf %488, %444 : vector<8x32xf32>
    %498 = arith.addf %496, %497 : vector<8x32xf32>
    %cst_148 = arith.constant dense<0.000000e+00> : vector<8x32xf32>
    %499 = tpu.matmul %498, %6, %cst_148 {dimension_numbers = #tpu.dot_dimension_numbers<[1], [0], [0], [1], [0, 0, 1, 1], [], []>} : vector<8x32xf32>, vector<32x32xf32>, vector<8x32xf32> -> vector<8x32xf32>
    %500 = vector.broadcast %11 : vector<1x32xf32> to vector<8x32xf32>
    %501 = arith.addf %499, %500 : vector<8x32xf32>
    %cst_149 = arith.constant 0.000000e+00 : f32
    %502 = vector.broadcast %cst_149 : f32 to vector<8x32xf32>
    %503 = arith.maximumf %501, %502 : vector<8x32xf32>
    %cst_150 = arith.constant dense<0.000000e+00> : vector<8x32xf32>
    %504 = tpu.matmul %503, %8, %cst_150 {dimension_numbers = #tpu.dot_dimension_numbers<[1], [0], [0], [1], [0, 0, 1, 1], [], []>} : vector<8x32xf32>, vector<32x32xf32>, vector<8x32xf32> -> vector<8x32xf32>
    %505 = vector.broadcast %12 : vector<1x32xf32> to vector<8x32xf32>
    %506 = arith.addf %504, %505 : vector<8x32xf32>
    %cst_151 = arith.constant 0.000000e+00 : f32
    %507 = vector.broadcast %cst_151 : f32 to vector<8x32xf32>
    %508 = arith.maximumf %506, %507 : vector<8x32xf32>
    %cst_152 = arith.constant dense<0.000000e+00> : vector<8x32xf32>
    %509 = tpu.matmul %508, %10, %cst_152 {dimension_numbers = #tpu.dot_dimension_numbers<[1], [0], [0], [1], [0, 0, 1, 1], [], []>} : vector<8x32xf32>, vector<32x32xf32>, vector<8x32xf32> -> vector<8x32xf32>
    %510 = vector.broadcast %13 : vector<1x32xf32> to vector<8x32xf32>
    %511 = arith.addf %509, %510 : vector<8x32xf32>
    %512 = vector.extract_strided_slice %511 {offsets = [0, 0], sizes = [8, 16], strides = [1, 1]} : vector<8x32xf32> to vector<8x16xf32>
    %513 = vector.extract_strided_slice %511 {offsets = [0, 16], sizes = [8, 16], strides = [1, 1]} : vector<8x32xf32> to vector<8x16xf32>
    %cst_153 = arith.constant dense<0.000000e+00> : vector<8x8xf32>
    %514 = tpu.matmul %512, %513, %cst_153 {dimension_numbers = #tpu.dot_dimension_numbers<[1], [1], [0], [0], [0, 0, 1, 0], [], []>} : vector<8x16xf32>, vector<8x16xf32>, vector<8x8xf32> -> vector<8x8xf32>
    %515 = arith.mulf %514, %15 : vector<8x8xf32>
    %516 = arith.mulf %515, %515 : vector<8x8xf32>
    %cst_154 = arith.constant dense<0.000000e+00> : vector<8xf32>
    %517 = vector.multi_reduction <add>, %516, %cst_154 [1] : vector<8x8xf32> to vector<8xf32>
    %518 = vector.shape_cast %517 : vector<8xf32> to vector<8x1xf32>
    %cst_155 = arith.constant dense<0.000000e+00> : vector<8x1xf32>
    %519 = tpu.matmul %15, %518, %cst_155 {dimension_numbers = #tpu.dot_dimension_numbers<[1], [0], [0], [1], [0, 0, 1, 1], [], []>} : vector<8x8xf32>, vector<8x1xf32>, vector<8x1xf32> -> vector<8x1xf32>
    %520 = math.rsqrt %519 : vector<8x1xf32>
    %521 = vector.broadcast %520 : vector<8x1xf32> to vector<8x8xf32>
    %522 = arith.mulf %515, %521 : vector<8x8xf32>
    %523 = math.tanh %522 : vector<8x8xf32>
    %524 = math.absf %523 : vector<8x8xf32>
    %525 = arith.addf %524, %14 : vector<8x8xf32>
    %526 = arith.negf %525 : vector<8x8xf32>
    %527 = math.exp %526 : vector<8x8xf32>
    %cst_156 = arith.constant 1.000000e+00 : f32
    %528 = vector.broadcast %cst_156 : f32 to vector<8x8xf32>
    %529 = arith.addf %528, %527 : vector<8x8xf32>
    %530 = arith.divf %528, %529 : vector<8x8xf32>
    %531 = arith.mulf %523, %530 : vector<8x8xf32>
    %cst_157 = arith.constant dense<0.000000e+00> : vector<8x32xf32>
    %532 = tpu.matmul %531, %498, %cst_157 {dimension_numbers = #tpu.dot_dimension_numbers<[1], [0], [0], [1], [0, 0, 1, 1], [], []>} : vector<8x8xf32>, vector<8x32xf32>, vector<8x32xf32> -> vector<8x32xf32>
    %533 = arith.index_cast %c5_i32 : i32 to index
    %c0_158 = arith.constant 0 : index
    %c0_159 = arith.constant 0 : index
    %534 = vector.load %arg12[%533, %c0_158, %c0_159] : memref<8x8x8xf32, #tpu.memory_space<vmem>>, vector<1x8x8xf32>
    %535 = vector.shape_cast %534 : vector<1x8x8xf32> to vector<8x8xf32>
    %536 = vector.shape_cast %531 : vector<8x8xf32> to vector<1x8x8xf32>
    tpu.vector_store %arg12[%533, %c0_158, %c0_159], %536 {strides = array<i32>} : memref<8x8x8xf32, #tpu.memory_space<vmem>>, vector<1x8x8xf32>,
    %537 = vector.broadcast %16 : vector<1x32xf32> to vector<8x32xf32>
    %538 = arith.mulf %532, %537 : vector<8x32xf32>
    %cst_160 = arith.constant dense<0.000000e+00> : vector<8xf32>
    %539 = vector.multi_reduction <add>, %538, %cst_160 [1] : vector<8x32xf32> to vector<8xf32>
    %540 = vector.shape_cast %539 : vector<8xf32> to vector<8x1xf32>
    %541 = vector.broadcast %17 : vector<1x1xf32> to vector<8x1xf32>
    %542 = arith.addf %540, %541 : vector<8x1xf32>
    %543 = arith.index_cast %c5_i32 : i32 to index
    %c0_161 = arith.constant 0 : index
    %c0_162 = arith.constant 0 : index
    %544 = vector.load %arg13[%543, %c0_161, %c0_162] : memref<8x8x1xf32, #tpu.memory_space<vmem>>, vector<1x8x1xf32>
    %545 = vector.shape_cast %544 : vector<1x8x1xf32> to vector<8x1xf32>
    %546 = vector.shape_cast %542 : vector<8x1xf32> to vector<1x8x1xf32>
    tpu.vector_store %arg13[%543, %c0_161, %c0_162], %546 {strides = array<i32>} : memref<8x8x1xf32, #tpu.memory_space<vmem>>, vector<1x8x1xf32>,
    %c6_i32 = arith.constant 6 : i32
    %547 = arith.index_cast %c6_i32 : i32 to index
    %c0_163 = arith.constant 0 : index
    %c0_164 = arith.constant 0 : index
    %548 = vector.load %arg0[%547, %c0_163, %c0_164] : memref<8x8x1xf32, #tpu.memory_space<vmem>>, vector<1x8x1xf32>
    %549 = vector.shape_cast %548 : vector<1x8x1xf32> to vector<8x1xf32>
    %550 = vector.broadcast %549 : vector<8x1xf32> to vector<8x8xf32>
    %551 = vector.broadcast %0 : vector<1x8xf32> to vector<8x8xf32>
    %552 = arith.mulf %550, %551 : vector<8x8xf32>
    %553 = vector.broadcast %1 : vector<1x8xf32> to vector<8x8xf32>
    %554 = arith.addf %552, %553 : vector<8x8xf32>
    %cst_165 = arith.constant dense<0.000000e+00> : vector<8x96xf32>
    %555 = tpu.matmul %554, %2, %cst_165 {dimension_numbers = #tpu.dot_dimension_numbers<[1], [0], [0], [1], [0, 0, 1, 1], [], []>} : vector<8x8xf32>, vector<8x96xf32>, vector<8x96xf32> -> vector<8x96xf32>
    %556 = vector.broadcast %4 : vector<1x96xf32> to vector<8x96xf32>
    %557 = arith.addf %555, %556 : vector<8x96xf32>
    %cst_166 = arith.constant dense<0.000000e+00> : vector<8x96xf32>
    %558 = tpu.matmul %532, %3, %cst_166 {dimension_numbers = #tpu.dot_dimension_numbers<[1], [0], [0], [1], [0, 0, 1, 1], [], []>} : vector<8x32xf32>, vector<32x96xf32>, vector<8x96xf32> -> vector<8x96xf32>
    %559 = vector.broadcast %5 : vector<1x96xf32> to vector<8x96xf32>
    %560 = arith.addf %558, %559 : vector<8x96xf32>
    %561 = vector.extract_strided_slice %557 {offsets = [0, 0], sizes = [8, 32], strides = [1, 1]} : vector<8x96xf32> to vector<8x32xf32>
    %562 = vector.extract_strided_slice %560 {offsets = [0, 0], sizes = [8, 32], strides = [1, 1]} : vector<8x96xf32> to vector<8x32xf32>
    %563 = arith.addf %561, %562 : vector<8x32xf32>
    %564 = arith.negf %563 : vector<8x32xf32>
    %565 = math.exp %564 : vector<8x32xf32>
    %cst_167 = arith.constant 1.000000e+00 : f32
    %566 = vector.broadcast %cst_167 : f32 to vector<8x32xf32>
    %567 = arith.addf %566, %565 : vector<8x32xf32>
    %568 = arith.divf %566, %567 : vector<8x32xf32>
    %569 = vector.extract_strided_slice %557 {offsets = [0, 32], sizes = [8, 32], strides = [1, 1]} : vector<8x96xf32> to vector<8x32xf32>
    %570 = vector.extract_strided_slice %560 {offsets = [0, 32], sizes = [8, 32], strides = [1, 1]} : vector<8x96xf32> to vector<8x32xf32>
    %571 = arith.addf %569, %570 : vector<8x32xf32>
    %572 = arith.negf %571 : vector<8x32xf32>
    %573 = math.exp %572 : vector<8x32xf32>
    %cst_168 = arith.constant 1.000000e+00 : f32
    %574 = vector.broadcast %cst_168 : f32 to vector<8x32xf32>
    %575 = arith.addf %574, %573 : vector<8x32xf32>
    %576 = arith.divf %574, %575 : vector<8x32xf32>
    %577 = vector.extract_strided_slice %557 {offsets = [0, 64], sizes = [8, 32], strides = [1, 1]} : vector<8x96xf32> to vector<8x32xf32>
    %578 = vector.extract_strided_slice %560 {offsets = [0, 64], sizes = [8, 32], strides = [1, 1]} : vector<8x96xf32> to vector<8x32xf32>
    %579 = arith.mulf %568, %578 : vector<8x32xf32>
    %580 = arith.addf %577, %579 : vector<8x32xf32>
    %581 = math.tanh %580 : vector<8x32xf32>
    %cst_169 = arith.constant 1.000000e+00 : f32
    %582 = vector.broadcast %cst_169 : f32 to vector<8x32xf32>
    %583 = arith.subf %582, %576 : vector<8x32xf32>
    %584 = arith.mulf %583, %581 : vector<8x32xf32>
    %585 = arith.mulf %576, %532 : vector<8x32xf32>
    %586 = arith.addf %584, %585 : vector<8x32xf32>
    %cst_170 = arith.constant dense<0.000000e+00> : vector<8x32xf32>
    %587 = tpu.matmul %586, %6, %cst_170 {dimension_numbers = #tpu.dot_dimension_numbers<[1], [0], [0], [1], [0, 0, 1, 1], [], []>} : vector<8x32xf32>, vector<32x32xf32>, vector<8x32xf32> -> vector<8x32xf32>
    %588 = vector.broadcast %11 : vector<1x32xf32> to vector<8x32xf32>
    %589 = arith.addf %587, %588 : vector<8x32xf32>
    %cst_171 = arith.constant 0.000000e+00 : f32
    %590 = vector.broadcast %cst_171 : f32 to vector<8x32xf32>
    %591 = arith.maximumf %589, %590 : vector<8x32xf32>
    %cst_172 = arith.constant dense<0.000000e+00> : vector<8x32xf32>
    %592 = tpu.matmul %591, %8, %cst_172 {dimension_numbers = #tpu.dot_dimension_numbers<[1], [0], [0], [1], [0, 0, 1, 1], [], []>} : vector<8x32xf32>, vector<32x32xf32>, vector<8x32xf32> -> vector<8x32xf32>
    %593 = vector.broadcast %12 : vector<1x32xf32> to vector<8x32xf32>
    %594 = arith.addf %592, %593 : vector<8x32xf32>
    %cst_173 = arith.constant 0.000000e+00 : f32
    %595 = vector.broadcast %cst_173 : f32 to vector<8x32xf32>
    %596 = arith.maximumf %594, %595 : vector<8x32xf32>
    %cst_174 = arith.constant dense<0.000000e+00> : vector<8x32xf32>
    %597 = tpu.matmul %596, %10, %cst_174 {dimension_numbers = #tpu.dot_dimension_numbers<[1], [0], [0], [1], [0, 0, 1, 1], [], []>} : vector<8x32xf32>, vector<32x32xf32>, vector<8x32xf32> -> vector<8x32xf32>
    %598 = vector.broadcast %13 : vector<1x32xf32> to vector<8x32xf32>
    %599 = arith.addf %597, %598 : vector<8x32xf32>
    %600 = vector.extract_strided_slice %599 {offsets = [0, 0], sizes = [8, 16], strides = [1, 1]} : vector<8x32xf32> to vector<8x16xf32>
    %601 = vector.extract_strided_slice %599 {offsets = [0, 16], sizes = [8, 16], strides = [1, 1]} : vector<8x32xf32> to vector<8x16xf32>
    %cst_175 = arith.constant dense<0.000000e+00> : vector<8x8xf32>
    %602 = tpu.matmul %600, %601, %cst_175 {dimension_numbers = #tpu.dot_dimension_numbers<[1], [1], [0], [0], [0, 0, 1, 0], [], []>} : vector<8x16xf32>, vector<8x16xf32>, vector<8x8xf32> -> vector<8x8xf32>
    %603 = arith.mulf %602, %15 : vector<8x8xf32>
    %604 = arith.mulf %603, %603 : vector<8x8xf32>
    %cst_176 = arith.constant dense<0.000000e+00> : vector<8xf32>
    %605 = vector.multi_reduction <add>, %604, %cst_176 [1] : vector<8x8xf32> to vector<8xf32>
    %606 = vector.shape_cast %605 : vector<8xf32> to vector<8x1xf32>
    %cst_177 = arith.constant dense<0.000000e+00> : vector<8x1xf32>
    %607 = tpu.matmul %15, %606, %cst_177 {dimension_numbers = #tpu.dot_dimension_numbers<[1], [0], [0], [1], [0, 0, 1, 1], [], []>} : vector<8x8xf32>, vector<8x1xf32>, vector<8x1xf32> -> vector<8x1xf32>
    %608 = math.rsqrt %607 : vector<8x1xf32>
    %609 = vector.broadcast %608 : vector<8x1xf32> to vector<8x8xf32>
    %610 = arith.mulf %603, %609 : vector<8x8xf32>
    %611 = math.tanh %610 : vector<8x8xf32>
    %612 = math.absf %611 : vector<8x8xf32>
    %613 = arith.addf %612, %14 : vector<8x8xf32>
    %614 = arith.negf %613 : vector<8x8xf32>
    %615 = math.exp %614 : vector<8x8xf32>
    %cst_178 = arith.constant 1.000000e+00 : f32
    %616 = vector.broadcast %cst_178 : f32 to vector<8x8xf32>
    %617 = arith.addf %616, %615 : vector<8x8xf32>
    %618 = arith.divf %616, %617 : vector<8x8xf32>
    %619 = arith.mulf %611, %618 : vector<8x8xf32>
    %cst_179 = arith.constant dense<0.000000e+00> : vector<8x32xf32>
    %620 = tpu.matmul %619, %586, %cst_179 {dimension_numbers = #tpu.dot_dimension_numbers<[1], [0], [0], [1], [0, 0, 1, 1], [], []>} : vector<8x8xf32>, vector<8x32xf32>, vector<8x32xf32> -> vector<8x32xf32>
    %621 = arith.index_cast %c6_i32 : i32 to index
    %c0_180 = arith.constant 0 : index
    %c0_181 = arith.constant 0 : index
    %622 = vector.load %arg12[%621, %c0_180, %c0_181] : memref<8x8x8xf32, #tpu.memory_space<vmem>>, vector<1x8x8xf32>
    %623 = vector.shape_cast %622 : vector<1x8x8xf32> to vector<8x8xf32>
    %624 = vector.shape_cast %619 : vector<8x8xf32> to vector<1x8x8xf32>
    tpu.vector_store %arg12[%621, %c0_180, %c0_181], %624 {strides = array<i32>} : memref<8x8x8xf32, #tpu.memory_space<vmem>>, vector<1x8x8xf32>,
    %625 = vector.broadcast %16 : vector<1x32xf32> to vector<8x32xf32>
    %626 = arith.mulf %620, %625 : vector<8x32xf32>
    %cst_182 = arith.constant dense<0.000000e+00> : vector<8xf32>
    %627 = vector.multi_reduction <add>, %626, %cst_182 [1] : vector<8x32xf32> to vector<8xf32>
    %628 = vector.shape_cast %627 : vector<8xf32> to vector<8x1xf32>
    %629 = vector.broadcast %17 : vector<1x1xf32> to vector<8x1xf32>
    %630 = arith.addf %628, %629 : vector<8x1xf32>
    %631 = arith.index_cast %c6_i32 : i32 to index
    %c0_183 = arith.constant 0 : index
    %c0_184 = arith.constant 0 : index
    %632 = vector.load %arg13[%631, %c0_183, %c0_184] : memref<8x8x1xf32, #tpu.memory_space<vmem>>, vector<1x8x1xf32>
    %633 = vector.shape_cast %632 : vector<1x8x1xf32> to vector<8x1xf32>
    %634 = vector.shape_cast %630 : vector<8x1xf32> to vector<1x8x1xf32>
    tpu.vector_store %arg13[%631, %c0_183, %c0_184], %634 {strides = array<i32>} : memref<8x8x1xf32, #tpu.memory_space<vmem>>, vector<1x8x1xf32>,
    %c7_i32 = arith.constant 7 : i32
    %635 = arith.index_cast %c7_i32 : i32 to index
    %c0_185 = arith.constant 0 : index
    %c0_186 = arith.constant 0 : index
    %636 = vector.load %arg0[%635, %c0_185, %c0_186] : memref<8x8x1xf32, #tpu.memory_space<vmem>>, vector<1x8x1xf32>
    %637 = vector.shape_cast %636 : vector<1x8x1xf32> to vector<8x1xf32>
    %638 = vector.broadcast %637 : vector<8x1xf32> to vector<8x8xf32>
    %639 = vector.broadcast %0 : vector<1x8xf32> to vector<8x8xf32>
    %640 = arith.mulf %638, %639 : vector<8x8xf32>
    %641 = vector.broadcast %1 : vector<1x8xf32> to vector<8x8xf32>
    %642 = arith.addf %640, %641 : vector<8x8xf32>
    %cst_187 = arith.constant dense<0.000000e+00> : vector<8x96xf32>
    %643 = tpu.matmul %642, %2, %cst_187 {dimension_numbers = #tpu.dot_dimension_numbers<[1], [0], [0], [1], [0, 0, 1, 1], [], []>} : vector<8x8xf32>, vector<8x96xf32>, vector<8x96xf32> -> vector<8x96xf32>
    %644 = vector.broadcast %4 : vector<1x96xf32> to vector<8x96xf32>
    %645 = arith.addf %643, %644 : vector<8x96xf32>
    %cst_188 = arith.constant dense<0.000000e+00> : vector<8x96xf32>
    %646 = tpu.matmul %620, %3, %cst_188 {dimension_numbers = #tpu.dot_dimension_numbers<[1], [0], [0], [1], [0, 0, 1, 1], [], []>} : vector<8x32xf32>, vector<32x96xf32>, vector<8x96xf32> -> vector<8x96xf32>
    %647 = vector.broadcast %5 : vector<1x96xf32> to vector<8x96xf32>
    %648 = arith.addf %646, %647 : vector<8x96xf32>
    %649 = vector.extract_strided_slice %645 {offsets = [0, 0], sizes = [8, 32], strides = [1, 1]} : vector<8x96xf32> to vector<8x32xf32>
    %650 = vector.extract_strided_slice %648 {offsets = [0, 0], sizes = [8, 32], strides = [1, 1]} : vector<8x96xf32> to vector<8x32xf32>
    %651 = arith.addf %649, %650 : vector<8x32xf32>
    %652 = arith.negf %651 : vector<8x32xf32>
    %653 = math.exp %652 : vector<8x32xf32>
    %cst_189 = arith.constant 1.000000e+00 : f32
    %654 = vector.broadcast %cst_189 : f32 to vector<8x32xf32>
    %655 = arith.addf %654, %653 : vector<8x32xf32>
    %656 = arith.divf %654, %655 : vector<8x32xf32>
    %657 = vector.extract_strided_slice %645 {offsets = [0, 32], sizes = [8, 32], strides = [1, 1]} : vector<8x96xf32> to vector<8x32xf32>
    %658 = vector.extract_strided_slice %648 {offsets = [0, 32], sizes = [8, 32], strides = [1, 1]} : vector<8x96xf32> to vector<8x32xf32>
    %659 = arith.addf %657, %658 : vector<8x32xf32>
    %660 = arith.negf %659 : vector<8x32xf32>
    %661 = math.exp %660 : vector<8x32xf32>
    %cst_190 = arith.constant 1.000000e+00 : f32
    %662 = vector.broadcast %cst_190 : f32 to vector<8x32xf32>
    %663 = arith.addf %662, %661 : vector<8x32xf32>
    %664 = arith.divf %662, %663 : vector<8x32xf32>
    %665 = vector.extract_strided_slice %645 {offsets = [0, 64], sizes = [8, 32], strides = [1, 1]} : vector<8x96xf32> to vector<8x32xf32>
    %666 = vector.extract_strided_slice %648 {offsets = [0, 64], sizes = [8, 32], strides = [1, 1]} : vector<8x96xf32> to vector<8x32xf32>
    %667 = arith.mulf %656, %666 : vector<8x32xf32>
    %668 = arith.addf %665, %667 : vector<8x32xf32>
    %669 = math.tanh %668 : vector<8x32xf32>
    %cst_191 = arith.constant 1.000000e+00 : f32
    %670 = vector.broadcast %cst_191 : f32 to vector<8x32xf32>
    %671 = arith.subf %670, %664 : vector<8x32xf32>
    %672 = arith.mulf %671, %669 : vector<8x32xf32>
    %673 = arith.mulf %664, %620 : vector<8x32xf32>
    %674 = arith.addf %672, %673 : vector<8x32xf32>
    %cst_192 = arith.constant dense<0.000000e+00> : vector<8x32xf32>
    %675 = tpu.matmul %674, %6, %cst_192 {dimension_numbers = #tpu.dot_dimension_numbers<[1], [0], [0], [1], [0, 0, 1, 1], [], []>} : vector<8x32xf32>, vector<32x32xf32>, vector<8x32xf32> -> vector<8x32xf32>
    %676 = vector.broadcast %11 : vector<1x32xf32> to vector<8x32xf32>
    %677 = arith.addf %675, %676 : vector<8x32xf32>
    %cst_193 = arith.constant 0.000000e+00 : f32
    %678 = vector.broadcast %cst_193 : f32 to vector<8x32xf32>
    %679 = arith.maximumf %677, %678 : vector<8x32xf32>
    %cst_194 = arith.constant dense<0.000000e+00> : vector<8x32xf32>
    %680 = tpu.matmul %679, %8, %cst_194 {dimension_numbers = #tpu.dot_dimension_numbers<[1], [0], [0], [1], [0, 0, 1, 1], [], []>} : vector<8x32xf32>, vector<32x32xf32>, vector<8x32xf32> -> vector<8x32xf32>
    %681 = vector.broadcast %12 : vector<1x32xf32> to vector<8x32xf32>
    %682 = arith.addf %680, %681 : vector<8x32xf32>
    %cst_195 = arith.constant 0.000000e+00 : f32
    %683 = vector.broadcast %cst_195 : f32 to vector<8x32xf32>
    %684 = arith.maximumf %682, %683 : vector<8x32xf32>
    %cst_196 = arith.constant dense<0.000000e+00> : vector<8x32xf32>
    %685 = tpu.matmul %684, %10, %cst_196 {dimension_numbers = #tpu.dot_dimension_numbers<[1], [0], [0], [1], [0, 0, 1, 1], [], []>} : vector<8x32xf32>, vector<32x32xf32>, vector<8x32xf32> -> vector<8x32xf32>
    %686 = vector.broadcast %13 : vector<1x32xf32> to vector<8x32xf32>
    %687 = arith.addf %685, %686 : vector<8x32xf32>
    %688 = vector.extract_strided_slice %687 {offsets = [0, 0], sizes = [8, 16], strides = [1, 1]} : vector<8x32xf32> to vector<8x16xf32>
    %689 = vector.extract_strided_slice %687 {offsets = [0, 16], sizes = [8, 16], strides = [1, 1]} : vector<8x32xf32> to vector<8x16xf32>
    %cst_197 = arith.constant dense<0.000000e+00> : vector<8x8xf32>
    %690 = tpu.matmul %688, %689, %cst_197 {dimension_numbers = #tpu.dot_dimension_numbers<[1], [1], [0], [0], [0, 0, 1, 0], [], []>} : vector<8x16xf32>, vector<8x16xf32>, vector<8x8xf32> -> vector<8x8xf32>
    %691 = arith.mulf %690, %15 : vector<8x8xf32>
    %692 = arith.mulf %691, %691 : vector<8x8xf32>
    %cst_198 = arith.constant dense<0.000000e+00> : vector<8xf32>
    %693 = vector.multi_reduction <add>, %692, %cst_198 [1] : vector<8x8xf32> to vector<8xf32>
    %694 = vector.shape_cast %693 : vector<8xf32> to vector<8x1xf32>
    %cst_199 = arith.constant dense<0.000000e+00> : vector<8x1xf32>
    %695 = tpu.matmul %15, %694, %cst_199 {dimension_numbers = #tpu.dot_dimension_numbers<[1], [0], [0], [1], [0, 0, 1, 1], [], []>} : vector<8x8xf32>, vector<8x1xf32>, vector<8x1xf32> -> vector<8x1xf32>
    %696 = math.rsqrt %695 : vector<8x1xf32>
    %697 = vector.broadcast %696 : vector<8x1xf32> to vector<8x8xf32>
    %698 = arith.mulf %691, %697 : vector<8x8xf32>
    %699 = math.tanh %698 : vector<8x8xf32>
    %700 = math.absf %699 : vector<8x8xf32>
    %701 = arith.addf %700, %14 : vector<8x8xf32>
    %702 = arith.negf %701 : vector<8x8xf32>
    %703 = math.exp %702 : vector<8x8xf32>
    %cst_200 = arith.constant 1.000000e+00 : f32
    %704 = vector.broadcast %cst_200 : f32 to vector<8x8xf32>
    %705 = arith.addf %704, %703 : vector<8x8xf32>
    %706 = arith.divf %704, %705 : vector<8x8xf32>
    %707 = arith.mulf %699, %706 : vector<8x8xf32>
    %cst_201 = arith.constant dense<0.000000e+00> : vector<8x32xf32>
    %708 = tpu.matmul %707, %674, %cst_201 {dimension_numbers = #tpu.dot_dimension_numbers<[1], [0], [0], [1], [0, 0, 1, 1], [], []>} : vector<8x8xf32>, vector<8x32xf32>, vector<8x32xf32> -> vector<8x32xf32>
    %709 = arith.index_cast %c7_i32 : i32 to index
    %c0_202 = arith.constant 0 : index
    %c0_203 = arith.constant 0 : index
    %710 = vector.load %arg12[%709, %c0_202, %c0_203] : memref<8x8x8xf32, #tpu.memory_space<vmem>>, vector<1x8x8xf32>
    %711 = vector.shape_cast %710 : vector<1x8x8xf32> to vector<8x8xf32>
    %712 = vector.shape_cast %707 : vector<8x8xf32> to vector<1x8x8xf32>
    tpu.vector_store %arg12[%709, %c0_202, %c0_203], %712 {strides = array<i32>} : memref<8x8x8xf32, #tpu.memory_space<vmem>>, vector<1x8x8xf32>,
    %713 = vector.broadcast %16 : vector<1x32xf32> to vector<8x32xf32>
    %714 = arith.mulf %708, %713 : vector<8x32xf32>
    %cst_204 = arith.constant dense<0.000000e+00> : vector<8xf32>
    %715 = vector.multi_reduction <add>, %714, %cst_204 [1] : vector<8x32xf32> to vector<8xf32>
    %716 = vector.shape_cast %715 : vector<8xf32> to vector<8x1xf32>
    %717 = vector.broadcast %17 : vector<1x1xf32> to vector<8x1xf32>
    %718 = arith.addf %716, %717 : vector<8x1xf32>
    %719 = arith.index_cast %c7_i32 : i32 to index
    %c0_205 = arith.constant 0 : index
    %c0_206 = arith.constant 0 : index
    %720 = vector.load %arg13[%719, %c0_205, %c0_206] : memref<8x8x1xf32, #tpu.memory_space<vmem>>, vector<1x8x1xf32>
    %721 = vector.shape_cast %720 : vector<1x8x1xf32> to vector<8x1xf32>
    %722 = vector.shape_cast %718 : vector<8x1xf32> to vector<1x8x1xf32>
    tpu.vector_store %arg13[%719, %c0_205, %c0_206], %722 {strides = array<i32>} : memref<8x8x1xf32, #tpu.memory_space<vmem>>, vector<1x8x1xf32>,
    %c8_i32 = arith.constant 8 : i32
    return
  }
}

</mosaic_0001>

<bundles_post_ra>
// kernel: tile.8
= control target key start
LH: loop header
LB: loop body
LE: loop exit
PB: predicated region body
PF: predicated region fallthrough
CT: control target
= control target key end

     0   :  { %s82_s0 = inlined_call_operand.vmem [shape: f32[4,4], index: 0, kind: input, shape index: {}]   ;;  %s83_s1 = inlined_call_operand.vmem [shape: f32[2,4,2,4], index: 1, kind: output, shape index: {}]  }
   0x1   :  { %v4_v0 = vld [vmem:[%s82_s0] ss:$0 sm:$0xff]  ;;  %v27_v1 = vld [vmem:[%s82_s0 + $0x1] ss:$0 sm:$0xff]  ;;  %v30_v2 = vld [vmem:[%s82_s0 + $0x2] ss:$0 sm:$0xff] }
   0x2   :  { %5 = vst [vmem:[%s83_s1] sm:$0x3] %v4_v0  ;;  %26 = vst [vmem:[%s83_s1 + $0x8] sm:$0x3] %v4_v0  ;;  %v33_v3 = vld [vmem:[%s82_s0 + $0x3] ss:$0 sm:$0xff] }
   0x3   :  { %28 = vst [vmem:[%s83_s1 + $0x2] sm:$0x3] %v27_v1  ;;  %29 = vst [vmem:[%s83_s1 + $0xa] sm:$0x3] %v27_v1 }
   0x4   :  { %31 = vst [vmem:[%s83_s1 + $0x4] sm:$0x3] %v30_v2  ;;  %32 = vst [vmem:[%s83_s1 + $0xc] sm:$0x3] %v30_v2 }
   0x5   :  { %34 = vst [vmem:[%s83_s1 + $0x6] sm:$0x3] %v33_v3  ;;  %35 = vst [vmem:[%s83_s1 + $0xe] sm:$0x3] %v33_v3 }

// kernel: tile.9
= control target key start
LH: loop header
LB: loop body
LE: loop exit
PB: predicated region body
PF: predicated region fallthrough
CT: control target
= control target key end

     0   :  { %vm42_vm0 = vcmask 1047556   ;;  %vm44_vm1 = vcmask 31744   ;;  %vm54_vm2 = vcmask 64544   ;;  %s111_s0 = inlined_call_operand.vmem [shape: f32[2,4,2,4], index: 0, kind: input, shape index: {}]   ;;  %s112_s1 = inlined_call_operand.vmem [shape: f32[8,8], index: 1, kind: output, shape index: {}]  }
   0x1   :  { %v62_v0 = vld [vmem:[%s111_s0 + $0xe] sm:$0x3]  ;;  %v63_v1 = vld [vmem:[%s111_s0 + $0xc] sm:$0x3]  ;;  %v64_v2 = vld [vmem:[%s111_s0 + $0xa] sm:$0x3] }
   0x2   :  { %8 = vst [vmem:[#allocation0 + $0x38] sm:$0x3] %v62_v0  ;;  %13 = vst [vmem:[#allocation0 + $0x30] sm:$0x3] %v63_v1  ;;  %v65_v3 = vld [vmem:[%s111_s0 + $0x8] sm:$0x3] }
   0x3   :  { %18 = vst [vmem:[#allocation0 + $0x28] sm:$0x3] %v64_v2  ;;  %v66_v4 = vld [vmem:[%s111_s0 + $0x6] sm:$0x3]  ;;  %v67_v5 = vld [vmem:[%s111_s0 + $0x4] sm:$0x3] }
   0x4   :  { %23 = vst [vmem:[#allocation0 + $0x20] sm:$0x3] %v65_v3  ;;  %28 = vst [vmem:[#allocation0 + $0x18] sm:$0x3] %v66_v4  ;;  %v68_v6 = vld [vmem:[%s111_s0 + $0x2] sm:$0x3] }
   0x5   :  { %33 = vst [vmem:[#allocation0 + $0x10] sm:$0x3] %v67_v5  ;;  %v38_v7 = vld [vmem:[%s111_s0] sm:$0x3]  ;;  %37 = vst [vmem:[#allocation0 + $0x8] sm:$0x3] %v68_v6 }
   0x6   :  { %39 = vst [vmem:[#allocation0] sm:$0x3] %v38_v7  ;;  %s70_s0 = smov 4  }
   0xb   :  { %v41_v8 = vld [vmem:[#allocation0] ss:$8 sm:$0xf0]   ;;  %v49_v9 = vld [vmem:[#allocation0 + $0x1] ss:$8 sm:$0xf0]  }
   0xd   :  { %v40_v10 = vld [vmem:[#allocation0] ss:$8 sm:$0xf]   ;;  %v47_v11 = vld [vmem:[#allocation0 + $0x1] ss:$8 sm:$0xf]  }
   0xe   :  { %v43_v12 = vsel %vm42_vm0, %v41_v8, %v40_v10  ;;  %v51_v13 = vsel %vm42_vm0, %v49_v9, %v47_v11 }
   0xf   :  { %52 = vrot.lane.b32.xlu0 %v51_v13, %s70_s0  ;;  %45 = vst.msk [vmem:[%s112_s1] sm:$0xff] %vm44_vm1, %v43_v12  }
  0x81   :  { %v53_v14 = vpop.permute.xlu0 %52  }
  0x82   :  { %55 = vst.msk [vmem:[%s112_s1] sm:$0xff] %vm54_vm2, %v53_v14  }

// kernel: multivariate_ts_forward.1
= control target key start
LH: loop header
LB: loop body
LE: loop exit
PB: predicated region body
PF: predicated region fallthrough
CT: control target
= control target key end

     0   :  { %v6576_v0 = vmov 0   ;;  %v6577_v2 = vmov 0.0|0.0   ;;  %vm6578_vm0 = vmmov 0   ;;  %v6579_v8 = vmov 0.0   ;;  %s6580_s25 = smov 64   ;;  %s6581_s19 = smov 96   ;;  %s7468_s0 = inlined_call_operand.vmem [shape: f32[8,8,1], index: 0, kind: input, shape index: {}]   ;;  %s7469_s3 = inlined_call_operand.vmem [shape: f32[32,96], index: 3, kind: input, shape index: {}]   ;;  %s7470_s2 = inlined_call_operand.vmem [shape: f32[8,96], index: 2, kind: input, shape index: {}]   ;;  %s7471_s1 = inlined_call_operand.vmem [shape: f32[2,8], index: 1, kind: input, shape index: {}]   ;;  %s7472_s4 = inlined_call_operand.vmem [shape: f32[2,96], index: 4, kind: input, shape index: {}]   ;;  %s7473_s5 = inlined_call_operand.vmem [shape: f32[32,32], index: 5, kind: input, shape index: {}]   ;;  %s7474_s6 = inlined_call_operand.vmem [shape: f32[2,32,32], index: 6, kind: input, shape index: {}]   ;;  %s7475_s7 = inlined_call_operand.vmem [shape: f32[3,32], index: 7, kind: input, shape index: {}]   ;;  %s7476_s9 = inlined_call_operand.vmem [shape: f32[8,8], index: 9, kind: input, shape index: {}]   ;;  %s7477_s8 = inlined_call_operand.vmem [shape: f32[8,8], index: 8, kind: input, shape index: {}]   ;;  %s7478_s12 = inlined_call_operand.vmem [shape: f32[8,8,8], index: 12, kind: output, shape index: {0}]   ;;  %s7479_s10 = inlined_call_operand.vmem [shape: f32[1,32], index: 10, kind: input, shape index: {}]   ;;  %s7480_s11 = inlined_call_operand.<no memory space> [shape: f32[1,1], index: 11, kind: input, shape index: {}]   ;;  %s7481_s13 = inlined_call_operand.vmem [shape: f32[8,8,1], index: 13, kind: output, shape index: {1}]  }
   0x1   :  { %6452 = vset.pattern.permute.xlu0 %v6576_v0  ;;  %v74_v1 = vld [vmem:[%s7468_s0] sm:$0xff]  ;;  %6252 = vmatprep.subr.bf16.mxu1 %v6577_v2  ;;  %v49_v4 = vld [vmem:[%s7469_s3 + $0x8] sm:$0xff]  ;;  %v50_v6 = vld [vmem:[%s7469_s3 + $0x10] sm:$0xff]  ;;  %vm94_vm1 = vcmask 64512   ;;  %vm172_vm2 = vcmask 261120   ;;  %s6582_s22 = smov 112  }
   0x2   :  { %v48_v3 = vld [vmem:[%s7469_s3] sm:$0xff]  ;;  %77 = vperm.xlu0 %6452, %v74_v1   ;;  %v51_v7 = vld [vmem:[%s7469_s3 + $0x18] sm:$0xff]  ;;  %5753 = vmatprep.mubr.msk.f32.mxu1 %vm6578_vm0, %v6579_v8  ;;  %v55_v34 = vld [vmem:[%s7473_s5 + $0x8] sm:$0xff]  ;;  %vm510_vm3 = vcmask 130048   ;;  %s6583_s15 = smov 32   ;;  %vm772_vm4 = vcmask 7168  }
   0x3   :  { %v6664_v5 = vpack.c.bf16 %v49_v4, %v48_v3  ;;  %5740 = vmatprep.subr.mxu0 %v6579_v8  ;;  %5742 = vmatprep.mubr.msk.f32.mxu0 %vm6578_vm0, %v6579_v8  ;;  %v6678_v9 = vpack.c.bf16 %v51_v7, %v50_v6  ;;  %v6683_v10 = vld [vmem:[%s7470_s2] sm:$0xff]  ;;  %v56_v35 = vld [vmem:[%s7473_s5 + $0x10] sm:$0xff]  ;;  %v57_v37 = vld [vmem:[%s7473_s5 + $0x18] sm:$0xff] }
   0x4   :  { %6453 = vset.pattern.permute.xlu1 %v6576_v0  ;;  %5741 = vmatpush3.msra.mxu0 %v6683_v10  ;;  %v6696_v11 = vld [vmem:[%s7471_s1] ss:$0 sm:$0xff]  ;;  %v6701_v12 = vld [vmem:[%s7471_s1 + $0x1] ss:$0 sm:$0xff]  ;;  %v6737_v38 = vpack.c.bf16 %v57_v37, %v56_v35  ;;  %v59_v41 = vld [vmem:[%s7474_s6 + $0x8] sm:$0xff] }
   0x5   :  { %6254 = vmatpush3.bf16.msra.mxu1 %v6664_v5  ;;  %6258 = vmatprep.subr.bf16.mxu0 %v6577_v2  ;;  %v6711_v16 = vld [vmem:[%s7472_s4 + $0x1] ss:$0 sm:$0xff]  ;;  %v6718_v20 = vld [vmem:[%s7472_s4] ss:$0 sm:$0xff]  ;;  %v60_v49 = vld [vmem:[%s7474_s6 + $0x10] sm:$0xff] }
   0x6   :  { %6255 = vmatprep.subr.bf16.mxu1 %v6577_v2  ;;  %v54_v33 = vld [vmem:[%s7473_s5] sm:$0xff]  ;;  %v61_v50 = vld [vmem:[%s7474_s6 + $0x18] sm:$0xff]  ;;  %v5396_v53 = vld [vmem:[%s7474_s6 + $0x28] sm:$0xff] }
   0x7   :  { %v6731_v36 = vpack.c.bf16 %v55_v34, %v54_v33  ;;  %v58_v40 = vld [vmem:[%s7474_s6] sm:$0xff]  ;;  %v6763_v51 = vpack.c.bf16 %v61_v50, %v60_v49  ;;  %v5397_v60 = vld [vmem:[%s7474_s6 + $0x30] sm:$0xff]  ;;  %v5398_v61 = vld [vmem:[%s7474_s6 + $0x38] sm:$0xff] }
   0x8   :  { %v6749_v42 = vpack.c.bf16 %v59_v41, %v58_v40  ;;  %v5395_v52 = vld [vmem:[%s7474_s6 + $0x20] sm:$0xff]  ;;  %v6792_v62 = vpack.c.bf16 %v5398_v61, %v5397_v60 }
   0x9   :  { %6257 = vmatpush3.bf16.msra.mxu1 %v6678_v9  ;;  %v6773_v54 = vpack.c.bf16 %v5396_v53, %v5395_v52  ;;  %v6780_v55 = vld [vmem:[%s7475_s7] ss:$0 sm:$0xff]  ;;  %v6799_v63 = vld [vmem:[%s7475_s7 + $0x1] ss:$0 sm:$0xff]  ;;  %v6808_v6 = vld [vmem:[%s7475_s7 + $0x2] ss:$0 sm:$0xff] }
   0xa   :  { %6264 = vmatprep.subr.bf16.mxu1 %v6577_v2  ;;  %v6845_v35 = vld [vmem:[%s7477_s8] sm:$0xff] }
   0xc   :  { %5754 = vmatmul.mubr.f32.vlgmr.msra.gmra.mrb[0].mxu1 %v6579_v8 }
   0xd   :  { %5775 = vmatprep.mubr.msk.f32.mxu1 %vm6578_vm0, %v6579_v8  ;;  %6266 = vmatpush3.bf16.msra.mxu1 %v6749_v42 }
   0xe   :  { %6267 = vmatprep.subr.bf16.mxu1 %v6577_v2 }
  0x11   :  { %6269 = vmatpush3.bf16.msra.mxu1 %v6763_v51 }
  0x12   :  { %5789 = vmatprep.subr.mxu1 %v6579_v8 }
  0x81   :  { %v78_v13 = vpop.permute.xlu0 %77 }
  0x82   :  { %v84_v14 = vmul.f32 %v6696_v11, %v78_v13 }
  0x84   :  { %v89_v15 = vadd.f32 %v6701_v12, %v84_v14 }
  0x86   :  { %5743 = vmatmul.mubr.msk.f32.vlgmr.msra.gmra.mrb[0].mxu0 %vm94_vm1, %v89_v15 }
  0x87   :  { %5764 = vmatprep.mubr.msk.f32.mxu0 %vm6578_vm0, %v6579_v8  ;;  %6260 = vmatpush3.bf16.msra.mxu0 %v6731_v36 }
  0x88   :  { %6261 = vmatprep.subr.bf16.mxu0 %v6577_v2 }
  0x8b   :  { %6263 = vmatpush3.bf16.msra.mxu0 %v6737_v38 }
  0x8c   :  { %6270 = vmatprep.subr.bf16.mxu0 %v6577_v2 }
  0xdf   :  { %v242_v17 = vpop.f32.mrb[0].mxu1 }
  0xe0   :  { %v243_v18 = vadd.f32 %v6711_v16, %v242_v17  ;;  %v5755_v19 = vpop.f32.mrb[1].mxu1  ;;  %v6821_v17 = vld [vmem:[%s7476_s9] sm:$0xff] }
  0xe2   :  { %254 = vrot.lane.b32.xlu0 %v243_v18, %s6580_s25 }
 0x154   :  { %v255_v28 = vpop.permute.xlu0 %254 }
 0x159   :  { %v164_v21 = vpop.f32.mrb[0].mxu0 }
 0x15a   :  { %v165_v22 = vadd.f32 %v6718_v20, %v164_v21  ;;  %v5744_v23 = vpop.f32.mrb[1].mxu0 }
 0x15c   :  { %v246_v24 = vadd.f32 %v243_v18, %v165_v22 }
 0x15e   :  { %v5404_v25 = vmul.f32 -1.442695, %v246_v24 }
 0x160   :  { %6454 = vpow2.f32 %v5404_v25 }
 0x16a   :  { %v6455_v26 = vpop.eup %6454 }
 0x16b   :  { %v250_v27 = vadd.f32 1.0, %v6455_v26 }
 0x16d   :  { %6456 = vrcp.f32 %v250_v27 }
 0x177   :  { %v6457_v29 = vpop.eup %6456 }
 0x178   :  { %v257_v30 = vmul.f32 %v6457_v29, %v255_v28  ;;  %v264_v43 = vsub.f32 1.0, %v6457_v29  ;;  %v270_v45 = vmul.f32 0.0, %v6457_v29  ;;  %v5418_v28 = vld [vmem:[%s7468_s0 + $0x8] sm:$0xff] }
 0x17a   :  { %259 = vrot.lane.b32.xlu1 %v257_v30, %s6580_s25 }
 0x1ec   :  { %v260_v31 = vpop.permute.xlu1 %259 }
 0x1ed   :  { %v262_v32 = vadd.f32 %v260_v31, %v165_v22 }
 0x1ef   :  { %6458 = vtanh.f32 %v262_v32 }
 0x1f9   :  { %v6459_v39 = vpop.eup %6458 }
 0x1fa   :  { %266 = vrot.lane.b32.xlu1 %v6459_v39, %s6581_s19 }
 0x26c   :  { %v267_v44 = vpop.permute.xlu1 %266 }
 0x26d   :  { %v269_v46 = vmul.f32 %v267_v44, %v264_v43 }
 0x26f   :  { %v271_v47 = vadd.f32 %v270_v45, %v269_v46 }
 0x271   :  { %277 = vrot.lane.b32.xlu0 %v271_v47, %s6581_s19 }
 0x2e3   :  { %v278_v48 = vpop.permute.xlu0 %277 }
 0x2e4   :  { %5765 = vmatmul.mubr.msk.f32.vlgmr.msra.gmra.mrb[2].mxu0 %vm172_vm2, %v278_v48 }
 0x2e5   :  { %5786 = vmatprep.mubr.msk.f32.mxu0 %vm6578_vm0, %v6579_v8  ;;  %6272 = vmatpush3.bf16.msra.mxu0 %v6773_v54 }
 0x2e6   :  { %6273 = vmatprep.subr.bf16.mxu0 %v6577_v2 }
 0x2e9   :  { %6275 = vmatpush3.bf16.msra.mxu0 %v6792_v62 }
 0x2ea   :  { %5794 = vmatprep.subr.mxu0 %v6579_v8 }
 0x3b7   :  { %v347_v56 = vpop.f32.mrb[2].mxu0 }
 0x3b8   :  { %v348_v57 = vadd.f32 %v6780_v55, %v347_v56  ;;  %v5766_v58 = vpop.f32.mrb[3].mxu0 }
 0x3ba   :  { %v351_v59 = vmax.f32 %v348_v57, 0.0 }
 0x3bc   :  { %5776 = vmatmul.mubr.msk.f32.vlgmr.msra.gmra.mrb[2].mxu1 %vm172_vm2, %v351_v59 }
 0x3bd   :  { %5791 = vmatprep.mubr.msk.f32.mxu1 %vm6578_vm0, %v6579_v8 }
 0x48f   :  { %v425_v0 = vpop.f32.mrb[2].mxu1 }
 0x490   :  { %v426_v1 = vadd.f32 %v6799_v63, %v425_v0  ;;  %v5777_v3 = vpop.f32.mrb[3].mxu1 }
 0x492   :  { %v429_v4 = vmax.f32 %v426_v1, 0.0 }
 0x494   :  { %5787 = vmatmul.mubr.msk.f32.vlgmr.msra.gmra.mrb[4].mxu0 %vm172_vm2, %v429_v4 }
 0x495   :  { %5796 = vmatprep.mubr.msk.f32.mxu0 %vm6578_vm0, %v6579_v8 }
 0x567   :  { %v503_v7 = vpop.f32.mrb[4].mxu0 }
 0x568   :  { %v504_v13 = vadd.f32 %v6808_v6, %v503_v7  ;;  %v5788_v14 = vpop.f32.mrb[5].mxu0 }
 0x56a   :  { %508 = vrot.lane.b32.xlu1 %v504_v13, %s6582_s22 }
 0x5dc   :  { %v509_v15 = vpop.permute.xlu1 %508 }
 0x5dd   :  { %5790 = vmatpush3.xpose.msk.msra.mxu1 %vm510_vm3, %v509_v15 }
 0x5de   :  { %5799 = vmatprep.subr.mxu1 %v6579_v8 }
 0x5e0   :  { %5792 = vmatmul.mubr.msk.f32.vlgmr.msra.gmra.mrb[4].mxu1 %vm510_vm3, %v504_v13 }
 0x5e1   :  { %5800 = vmatpush3.msra.mxu1 %v278_v48  ;;  %5801 = vmatprep.mubr.msk.f32.mxu1 %vm6578_vm0, %v6579_v8 }
 0x5e2   :  { %6276 = vmatprep.subr.bf16.mxu1 %v6577_v2 }
 0x6b3   :  { %v581_v18 = vpop.f32.mrb[4].mxu1 }
 0x6b4   :  { %v585_v19 = vmul.f32 %v581_v18, %v6821_v17  ;;  %v5793_v21 = vpop.f32.mrb[5].mxu1 }
 0x6b6   :  { %v586_v22 = vmul.f32 %v585_v19, %v585_v19 }
 0x6b8   :  { %v587_v23 = vsel %vm94_vm1, %v586_v22, 0.0 }
 0x6b9   :  { %588 = vadd.xlane.f32.xlu0 %v587_v23 }
 0x746   :  { %v589_v24 = vpop.xlane.xlu0 %588 }
 0x747   :  { %5795 = vmatpush3.msra.mxu0 %v589_v24 }
 0x748   :  { %5797 = vmatmul.mubr.msk.f32.vlgmr.msra.gmra.mrb[6].mxu0 %vm94_vm1, %v6821_v17  ;;  %5804 = vmatprep.subr.mxu0 %v6579_v8 }
 0x749   :  { %5805 = vmatpush3.msra.mxu0 %v6683_v10  ;;  %5806 = vmatprep.mubr.msk.f32.mxu0 %vm6578_vm0, %v6579_v8 }
 0x74a   :  { %6282 = vmatprep.subr.bf16.mxu0 %v6577_v2 }
 0x81b   :  { %v659_v25 = vpop.f32.mrb[6].mxu0 }
 0x81c   :  { %6460 = vrsqrt.f32 %v659_v25  ;;  %v5798_v26 = vpop.f32.mrb[7].mxu0 }
 0x826   :  { %v6461_v27 = vpop.eup %6460 }
 0x827   :  { %666 = vperm.xlu1 %6453, %v6461_v27  }
 0x82b   :  { %778 = vperm.xlu1 %6453, %v5418_v28  }
 0x8a6   :  { %v667_v29 = vpop.permute.xlu1 %666 }
 0x8a7   :  { %v669_v30 = vmul.f32 %v667_v29, %v585_v19 }
 0x8a9   :  { %6462 = vtanh.f32 %v669_v30 }
 0x8aa   :  { %v779_v31 = vpop.permute.xlu1 %778 }
 0x8ab   :  { %v781_v32 = vmul.f32 %v6696_v11, %v779_v31 }
 0x8ad   :  { %v782_v33 = vadd.f32 %v6701_v12, %v781_v32 }
 0x8af   :  { %5807 = vmatmul.mubr.msk.f32.vlgmr.msra.gmra.mrb[8].mxu0 %vm94_vm1, %v782_v33 }
 0x8b0   :  { %6284 = vmatpush3.bf16.msra.mxu0 %v6731_v36  ;;  %5828 = vmatprep.mubr.msk.f32.mxu0 %vm6578_vm0, %v6579_v8 }
 0x8b1   :  { %6285 = vmatprep.subr.bf16.mxu0 %v6577_v2 }
 0x8b3   :  { %v6463_v34 = vpop.eup %6462 }
 0x8b4   :  { %v671_v37 = vand.u32 2147483647, %v6463_v34  ;;  %6287 = vmatpush3.bf16.msra.mxu0 %v6737_v38 }
 0x8b5   :  { %6294 = vmatprep.subr.bf16.mxu0 %v6577_v2 }
 0x8b6   :  { %v672_v39 = vadd.f32 %v671_v37, %v6845_v35 }
 0x8b8   :  { %v5414_v40 = vmul.f32 -1.442695, %v672_v39 }
 0x8ba   :  { %6464 = vpow2.f32 %v5414_v40 }
 0x8c4   :  { %v6465_v41 = vpop.eup %6464 }
 0x8c5   :  { %v676_v43 = vadd.f32 1.0, %v6465_v41 }
 0x8c7   :  { %6466 = vrcp.f32 %v676_v43 }
 0x8d1   :  { %v6467_v44 = vpop.eup %6466 }
 0x8d2   :  { %v679_v45 = vmul.f32 %v6467_v44, %v6463_v34  ;;  %v5432_v44 = vld [vmem:[%s7468_s0 + $0x10] sm:$0xff] }
 0x8d4   :  { %5802 = vmatmul.mubr.msk.f32.vlgmr.msra.gmra.mrb[6].mxu1 %vm94_vm1, %v679_v45  ;;  %754 = vst.msk [vmem:[%s7478_s12] sm:$0xff] %vm94_vm1, %v679_v45 }
 0x8d5   :  { %6278 = vmatpush3.bf16.msra.mxu1 %v6664_v5  ;;  %5817 = vmatprep.mubr.msk.f32.mxu1 %vm6578_vm0, %v6579_v8 }
 0x8d6   :  { %6279 = vmatprep.subr.bf16.mxu1 %v6577_v2 }
 0x8d9   :  { %6281 = vmatpush3.bf16.msra.mxu1 %v6678_v9 }
 0x8da   :  { %6288 = vmatprep.subr.bf16.mxu1 %v6577_v2 }
 0x982   :  { %v852_v46 = vpop.f32.mrb[8].mxu0 }
 0x983   :  { %v5808_v47 = vpop.f32.mrb[9].mxu0  ;;  %v853_v56 = vadd.f32 %v6718_v20, %v852_v46 }
 0x9a7   :  { %v6861_v48 = vpop.f32.mrb[6].mxu1 }
 0x9a8   :  { %v5803_v49 = vpop.f32.mrb[7].mxu1  ;;  %5818 = vmatmul.mubr.msk.f32.vlgmr.msra.gmra.mrb[8].mxu1 %vm172_vm2, %v6861_v48 }
 0x9a9   :  { %6290 = vmatpush3.bf16.msra.mxu1 %v6749_v42  ;;  %5839 = vmatprep.mubr.msk.f32.mxu1 %vm6578_vm0, %v6579_v8 }
 0x9aa   :  { %6291 = vmatprep.subr.bf16.mxu1 %v6577_v2 }
 0x9ad   :  { %6293 = vmatpush3.bf16.msra.mxu1 %v6763_v51 }
 0x9ae   :  { %5853 = vmatprep.subr.mxu1 %v6579_v8 }
 0xa7b   :  { %v925_v50 = vpop.f32.mrb[8].mxu1 }
 0xa7c   :  { %v926_v52 = vadd.f32 %v6711_v16, %v925_v50  ;;  %v5819_v53 = vpop.f32.mrb[9].mxu1 }
 0xa7e   :  { %937 = vrot.lane.b32.xlu1 %v926_v52, %s6580_s25  ;;  %v929_v57 = vadd.f32 %v926_v52, %v853_v56 }
 0xa80   :  { %v5421_v58 = vmul.f32 -1.442695, %v929_v57 }
 0xa82   :  { %6468 = vpow2.f32 %v5421_v58 }
 0xa8c   :  { %v6469_v59 = vpop.eup %6468 }
 0xa8d   :  { %v933_v60 = vadd.f32 1.0, %v6469_v59 }
 0xa8f   :  { %6470 = vrcp.f32 %v933_v60 }
 0xa99   :  { %v6471_v61 = vpop.eup %6470 }
 0xa9a   :  { %v947_v14 = vsub.f32 1.0, %v6471_v61 }
 0xaf0   :  { %v938_v0 = vpop.permute.xlu1 %937 }
 0xaf1   :  { %v940_v1 = vmul.f32 %v6471_v61, %v938_v0 }
 0xaf3   :  { %942 = vrot.lane.b32.xlu1 %v940_v1, %s6580_s25 }
 0xb65   :  { %v943_v3 = vpop.permute.xlu1 %942 }
 0xb66   :  { %v945_v4 = vadd.f32 %v943_v3, %v853_v56 }
 0xb68   :  { %6472 = vtanh.f32 %v945_v4 }
 0xb72   :  { %v6473_v7 = vpop.eup %6472 }
 0xb73   :  { %949 = vrot.lane.b32.xlu1 %v6473_v7, %s6581_s19 }
 0xb77   :  { %953 = vrot.lane.b32.xlu1 %v6861_v48, %s6583_s15 }
 0xbe5   :  { %v950_v13 = vpop.permute.xlu1 %949 }
 0xbe6   :  { %v952_v18 = vmul.f32 %v950_v13, %v947_v14 }
 0xbe9   :  { %v954_v15 = vpop.permute.xlu1 %953 }
 0xbea   :  { %v956_v19 = vmul.f32 %v6471_v61, %v954_v15 }
 0xbec   :  { %v957_v21 = vadd.f32 %v956_v19, %v952_v18 }
 0xbee   :  { %959 = vrot.lane.b32.xlu1 %v957_v21, %s6581_s19 }
 0xc60   :  { %v960_v22 = vpop.permute.xlu1 %959 }
 0xc61   :  { %5829 = vmatmul.mubr.msk.f32.vlgmr.msra.gmra.mrb[10].mxu0 %vm172_vm2, %v960_v22 }
 0xc62   :  { %6296 = vmatpush3.bf16.msra.mxu0 %v6773_v54  ;;  %5850 = vmatprep.mubr.msk.f32.mxu0 %vm6578_vm0, %v6579_v8 }
 0xc63   :  { %6297 = vmatprep.subr.bf16.mxu0 %v6577_v2 }
 0xc66   :  { %6299 = vmatpush3.bf16.msra.mxu0 %v6792_v62 }
 0xc67   :  { %5858 = vmatprep.subr.mxu0 %v6579_v8 }
 0xd34   :  { %v1029_v23 = vpop.f32.mrb[10].mxu0 }
 0xd35   :  { %v1030_v24 = vadd.f32 %v6780_v55, %v1029_v23  ;;  %v5830_v25 = vpop.f32.mrb[11].mxu0 }
 0xd37   :  { %v1033_v26 = vmax.f32 %v1030_v24, 0.0 }
 0xd39   :  { %5840 = vmatmul.mubr.msk.f32.vlgmr.msra.gmra.mrb[10].mxu1 %vm172_vm2, %v1033_v26 }
 0xd3a   :  { %5855 = vmatprep.mubr.msk.f32.mxu1 %vm6578_vm0, %v6579_v8 }
 0xe0c   :  { %v1103_v27 = vpop.f32.mrb[10].mxu1 }
 0xe0d   :  { %v1104_v28 = vadd.f32 %v6799_v63, %v1103_v27  ;;  %v5841_v29 = vpop.f32.mrb[11].mxu1 }
 0xe0f   :  { %v1107_v30 = vmax.f32 %v1104_v28, 0.0 }
 0xe11   :  { %5851 = vmatmul.mubr.msk.f32.vlgmr.msra.gmra.mrb[12].mxu0 %vm172_vm2, %v1107_v30 }
 0xe12   :  { %5860 = vmatprep.mubr.msk.f32.mxu0 %vm6578_vm0, %v6579_v8 }
 0xee4   :  { %v1177_v31 = vpop.f32.mrb[12].mxu0 }
 0xee5   :  { %v1178_v32 = vadd.f32 %v6808_v6, %v1177_v31  ;;  %v5852_v33 = vpop.f32.mrb[13].mxu0 }
 0xee7   :  { %1182 = vrot.lane.b32.xlu1 %v1178_v32, %s6582_s22 }
 0xf59   :  { %v1183_v34 = vpop.permute.xlu1 %1182 }
 0xf5a   :  { %5854 = vmatpush3.xpose.msk.msra.mxu1 %vm510_vm3, %v1183_v34 }
 0xf5b   :  { %5863 = vmatprep.subr.mxu1 %v6579_v8 }
 0xf5d   :  { %5856 = vmatmul.mubr.msk.f32.vlgmr.msra.gmra.mrb[12].mxu1 %vm510_vm3, %v1178_v32 }
 0xf5e   :  { %5864 = vmatpush3.msra.mxu1 %v960_v22  ;;  %5865 = vmatprep.mubr.msk.f32.mxu1 %vm6578_vm0, %v6579_v8 }
 0xf5f   :  { %6300 = vmatprep.subr.bf16.mxu1 %v6577_v2 }
0x1030   :  { %v1254_v37 = vpop.f32.mrb[12].mxu1 }
0x1031   :  { %v1258_v39 = vmul.f32 %v1254_v37, %v6821_v17  ;;  %v5857_v40 = vpop.f32.mrb[13].mxu1 }
0x1033   :  { %v1259_v41 = vmul.f32 %v1258_v39, %v1258_v39 }
0x1035   :  { %v1260_v43 = vsel %vm94_vm1, %v1259_v41, 0.0 }
0x1036   :  { %1261 = vadd.xlane.f32.xlu0 %v1260_v43 }
0x104c   :  { %1437 = vperm.xlu0 %6452, %v5432_v44  }
0x10c3   :  { %v1262_v45 = vpop.xlane.xlu0 %1261 }
0x10c4   :  { %5859 = vmatpush3.msra.mxu0 %v1262_v45 }
0x10c5   :  { %5861 = vmatmul.mubr.msk.f32.vlgmr.msra.gmra.mrb[14].mxu0 %vm94_vm1, %v6821_v17  ;;  %5868 = vmatprep.subr.mxu0 %v6579_v8 }
0x10c6   :  { %5869 = vmatpush3.msra.mxu0 %v6683_v10  ;;  %5870 = vmatprep.mubr.msk.f32.mxu0 %vm6578_vm0, %v6579_v8 }
0x10c7   :  { %6306 = vmatprep.subr.bf16.mxu0 %v6577_v2 }
0x10cb   :  { %v1438_v46 = vpop.permute.xlu0 %1437 }
0x10cc   :  { %v1440_v47 = vmul.f32 %v6696_v11, %v1438_v46 }
0x10ce   :  { %v1441_v49 = vadd.f32 %v6701_v12, %v1440_v47 }
0x10d0   :  { %5871 = vmatmul.mubr.msk.f32.vlgmr.msra.gmra.mrb[16].mxu0 %vm94_vm1, %v1441_v49 }
0x10d1   :  { %6308 = vmatpush3.bf16.msra.mxu0 %v6731_v36  ;;  %5892 = vmatprep.mubr.msk.f32.mxu0 %vm6578_vm0, %v6579_v8 }
0x10d2   :  { %6309 = vmatprep.subr.bf16.mxu0 %v6577_v2 }
0x10d5   :  { %6311 = vmatpush3.bf16.msra.mxu0 %v6737_v38 }
0x10d6   :  { %6318 = vmatprep.subr.bf16.mxu0 %v6577_v2 }
0x1198   :  { %v1329_v50 = vpop.f32.mrb[14].mxu0 }
0x1199   :  { %6474 = vrsqrt.f32 %v1329_v50  ;;  %v5862_v52 = vpop.f32.mrb[15].mxu0 }
0x11a3   :  { %v6475_v53 = vpop.eup %6474  ;;  %v1511_v56 = vpop.f32.mrb[16].mxu0 }
0x11a4   :  { %1336 = vperm.xlu1 %6453, %v6475_v53   ;;  %v5872_v57 = vpop.f32.mrb[17].mxu0  ;;  %v1512_v22 = vadd.f32 %v6718_v20, %v1511_v56 }
0x1223   :  { %v1337_v58 = vpop.permute.xlu1 %1336 }
0x1224   :  { %v1339_v59 = vmul.f32 %v1337_v58, %v1258_v39 }
0x1226   :  { %6476 = vtanh.f32 %v1339_v59 }
0x1230   :  { %v6477_v60 = vpop.eup %6476 }
0x1231   :  { %v1341_v61 = vand.u32 2147483647, %v6477_v60 }
0x1233   :  { %v1342_v0 = vadd.f32 %v1341_v61, %v6845_v35 }
0x1235   :  { %v5428_v1 = vmul.f32 -1.442695, %v1342_v0 }
0x1237   :  { %6478 = vpow2.f32 %v5428_v1 }
0x1241   :  { %v6479_v3 = vpop.eup %6478 }
0x1242   :  { %v1346_v4 = vadd.f32 1.0, %v6479_v3 }
0x1244   :  { %6480 = vrcp.f32 %v1346_v4 }
0x124e   :  { %v6481_v7 = vpop.eup %6480 }
0x124f   :  { %v1349_v13 = vmul.f32 %v6481_v7, %v6477_v60 }
0x1251   :  { %5866 = vmatmul.mubr.msk.f32.vlgmr.msra.gmra.mrb[14].mxu1 %vm94_vm1, %v1349_v13  ;;  %5430 = vst.msk [vmem:[%s7478_s12 + $0x8] sm:$0xff] %vm94_vm1, %v1349_v13 }
0x1252   :  { %6302 = vmatpush3.bf16.msra.mxu1 %v6664_v5  ;;  %5881 = vmatprep.mubr.msk.f32.mxu1 %vm6578_vm0, %v6579_v8 }
0x1253   :  { %6303 = vmatprep.subr.bf16.mxu1 %v6577_v2 }
0x1256   :  { %6305 = vmatpush3.bf16.msra.mxu1 %v6678_v9 }
0x1257   :  { %6312 = vmatprep.subr.bf16.mxu1 %v6577_v2 }
0x1324   :  { %v6935_v14 = vpop.f32.mrb[14].mxu1 }
0x1325   :  { %v5867_v15 = vpop.f32.mrb[15].mxu1  ;;  %5882 = vmatmul.mubr.msk.f32.vlgmr.msra.gmra.mrb[16].mxu1 %vm172_vm2, %v6935_v14 }
0x1326   :  { %6314 = vmatpush3.bf16.msra.mxu1 %v6749_v42  ;;  %5903 = vmatprep.mubr.msk.f32.mxu1 %vm6578_vm0, %v6579_v8 }
0x1327   :  { %6315 = vmatprep.subr.bf16.mxu1 %v6577_v2 }
0x132a   :  { %6317 = vmatpush3.bf16.msra.mxu1 %v6763_v51 }
0x132b   :  { %5917 = vmatprep.subr.mxu1 %v6579_v8 }
0x13f8   :  { %v1584_v18 = vpop.f32.mrb[16].mxu1 }
0x13f9   :  { %v1585_v19 = vadd.f32 %v6711_v16, %v1584_v18  ;;  %v5883_v21 = vpop.f32.mrb[17].mxu1  ;;  %v5446_v18 = vld [vmem:[%s7468_s0 + $0x18] sm:$0xff] }
0x13fb   :  { %1596 = vrot.lane.b32.xlu1 %v1585_v19, %s6580_s25  ;;  %v1588_v23 = vadd.f32 %v1585_v19, %v1512_v22 }
0x13fd   :  { %v5435_v24 = vmul.f32 -1.442695, %v1588_v23 }
0x13ff   :  { %6482 = vpow2.f32 %v5435_v24 }
0x1409   :  { %v6483_v25 = vpop.eup %6482 }
0x140a   :  { %v1592_v26 = vadd.f32 1.0, %v6483_v25 }
0x140c   :  { %6484 = vrcp.f32 %v1592_v26 }
0x1416   :  { %v6485_v27 = vpop.eup %6484 }
0x1417   :  { %v1606_v34 = vsub.f32 1.0, %v6485_v27 }
0x146d   :  { %v1597_v28 = vpop.permute.xlu1 %1596 }
0x146e   :  { %v1599_v29 = vmul.f32 %v6485_v27, %v1597_v28 }
0x1470   :  { %1601 = vrot.lane.b32.xlu1 %v1599_v29, %s6580_s25 }
0x14e2   :  { %v1602_v30 = vpop.permute.xlu1 %1601 }
0x14e3   :  { %v1604_v31 = vadd.f32 %v1602_v30, %v1512_v22 }
0x14e5   :  { %6486 = vtanh.f32 %v1604_v31 }
0x14ef   :  { %v6487_v32 = vpop.eup %6486 }
0x14f0   :  { %1608 = vrot.lane.b32.xlu1 %v6487_v32, %s6581_s19 }
0x14f4   :  { %1612 = vrot.lane.b32.xlu1 %v6935_v14, %s6583_s15 }
0x1562   :  { %v1609_v33 = vpop.permute.xlu1 %1608 }
0x1563   :  { %v1611_v39 = vmul.f32 %v1609_v33, %v1606_v34 }
0x1566   :  { %v1613_v37 = vpop.permute.xlu1 %1612 }
0x1567   :  { %v1615_v40 = vmul.f32 %v6485_v27, %v1613_v37 }
0x1569   :  { %v1616_v41 = vadd.f32 %v1615_v40, %v1611_v39 }
0x156b   :  { %1618 = vrot.lane.b32.xlu1 %v1616_v41, %s6581_s19 }
0x15dd   :  { %v1619_v43 = vpop.permute.xlu1 %1618 }
0x15de   :  { %5893 = vmatmul.mubr.msk.f32.vlgmr.msra.gmra.mrb[18].mxu0 %vm172_vm2, %v1619_v43 }
0x15df   :  { %6320 = vmatpush3.bf16.msra.mxu0 %v6773_v54  ;;  %5914 = vmatprep.mubr.msk.f32.mxu0 %vm6578_vm0, %v6579_v8 }
0x15e0   :  { %6321 = vmatprep.subr.bf16.mxu0 %v6577_v2 }
0x15e3   :  { %6323 = vmatpush3.bf16.msra.mxu0 %v6792_v62 }
0x15e4   :  { %5922 = vmatprep.subr.mxu0 %v6579_v8 }
0x16b1   :  { %v1688_v44 = vpop.f32.mrb[18].mxu0 }
0x16b2   :  { %v1689_v45 = vadd.f32 %v6780_v55, %v1688_v44  ;;  %v5894_v46 = vpop.f32.mrb[19].mxu0 }
0x16b4   :  { %v1692_v47 = vmax.f32 %v1689_v45, 0.0 }
0x16b6   :  { %5904 = vmatmul.mubr.msk.f32.vlgmr.msra.gmra.mrb[18].mxu1 %vm172_vm2, %v1692_v47 }
0x16b7   :  { %5919 = vmatprep.mubr.msk.f32.mxu1 %vm6578_vm0, %v6579_v8 }
0x1789   :  { %v1762_v49 = vpop.f32.mrb[18].mxu1 }
0x178a   :  { %v1763_v50 = vadd.f32 %v6799_v63, %v1762_v49  ;;  %v5905_v52 = vpop.f32.mrb[19].mxu1 }
0x178c   :  { %v1766_v53 = vmax.f32 %v1763_v50, 0.0 }
0x178e   :  { %5915 = vmatmul.mubr.msk.f32.vlgmr.msra.gmra.mrb[20].mxu0 %vm172_vm2, %v1766_v53 }
0x178f   :  { %5924 = vmatprep.mubr.msk.f32.mxu0 %vm6578_vm0, %v6579_v8 }
0x1861   :  { %v1836_v56 = vpop.f32.mrb[20].mxu0 }
0x1862   :  { %v1837_v57 = vadd.f32 %v6808_v6, %v1836_v56  ;;  %v5916_v58 = vpop.f32.mrb[21].mxu0 }
0x1864   :  { %1841 = vrot.lane.b32.xlu1 %v1837_v57, %s6582_s22 }
0x18d6   :  { %v1842_v59 = vpop.permute.xlu1 %1841 }
0x18d7   :  { %5918 = vmatpush3.xpose.msk.msra.mxu1 %vm510_vm3, %v1842_v59 }
0x18d8   :  { %5927 = vmatprep.subr.mxu1 %v6579_v8 }
0x18da   :  { %5920 = vmatmul.mubr.msk.f32.vlgmr.msra.gmra.mrb[20].mxu1 %vm510_vm3, %v1837_v57 }
0x18db   :  { %5928 = vmatpush3.msra.mxu1 %v1619_v43  ;;  %5929 = vmatprep.mubr.msk.f32.mxu1 %vm6578_vm0, %v6579_v8 }
0x18dc   :  { %6324 = vmatprep.subr.bf16.mxu1 %v6577_v2 }
0x19ad   :  { %v1913_v60 = vpop.f32.mrb[20].mxu1 }
0x19ae   :  { %v1917_v61 = vmul.f32 %v1913_v60, %v6821_v17  ;;  %v5921_v0 = vpop.f32.mrb[21].mxu1 }
0x19b0   :  { %v1918_v1 = vmul.f32 %v1917_v61, %v1917_v61 }
0x19b2   :  { %v1919_v3 = vsel %vm94_vm1, %v1918_v1, 0.0 }
0x19b3   :  { %1920 = vadd.xlane.f32.xlu0 %v1919_v3 }
0x1a40   :  { %v1921_v4 = vpop.xlane.xlu0 %1920 }
0x1a41   :  { %5923 = vmatpush3.msra.mxu0 %v1921_v4 }
0x1a42   :  { %5925 = vmatmul.mubr.msk.f32.vlgmr.msra.gmra.mrb[22].mxu0 %vm94_vm1, %v6821_v17  ;;  %5932 = vmatprep.subr.mxu0 %v6579_v8 }
0x1a43   :  { %5933 = vmatpush3.msra.mxu0 %v6683_v10  ;;  %5934 = vmatprep.mubr.msk.f32.mxu0 %vm6578_vm0, %v6579_v8 }
0x1a44   :  { %6330 = vmatprep.subr.bf16.mxu0 %v6577_v2 }
0x1b15   :  { %v1988_v7 = vpop.f32.mrb[22].mxu0 }
0x1b16   :  { %6488 = vrsqrt.f32 %v1988_v7  ;;  %v5926_v13 = vpop.f32.mrb[23].mxu0 }
0x1b20   :  { %v6489_v15 = vpop.eup %6488 }
0x1b21   :  { %1995 = vperm.xlu1 %6453, %v6489_v15  }
0x1b25   :  { %2096 = vperm.xlu1 %6453, %v5446_v18  }
0x1ba0   :  { %v1996_v19 = vpop.permute.xlu1 %1995 }
0x1ba1   :  { %v1998_v21 = vmul.f32 %v1996_v19, %v1917_v61 }
0x1ba3   :  { %6490 = vtanh.f32 %v1998_v21 }
0x1ba4   :  { %v2097_v22 = vpop.permute.xlu1 %2096 }
0x1ba5   :  { %v2099_v23 = vmul.f32 %v6696_v11, %v2097_v22 }
0x1ba7   :  { %v2100_v24 = vadd.f32 %v6701_v12, %v2099_v23 }
0x1ba9   :  { %5935 = vmatmul.mubr.msk.f32.vlgmr.msra.gmra.mrb[24].mxu0 %vm94_vm1, %v2100_v24 }
0x1baa   :  { %6332 = vmatpush3.bf16.msra.mxu0 %v6731_v36  ;;  %5956 = vmatprep.mubr.msk.f32.mxu0 %vm6578_vm0, %v6579_v8 }
0x1bab   :  { %6333 = vmatprep.subr.bf16.mxu0 %v6577_v2 }
0x1bad   :  { %v6491_v25 = vpop.eup %6490 }
0x1bae   :  { %v2000_v26 = vand.u32 2147483647, %v6491_v25  ;;  %6335 = vmatpush3.bf16.msra.mxu0 %v6737_v38 }
0x1baf   :  { %6342 = vmatprep.subr.bf16.mxu0 %v6577_v2 }
0x1bb0   :  { %v2001_v27 = vadd.f32 %v2000_v26, %v6845_v35 }
0x1bb2   :  { %v5442_v28 = vmul.f32 -1.442695, %v2001_v27 }
0x1bb4   :  { %6492 = vpow2.f32 %v5442_v28 }
0x1bbe   :  { %v6493_v29 = vpop.eup %6492 }
0x1bbf   :  { %v2005_v30 = vadd.f32 1.0, %v6493_v29 }
0x1bc1   :  { %6494 = vrcp.f32 %v2005_v30 }
0x1bcb   :  { %v6495_v31 = vpop.eup %6494 }
0x1bcc   :  { %v2008_v32 = vmul.f32 %v6495_v31, %v6491_v25 }
0x1bce   :  { %5930 = vmatmul.mubr.msk.f32.vlgmr.msra.gmra.mrb[22].mxu1 %vm94_vm1, %v2008_v32  ;;  %5444 = vst.msk [vmem:[%s7478_s12 + $0x10] sm:$0xff] %vm94_vm1, %v2008_v32 }
0x1bcf   :  { %6326 = vmatpush3.bf16.msra.mxu1 %v6664_v5  ;;  %5945 = vmatprep.mubr.msk.f32.mxu1 %vm6578_vm0, %v6579_v8 }
0x1bd0   :  { %6327 = vmatprep.subr.bf16.mxu1 %v6577_v2 }
0x1bd3   :  { %6329 = vmatpush3.bf16.msra.mxu1 %v6678_v9 }
0x1bd4   :  { %6336 = vmatprep.subr.bf16.mxu1 %v6577_v2 }
0x1c7c   :  { %v2170_v33 = vpop.f32.mrb[24].mxu0 }
0x1c7d   :  { %v5936_v34 = vpop.f32.mrb[25].mxu0  ;;  %v2171_v44 = vadd.f32 %v6718_v20, %v2170_v33 }
0x1ca1   :  { %v7009_v37 = vpop.f32.mrb[22].mxu1 }
0x1ca2   :  { %v5931_v39 = vpop.f32.mrb[23].mxu1  ;;  %5946 = vmatmul.mubr.msk.f32.vlgmr.msra.gmra.mrb[24].mxu1 %vm172_vm2, %v7009_v37 }
0x1ca3   :  { %6338 = vmatpush3.bf16.msra.mxu1 %v6749_v42  ;;  %5967 = vmatprep.mubr.msk.f32.mxu1 %vm6578_vm0, %v6579_v8 }
0x1ca4   :  { %6339 = vmatprep.subr.bf16.mxu1 %v6577_v2 }
0x1ca7   :  { %6341 = vmatpush3.bf16.msra.mxu1 %v6763_v51 }
0x1ca8   :  { %5981 = vmatprep.subr.mxu1 %v6579_v8 }
0x1d75   :  { %v2243_v40 = vpop.f32.mrb[24].mxu1 }
0x1d76   :  { %v2244_v41 = vadd.f32 %v6711_v16, %v2243_v40  ;;  %v5947_v43 = vpop.f32.mrb[25].mxu1  ;;  %v5460_v40 = vld [vmem:[%s7468_s0 + $0x20] sm:$0xff] }
0x1d78   :  { %2255 = vrot.lane.b32.xlu1 %v2244_v41, %s6580_s25  ;;  %v2247_v45 = vadd.f32 %v2244_v41, %v2171_v44 }
0x1d7a   :  { %v5449_v46 = vmul.f32 -1.442695, %v2247_v45 }
0x1d7c   :  { %6496 = vpow2.f32 %v5449_v46 }
0x1d86   :  { %v6497_v47 = vpop.eup %6496 }
0x1d87   :  { %v2251_v49 = vadd.f32 1.0, %v6497_v47 }
0x1d89   :  { %6498 = vrcp.f32 %v2251_v49 }
0x1d93   :  { %v6499_v50 = vpop.eup %6498 }
0x1d94   :  { %v2265_v59 = vsub.f32 1.0, %v6499_v50 }
0x1dea   :  { %v2256_v52 = vpop.permute.xlu1 %2255 }
0x1deb   :  { %v2258_v53 = vmul.f32 %v6499_v50, %v2256_v52 }
0x1ded   :  { %2260 = vrot.lane.b32.xlu1 %v2258_v53, %s6580_s25 }
0x1e5f   :  { %v2261_v56 = vpop.permute.xlu1 %2260 }
0x1e60   :  { %v2263_v57 = vadd.f32 %v2261_v56, %v2171_v44 }
0x1e62   :  { %6500 = vtanh.f32 %v2263_v57 }
0x1e6c   :  { %v6501_v16 = vpop.eup %6500 }
0x1e6d   :  { %2267 = vrot.lane.b32.xlu1 %v6501_v16, %s6581_s19 }
0x1e71   :  { %2271 = vrot.lane.b32.xlu1 %v7009_v37, %s6583_s15 }
0x1edf   :  { %v2268_v58 = vpop.permute.xlu1 %2267 }
0x1ee0   :  { %v2270_v61 = vmul.f32 %v2268_v58, %v2265_v59 }
0x1ee3   :  { %v2272_v60 = vpop.permute.xlu1 %2271 }
0x1ee4   :  { %v2274_v0 = vmul.f32 %v6499_v50, %v2272_v60  ;;  %v7096_v60 = vld [vmem:[%s7472_s4 + $0x1] ss:$0 sm:$0xff] }
0x1ee6   :  { %v2275_v1 = vadd.f32 %v2274_v0, %v2270_v61 }
0x1ee8   :  { %2277 = vrot.lane.b32.xlu1 %v2275_v1, %s6581_s19 }
0x1f5a   :  { %v2278_v3 = vpop.permute.xlu1 %2277 }
0x1f5b   :  { %5957 = vmatmul.mubr.msk.f32.vlgmr.msra.gmra.mrb[26].mxu0 %vm172_vm2, %v2278_v3 }
0x1f5c   :  { %6344 = vmatpush3.bf16.msra.mxu0 %v6773_v54  ;;  %5978 = vmatprep.mubr.msk.f32.mxu0 %vm6578_vm0, %v6579_v8 }
0x1f5d   :  { %6345 = vmatprep.subr.bf16.mxu0 %v6577_v2 }
0x1f60   :  { %6347 = vmatpush3.bf16.msra.mxu0 %v6792_v62 }
0x1f61   :  { %5986 = vmatprep.subr.mxu0 %v6579_v8 }
0x202e   :  { %v2347_v4 = vpop.f32.mrb[26].mxu0 }
0x202f   :  { %v2348_v7 = vadd.f32 %v6780_v55, %v2347_v4  ;;  %v5958_v13 = vpop.f32.mrb[27].mxu0 }
0x2031   :  { %v2351_v15 = vmax.f32 %v2348_v7, 0.0 }
0x2033   :  { %5968 = vmatmul.mubr.msk.f32.vlgmr.msra.gmra.mrb[26].mxu1 %vm172_vm2, %v2351_v15 }
0x2034   :  { %5983 = vmatprep.mubr.msk.f32.mxu1 %vm6578_vm0, %v6579_v8 }
0x2106   :  { %v2421_v18 = vpop.f32.mrb[26].mxu1 }
0x2107   :  { %v2422_v19 = vadd.f32 %v6799_v63, %v2421_v18  ;;  %v5969_v21 = vpop.f32.mrb[27].mxu1 }
0x2109   :  { %v2425_v22 = vmax.f32 %v2422_v19, 0.0 }
0x210b   :  { %5979 = vmatmul.mubr.msk.f32.vlgmr.msra.gmra.mrb[28].mxu0 %vm172_vm2, %v2425_v22 }
0x210c   :  { %5988 = vmatprep.mubr.msk.f32.mxu0 %vm6578_vm0, %v6579_v8 }
0x21de   :  { %v2495_v23 = vpop.f32.mrb[28].mxu0 }
0x21df   :  { %v2496_v24 = vadd.f32 %v6808_v6, %v2495_v23  ;;  %v5980_v25 = vpop.f32.mrb[29].mxu0 }
0x21e1   :  { %2500 = vrot.lane.b32.xlu0 %v2496_v24, %s6582_s22 }
0x2253   :  { %v2501_v26 = vpop.permute.xlu0 %2500 }
0x2254   :  { %5982 = vmatpush3.xpose.msk.msra.mxu1 %vm510_vm3, %v2501_v26 }
0x2255   :  { %5991 = vmatprep.subr.mxu1 %v6579_v8 }
0x2257   :  { %5984 = vmatmul.mubr.msk.f32.vlgmr.msra.gmra.mrb[28].mxu1 %vm510_vm3, %v2496_v24 }
0x2258   :  { %5992 = vmatpush3.msra.mxu1 %v2278_v3  ;;  %5993 = vmatprep.mubr.msk.f32.mxu1 %vm6578_vm0, %v6579_v8 }
0x2259   :  { %6348 = vmatprep.subr.bf16.mxu1 %v6577_v2 }
0x232a   :  { %v2572_v27 = vpop.f32.mrb[28].mxu1 }
0x232b   :  { %v2576_v28 = vmul.f32 %v2572_v27, %v6821_v17  ;;  %v5985_v29 = vpop.f32.mrb[29].mxu1 }
0x232d   :  { %v2577_v30 = vmul.f32 %v2576_v28, %v2576_v28 }
0x232f   :  { %v2578_v31 = vsel %vm94_vm1, %v2577_v30, 0.0 }
0x2330   :  { %2579 = vadd.xlane.f32.xlu1 %v2578_v31 }
0x23bd   :  { %v2580_v32 = vpop.xlane.xlu1 %2579 }
0x23be   :  { %5987 = vmatpush3.msra.mxu0 %v2580_v32 }
0x23bf   :  { %5989 = vmatmul.mubr.msk.f32.vlgmr.msra.gmra.mrb[30].mxu0 %vm94_vm1, %v6821_v17  ;;  %5996 = vmatprep.subr.mxu0 %v6579_v8 }
0x23c0   :  { %5997 = vmatpush3.msra.mxu0 %v6683_v10  ;;  %5998 = vmatprep.mubr.msk.f32.mxu0 %vm6578_vm0, %v6579_v8 }
0x23c1   :  { %6354 = vmatprep.subr.bf16.mxu0 %v6577_v2 }
0x2492   :  { %v2647_v33 = vpop.f32.mrb[30].mxu0 }
0x2493   :  { %6502 = vrsqrt.f32 %v2647_v33  ;;  %v5990_v34 = vpop.f32.mrb[31].mxu0 }
0x249d   :  { %v6503_v39 = vpop.eup %6502 }
0x249e   :  { %2654 = vperm.xlu0 %6452, %v6503_v39  }
0x24a2   :  { %2755 = vperm.xlu0 %6452, %v5460_v40  }
0x251d   :  { %v2655_v41 = vpop.permute.xlu0 %2654 }
0x251e   :  { %v2657_v43 = vmul.f32 %v2655_v41, %v2576_v28 }
0x2520   :  { %6504 = vtanh.f32 %v2657_v43 }
0x2521   :  { %v2756_v44 = vpop.permute.xlu0 %2755 }
0x2522   :  { %v2758_v10 = vmul.f32 %v6696_v11, %v2756_v44 }
0x2524   :  { %v2759_v45 = vadd.f32 %v6701_v12, %v2758_v10 }
0x2526   :  { %5999 = vmatmul.mubr.msk.f32.vlgmr.msra.gmra.mrb[32].mxu0 %vm94_vm1, %v2759_v45 }
0x2527   :  { %6356 = vmatpush3.bf16.msra.mxu0 %v6731_v36  ;;  %6020 = vmatprep.mubr.msk.f32.mxu0 %vm6578_vm0, %v6579_v8 }
0x2528   :  { %6357 = vmatprep.subr.bf16.mxu0 %v6577_v2 }
0x252a   :  { %v6505_v46 = vpop.eup %6504 }
0x252b   :  { %v2659_v47 = vand.u32 2147483647, %v6505_v46  ;;  %6359 = vmatpush3.bf16.msra.mxu0 %v6737_v38 }
0x252c   :  { %6366 = vmatprep.subr.bf16.mxu0 %v6577_v2 }
0x252d   :  { %v2660_v49 = vadd.f32 %v2659_v47, %v6845_v35 }
0x252f   :  { %v5456_v11 = vmul.f32 -1.442695, %v2660_v49 }
0x2531   :  { %6506 = vpow2.f32 %v5456_v11  ;;  %v7137_v11 = vld [vmem:[%s7470_s2] sm:$0xff] }
0x253b   :  { %v6507_v12 = vpop.eup %6506 }
0x253c   :  { %v2664_v50 = vadd.f32 1.0, %v6507_v12 }
0x253e   :  { %6508 = vrcp.f32 %v2664_v50 }
0x2548   :  { %v6509_v52 = vpop.eup %6508 }
0x2549   :  { %v2667_v53 = vmul.f32 %v6509_v52, %v6505_v46 }
0x254b   :  { %5994 = vmatmul.mubr.msk.f32.vlgmr.msra.gmra.mrb[30].mxu1 %vm94_vm1, %v2667_v53  ;;  %5458 = vst.msk [vmem:[%s7478_s12 + $0x18] sm:$0xff] %vm94_vm1, %v2667_v53 }
0x254c   :  { %6350 = vmatpush3.bf16.msra.mxu1 %v6664_v5  ;;  %6009 = vmatprep.mubr.msk.f32.mxu1 %vm6578_vm0, %v6579_v8 }
0x254d   :  { %6351 = vmatprep.subr.bf16.mxu1 %v6577_v2 }
0x2550   :  { %6353 = vmatpush3.bf16.msra.mxu1 %v6678_v9 }
0x2551   :  { %6360 = vmatprep.subr.bf16.mxu1 %v6577_v2 }
0x25f9   :  { %v2829_v56 = vpop.f32.mrb[32].mxu0 }
0x25fa   :  { %v6000_v57 = vpop.f32.mrb[33].mxu0  ;;  %v2830_v1 = vadd.f32 %v6718_v20, %v2829_v56 }
0x261e   :  { %v7083_v16 = vpop.f32.mrb[30].mxu1 }
0x261f   :  { %v5995_v58 = vpop.f32.mrb[31].mxu1  ;;  %6010 = vmatmul.mubr.msk.f32.vlgmr.msra.gmra.mrb[32].mxu1 %vm172_vm2, %v7083_v16 }
0x2620   :  { %6362 = vmatpush3.bf16.msra.mxu1 %v6749_v42  ;;  %6031 = vmatprep.mubr.msk.f32.mxu1 %vm6578_vm0, %v6579_v8  ;;  %v7149_v58 = vld [vmem:[%s7471_s1] ss:$0 sm:$0xff] }
0x2621   :  { %6363 = vmatprep.subr.bf16.mxu1 %v6577_v2 }
0x2624   :  { %6365 = vmatpush3.bf16.msra.mxu1 %v6763_v51 }
0x2625   :  { %6045 = vmatprep.subr.mxu1 %v6579_v8 }
0x26f2   :  { %v2902_v59 = vpop.f32.mrb[32].mxu1 }
0x26f3   :  { %v2903_v61 = vadd.f32 %v7096_v60, %v2902_v59  ;;  %v6011_v0 = vpop.f32.mrb[33].mxu1 }
0x26f5   :  { %2914 = vrot.lane.b32.xlu0 %v2903_v61, %s6580_s25  ;;  %v2906_v3 = vadd.f32 %v2903_v61, %v2830_v1  ;;  %v7155_v61 = vld [vmem:[%s7471_s1 + $0x1] ss:$0 sm:$0xff] }
0x26f7   :  { %v5463_v4 = vmul.f32 -1.442695, %v2906_v3 }
0x26f9   :  { %6510 = vpow2.f32 %v5463_v4 }
0x2703   :  { %v6511_v7 = vpop.eup %6510 }
0x2704   :  { %v2910_v13 = vadd.f32 1.0, %v6511_v7 }
0x2706   :  { %6512 = vrcp.f32 %v2910_v13 }
0x2710   :  { %v6513_v15 = vpop.eup %6512 }
0x2711   :  { %v2924_v24 = vsub.f32 1.0, %v6513_v15 }
0x2767   :  { %v2915_v18 = vpop.permute.xlu0 %2914 }
0x2768   :  { %v2917_v19 = vmul.f32 %v6513_v15, %v2915_v18 }
0x276a   :  { %2919 = vrot.lane.b32.xlu0 %v2917_v19, %s6580_s25 }
0x276e   :  { %2930 = vrot.lane.b32.xlu0 %v7083_v16, %s6583_s15 }
0x27dc   :  { %v2920_v21 = vpop.permute.xlu0 %2919 }
0x27dd   :  { %v2922_v22 = vadd.f32 %v2920_v21, %v2830_v1 }
0x27df   :  { %6514 = vtanh.f32 %v2922_v22 }
0x27e0   :  { %v2931_v20 = vpop.permute.xlu0 %2930 }
0x27e1   :  { %v2933_v26 = vmul.f32 %v6513_v15, %v2931_v20 }
0x27e9   :  { %v6515_v23 = vpop.eup %6514 }
0x27ea   :  { %2926 = vrot.lane.b32.xlu1 %v6515_v23, %s6581_s19 }
0x285c   :  { %v2927_v25 = vpop.permute.xlu1 %2926 }
0x285d   :  { %v2929_v27 = vmul.f32 %v2927_v25, %v2924_v24 }
0x285f   :  { %v2934_v28 = vadd.f32 %v2933_v26, %v2929_v27  ;;  %v7192_v26 = vld [vmem:[%s7472_s4] ss:$0 sm:$0xff] }
0x2861   :  { %2936 = vrot.lane.b32.xlu0 %v2934_v28, %s6581_s19 }
0x28d3   :  { %v2937_v29 = vpop.permute.xlu0 %2936 }
0x28d4   :  { %6021 = vmatmul.mubr.msk.f32.vlgmr.msra.gmra.mrb[34].mxu0 %vm172_vm2, %v2937_v29 }
0x28d5   :  { %6368 = vmatpush3.bf16.msra.mxu0 %v6773_v54  ;;  %6042 = vmatprep.mubr.msk.f32.mxu0 %vm6578_vm0, %v6579_v8 }
0x28d6   :  { %6369 = vmatprep.subr.bf16.mxu0 %v6577_v2 }
0x28d9   :  { %6371 = vmatpush3.bf16.msra.mxu0 %v6792_v62 }
0x28da   :  { %6050 = vmatprep.subr.mxu0 %v6579_v8 }
0x29a7   :  { %v3006_v30 = vpop.f32.mrb[34].mxu0 }
0x29a8   :  { %v3007_v31 = vadd.f32 %v6780_v55, %v3006_v30  ;;  %v6022_v32 = vpop.f32.mrb[35].mxu0 }
0x29aa   :  { %v3010_v33 = vmax.f32 %v3007_v31, 0.0 }
0x29ac   :  { %6032 = vmatmul.mubr.msk.f32.vlgmr.msra.gmra.mrb[34].mxu1 %vm172_vm2, %v3010_v33 }
0x29ad   :  { %6047 = vmatprep.mubr.msk.f32.mxu1 %vm6578_vm0, %v6579_v8 }
0x2a7f   :  { %v3080_v34 = vpop.f32.mrb[34].mxu1 }
0x2a80   :  { %v3081_v39 = vadd.f32 %v6799_v63, %v3080_v34  ;;  %v6033_v40 = vpop.f32.mrb[35].mxu1 }
0x2a82   :  { %v3084_v41 = vmax.f32 %v3081_v39, 0.0 }
0x2a84   :  { %6043 = vmatmul.mubr.msk.f32.vlgmr.msra.gmra.mrb[36].mxu0 %vm172_vm2, %v3084_v41 }
0x2a85   :  { %6052 = vmatprep.mubr.msk.f32.mxu0 %vm6578_vm0, %v6579_v8 }
0x2b57   :  { %v3154_v43 = vpop.f32.mrb[36].mxu0 }
0x2b58   :  { %v3155_v55 = vadd.f32 %v6808_v6, %v3154_v43  ;;  %v6044_v44 = vpop.f32.mrb[37].mxu0 }
0x2b5a   :  { %3159 = vrot.lane.b32.xlu0 %v3155_v55, %s6582_s22 }
0x2bcc   :  { %v3160_v10 = vpop.permute.xlu0 %3159 }
0x2bcd   :  { %6046 = vmatpush3.xpose.msk.msra.mxu1 %vm510_vm3, %v3160_v10 }
0x2bce   :  { %6055 = vmatprep.subr.mxu1 %v6579_v8 }
0x2bd0   :  { %6048 = vmatmul.mubr.msk.f32.vlgmr.msra.gmra.mrb[36].mxu1 %vm510_vm3, %v3155_v55 }
0x2bd1   :  { %6056 = vmatpush3.msra.mxu1 %v2937_v29  ;;  %6057 = vmatprep.mubr.msk.f32.mxu1 %vm6578_vm0, %v6579_v8 }
0x2bd2   :  { %6372 = vmatprep.subr.bf16.mxu1 %v6577_v2 }
0x2ca3   :  { %v3231_v63 = vpop.f32.mrb[36].mxu1 }
0x2ca4   :  { %v3235_v45 = vmul.f32 %v3231_v63, %v6821_v17  ;;  %v6049_v6 = vpop.f32.mrb[37].mxu1 }
0x2ca6   :  { %v3236_v46 = vmul.f32 %v3235_v45, %v3235_v45 }
0x2ca8   :  { %v3237_v47 = vsel %vm94_vm1, %v3236_v46, 0.0 }
0x2ca9   :  { %3238 = vadd.xlane.f32.xlu0 %v3237_v47  ;;  %v7210_v47 = vld [vmem:[%s7475_s7] ss:$0 sm:$0xff] }
0x2d36   :  { %v3239_v49 = vpop.xlane.xlu0 %3238 }
0x2d37   :  { %6051 = vmatpush3.msra.mxu0 %v3239_v49 }
0x2d38   :  { %6053 = vmatmul.mubr.msk.f32.vlgmr.msra.gmra.mrb[38].mxu0 %vm94_vm1, %v6821_v17  ;;  %6060 = vmatprep.subr.mxu0 %v6579_v8  ;;  %v5474_v17 = vld [vmem:[%s7468_s0 + $0x28] sm:$0xff] }
0x2d39   :  { %6061 = vmatpush3.msra.mxu0 %v7137_v11  ;;  %6062 = vmatprep.mubr.msk.f32.mxu0 %vm6578_vm0, %v6579_v8 }
0x2d3a   :  { %6378 = vmatprep.subr.bf16.mxu0 %v6577_v2 }
0x2e0b   :  { %v3306_v12 = vpop.f32.mrb[38].mxu0 }
0x2e0c   :  { %6516 = vrsqrt.f32 %v3306_v12  ;;  %v6054_v50 = vpop.f32.mrb[39].mxu0 }
0x2e16   :  { %v6517_v52 = vpop.eup %6516 }
0x2e17   :  { %3313 = vperm.xlu1 %6453, %v6517_v52  }
0x2e1b   :  { %3414 = vperm.xlu1 %6453, %v5474_v17   ;;  %v7219_v17 = vld [vmem:[%s7475_s7 + $0x1] ss:$0 sm:$0xff] }
0x2e96   :  { %v3314_v53 = vpop.permute.xlu1 %3313 }
0x2e97   :  { %v3316_v56 = vmul.f32 %v3314_v53, %v3235_v45 }
0x2e99   :  { %6518 = vtanh.f32 %v3316_v56 }
0x2e9a   :  { %v3415_v57 = vpop.permute.xlu1 %3414 }
0x2e9b   :  { %v3417_v59 = vmul.f32 %v7149_v58, %v3415_v57 }
0x2e9d   :  { %v3418_v0 = vadd.f32 %v7155_v61, %v3417_v59 }
0x2e9f   :  { %6063 = vmatmul.mubr.msk.f32.vlgmr.msra.gmra.mrb[40].mxu0 %vm94_vm1, %v3418_v0  ;;  %v7228_v0 = vld [vmem:[%s7475_s7 + $0x2] ss:$0 sm:$0xff] }
0x2ea0   :  { %6380 = vmatpush3.bf16.msra.mxu0 %v6731_v36  ;;  %6084 = vmatprep.mubr.msk.f32.mxu0 %vm6578_vm0, %v6579_v8 }
0x2ea1   :  { %6381 = vmatprep.subr.bf16.mxu0 %v6577_v2 }
0x2ea3   :  { %v6519_v1 = vpop.eup %6518 }
0x2ea4   :  { %v3318_v3 = vand.u32 2147483647, %v6519_v1  ;;  %6383 = vmatpush3.bf16.msra.mxu0 %v6737_v38 }
0x2ea5   :  { %6390 = vmatprep.subr.bf16.mxu0 %v6577_v2 }
0x2ea6   :  { %v3319_v4 = vadd.f32 %v3318_v3, %v6845_v35 }
0x2ea8   :  { %v5470_v7 = vmul.f32 -1.442695, %v3319_v4 }
0x2eaa   :  { %6520 = vpow2.f32 %v5470_v7 }
0x2eb4   :  { %v6521_v13 = vpop.eup %6520 }
0x2eb5   :  { %v3323_v15 = vadd.f32 1.0, %v6521_v13  ;;  %v7241_v13 = vld [vmem:[%s7476_s9] sm:$0xff] }
0x2eb7   :  { %6522 = vrcp.f32 %v3323_v15 }
0x2ec1   :  { %v6523_v18 = vpop.eup %6522 }
0x2ec2   :  { %v3326_v19 = vmul.f32 %v6523_v18, %v6519_v1 }
0x2ec4   :  { %6058 = vmatmul.mubr.msk.f32.vlgmr.msra.gmra.mrb[38].mxu1 %vm94_vm1, %v3326_v19  ;;  %5472 = vst.msk [vmem:[%s7478_s12 + $0x20] sm:$0xff] %vm94_vm1, %v3326_v19 }
0x2ec5   :  { %6374 = vmatpush3.bf16.msra.mxu1 %v6664_v5  ;;  %6073 = vmatprep.mubr.msk.f32.mxu1 %vm6578_vm0, %v6579_v8 }
0x2ec6   :  { %6375 = vmatprep.subr.bf16.mxu1 %v6577_v2 }
0x2ec9   :  { %6377 = vmatpush3.bf16.msra.mxu1 %v6678_v9 }
0x2eca   :  { %6384 = vmatprep.subr.bf16.mxu1 %v6577_v2 }
0x2f72   :  { %v3488_v35 = vpop.f32.mrb[40].mxu0 }
0x2f73   :  { %v6064_v21 = vpop.f32.mrb[41].mxu0  ;;  %v3489_v27 = vadd.f32 %v7192_v26, %v3488_v35 }
0x2f97   :  { %v7177_v22 = vpop.f32.mrb[38].mxu1 }
0x2f98   :  { %v6059_v23 = vpop.f32.mrb[39].mxu1  ;;  %6074 = vmatmul.mubr.msk.f32.vlgmr.msra.gmra.mrb[40].mxu1 %vm172_vm2, %v7177_v22 }
0x2f99   :  { %6386 = vmatpush3.bf16.msra.mxu1 %v6749_v42  ;;  %6095 = vmatprep.mubr.msk.f32.mxu1 %vm6578_vm0, %v6579_v8 }
0x2f9a   :  { %6387 = vmatprep.subr.bf16.mxu1 %v6577_v2 }
0x2f9d   :  { %6389 = vmatpush3.bf16.msra.mxu1 %v6763_v51 }
0x2f9e   :  { %6109 = vmatprep.subr.mxu1 %v6579_v8 }
0x306b   :  { %v3561_v20 = vpop.f32.mrb[40].mxu1 }
0x306c   :  { %v3562_v24 = vadd.f32 %v7096_v60, %v3561_v20  ;;  %v6075_v25 = vpop.f32.mrb[41].mxu1 }
0x306d   :  { %v5488_v25 = vld [vmem:[%s7468_s0 + $0x30] sm:$0xff] }
0x306e   :  { %3573 = vrot.lane.b32.xlu1 %v3562_v24, %s6580_s25  ;;  %v3565_v28 = vadd.f32 %v3562_v24, %v3489_v27 }
0x3070   :  { %v5477_v29 = vmul.f32 -1.442695, %v3565_v28 }
0x3072   :  { %6524 = vpow2.f32 %v5477_v29 }
0x307c   :  { %v6525_v30 = vpop.eup %6524 }
0x307d   :  { %v3569_v31 = vadd.f32 1.0, %v6525_v30 }
0x307f   :  { %6526 = vrcp.f32 %v3569_v31 }
0x3089   :  { %v6527_v32 = vpop.eup %6526 }
0x308a   :  { %v3583_v55 = vsub.f32 1.0, %v6527_v32 }
0x30e0   :  { %v3574_v33 = vpop.permute.xlu1 %3573 }
0x30e1   :  { %v3576_v34 = vmul.f32 %v6527_v32, %v3574_v33 }
0x30e3   :  { %3578 = vrot.lane.b32.xlu1 %v3576_v34, %s6580_s25  ;;  %v7267_v34 = vld [vmem:[%s7477_s8] sm:$0xff] }
0x3155   :  { %v3579_v39 = vpop.permute.xlu1 %3578 }
0x3156   :  { %v3581_v40 = vadd.f32 %v3579_v39, %v3489_v27 }
0x3158   :  { %6528 = vtanh.f32 %v3581_v40 }
0x3162   :  { %v6529_v41 = vpop.eup %6528 }
0x3163   :  { %3585 = vrot.lane.b32.xlu1 %v6529_v41, %s6581_s19 }
0x3167   :  { %3589 = vrot.lane.b32.xlu1 %v7177_v22, %s6583_s15 }
0x31d5   :  { %v3586_v43 = vpop.permute.xlu1 %3585 }
0x31d6   :  { %v3588_v10 = vmul.f32 %v3586_v43, %v3583_v55 }
0x31d9   :  { %v3590_v44 = vpop.permute.xlu1 %3589 }
0x31da   :  { %v3592_v63 = vmul.f32 %v6527_v32, %v3590_v44 }
0x31dc   :  { %v3593_v45 = vadd.f32 %v3592_v63, %v3588_v10 }
0x31de   :  { %3595 = vrot.lane.b32.xlu1 %v3593_v45, %s6581_s19 }
0x3250   :  { %v3596_v6 = vpop.permute.xlu1 %3595 }
0x3251   :  { %6085 = vmatmul.mubr.msk.f32.vlgmr.msra.gmra.mrb[42].mxu0 %vm172_vm2, %v3596_v6 }
0x3252   :  { %6392 = vmatpush3.bf16.msra.mxu0 %v6773_v54  ;;  %6106 = vmatprep.mubr.msk.f32.mxu0 %vm6578_vm0, %v6579_v8 }
0x3253   :  { %6393 = vmatprep.subr.bf16.mxu0 %v6577_v2 }
0x3256   :  { %6395 = vmatpush3.bf16.msra.mxu0 %v6792_v62 }
0x3257   :  { %6114 = vmatprep.subr.mxu0 %v6579_v8 }
0x3324   :  { %v3665_v46 = vpop.f32.mrb[42].mxu0 }
0x3325   :  { %v3666_v49 = vadd.f32 %v7210_v47, %v3665_v46  ;;  %v6086_v12 = vpop.f32.mrb[43].mxu0 }
0x3327   :  { %v3669_v50 = vmax.f32 %v3666_v49, 0.0 }
0x3329   :  { %6096 = vmatmul.mubr.msk.f32.vlgmr.msra.gmra.mrb[42].mxu1 %vm172_vm2, %v3669_v50 }
0x332a   :  { %6111 = vmatprep.mubr.msk.f32.mxu1 %vm6578_vm0, %v6579_v8 }
0x33fc   :  { %v3739_v52 = vpop.f32.mrb[42].mxu1 }
0x33fd   :  { %v3740_v53 = vadd.f32 %v7219_v17, %v3739_v52  ;;  %v6097_v56 = vpop.f32.mrb[43].mxu1 }
0x33ff   :  { %v3743_v57 = vmax.f32 %v3740_v53, 0.0 }
0x3401   :  { %6107 = vmatmul.mubr.msk.f32.vlgmr.msra.gmra.mrb[44].mxu0 %vm172_vm2, %v3743_v57 }
0x3402   :  { %6116 = vmatprep.mubr.msk.f32.mxu0 %vm6578_vm0, %v6579_v8 }
0x34d4   :  { %v3813_v59 = vpop.f32.mrb[44].mxu0 }
0x34d5   :  { %v3814_v1 = vadd.f32 %v7228_v0, %v3813_v59  ;;  %v6108_v3 = vpop.f32.mrb[45].mxu0 }
0x34d7   :  { %3818 = vrot.lane.b32.xlu0 %v3814_v1, %s6582_s22 }
0x3549   :  { %v3819_v4 = vpop.permute.xlu0 %3818 }
0x354a   :  { %6110 = vmatpush3.xpose.msk.msra.mxu1 %vm510_vm3, %v3819_v4 }
0x354b   :  { %6119 = vmatprep.subr.mxu1 %v6579_v8 }
0x354d   :  { %6112 = vmatmul.mubr.msk.f32.vlgmr.msra.gmra.mrb[44].mxu1 %vm510_vm3, %v3814_v1 }
0x354e   :  { %6120 = vmatpush3.msra.mxu1 %v3596_v6  ;;  %6121 = vmatprep.mubr.msk.f32.mxu1 %vm6578_vm0, %v6579_v8 }
0x354f   :  { %6396 = vmatprep.subr.bf16.mxu1 %v6577_v2 }
0x3620   :  { %v3890_v7 = vpop.f32.mrb[44].mxu1 }
0x3621   :  { %v3894_v15 = vmul.f32 %v7241_v13, %v3890_v7  ;;  %v6113_v18 = vpop.f32.mrb[45].mxu1 }
0x3623   :  { %v3895_v19 = vmul.f32 %v3894_v15, %v3894_v15 }
0x3625   :  { %v3896_v35 = vsel %vm94_vm1, %v3895_v19, 0.0 }
0x3626   :  { %3897 = vadd.xlane.f32.xlu1 %v3896_v35 }
0x36b3   :  { %v3898_v21 = vpop.xlane.xlu1 %3897 }
0x36b4   :  { %6115 = vmatpush3.msra.mxu0 %v3898_v21 }
0x36b5   :  { %6117 = vmatmul.mubr.msk.f32.vlgmr.msra.gmra.mrb[46].mxu0 %vm94_vm1, %v7241_v13  ;;  %6124 = vmatprep.subr.mxu0 %v6579_v8 }
0x36b6   :  { %6125 = vmatpush3.msra.mxu0 %v7137_v11  ;;  %6126 = vmatprep.mubr.msk.f32.mxu0 %vm6578_vm0, %v6579_v8 }
0x36b7   :  { %6402 = vmatprep.subr.bf16.mxu0 %v6577_v2 }
0x3788   :  { %v3965_v23 = vpop.f32.mrb[46].mxu0 }
0x3789   :  { %6530 = vrsqrt.f32 %v3965_v23  ;;  %v6118_v20 = vpop.f32.mrb[47].mxu0 }
0x3793   :  { %v6531_v24 = vpop.eup %6530 }
0x3794   :  { %3972 = vperm.xlu0 %6452, %v6531_v24  }
0x3798   :  { %4073 = vperm.xlu0 %6452, %v5488_v25  }
0x3813   :  { %v3973_v27 = vpop.permute.xlu0 %3972 }
0x3814   :  { %v3975_v28 = vmul.f32 %v3973_v27, %v3894_v15 }
0x3816   :  { %6532 = vtanh.f32 %v3975_v28 }
0x3817   :  { %v4074_v29 = vpop.permute.xlu0 %4073 }
0x3818   :  { %v4076_v30 = vmul.f32 %v7149_v58, %v4074_v29 }
0x381a   :  { %v4077_v31 = vadd.f32 %v7155_v61, %v4076_v30 }
0x381c   :  { %6127 = vmatmul.mubr.msk.f32.vlgmr.msra.gmra.mrb[48].mxu0 %vm94_vm1, %v4077_v31 }
0x381d   :  { %6404 = vmatpush3.bf16.msra.mxu0 %v6731_v36  ;;  %6148 = vmatprep.mubr.msk.f32.mxu0 %vm6578_vm0, %v6579_v8 }
0x381e   :  { %6405 = vmatprep.subr.bf16.mxu0 %v6577_v2 }
0x3820   :  { %v6533_v32 = vpop.eup %6532 }
0x3821   :  { %v3977_v33 = vand.u32 2147483647, %v6533_v32  ;;  %6407 = vmatpush3.bf16.msra.mxu0 %v6737_v38 }
0x3822   :  { %6414 = vmatprep.subr.bf16.mxu0 %v6577_v2 }
0x3823   :  { %v3978_v39 = vadd.f32 %v7267_v34, %v3977_v33 }
0x3825   :  { %v5484_v40 = vmul.f32 -1.442695, %v3978_v39 }
0x3827   :  { %6534 = vpow2.f32 %v5484_v40 }
0x3831   :  { %v6535_v41 = vpop.eup %6534 }
0x3832   :  { %v3982_v43 = vadd.f32 1.0, %v6535_v41 }
0x3834   :  { %6536 = vrcp.f32 %v3982_v43 }
0x383e   :  { %v6537_v55 = vpop.eup %6536 }
0x383f   :  { %v3985_v44 = vmul.f32 %v6537_v55, %v6533_v32 }
0x3841   :  { %6122 = vmatmul.mubr.msk.f32.vlgmr.msra.gmra.mrb[46].mxu1 %vm94_vm1, %v3985_v44  ;;  %5486 = vst.msk [vmem:[%s7478_s12 + $0x28] sm:$0xff] %vm94_vm1, %v3985_v44 }
0x3842   :  { %6398 = vmatpush3.bf16.msra.mxu1 %v6664_v5  ;;  %6137 = vmatprep.mubr.msk.f32.mxu1 %vm6578_vm0, %v6579_v8 }
0x3843   :  { %6399 = vmatprep.subr.bf16.mxu1 %v6577_v2 }
0x3846   :  { %6401 = vmatpush3.bf16.msra.mxu1 %v6678_v9 }
0x3847   :  { %6408 = vmatprep.subr.bf16.mxu1 %v6577_v2 }
0x38ef   :  { %v4147_v10 = vpop.f32.mrb[48].mxu0 }
0x38f0   :  { %v6128_v63 = vpop.f32.mrb[49].mxu0  ;;  %v4148_v50 = vadd.f32 %v7192_v26, %v4147_v10 }
0x3914   :  { %v7281_v45 = vpop.f32.mrb[46].mxu1 }
0x3915   :  { %v6123_v6 = vpop.f32.mrb[47].mxu1  ;;  %6138 = vmatmul.mubr.msk.f32.vlgmr.msra.gmra.mrb[48].mxu1 %vm172_vm2, %v7281_v45 }
0x3916   :  { %6410 = vmatpush3.bf16.msra.mxu1 %v6749_v42  ;;  %6159 = vmatprep.mubr.msk.f32.mxu1 %vm6578_vm0, %v6579_v8 }
0x3917   :  { %6411 = vmatprep.subr.bf16.mxu1 %v6577_v2 }
0x391a   :  { %6413 = vmatpush3.bf16.msra.mxu1 %v6763_v51 }
0x391b   :  { %6173 = vmatprep.subr.mxu1 %v6579_v8 }
0x39e8   :  { %v4220_v46 = vpop.f32.mrb[48].mxu1 }
0x39e9   :  { %v4221_v49 = vadd.f32 %v7096_v60, %v4220_v46  ;;  %v6139_v12 = vpop.f32.mrb[49].mxu1 }
0x39eb   :  { %4232 = vrot.lane.b32.xlu0 %v4221_v49, %s6580_s25  ;;  %v4224_v52 = vadd.f32 %v4221_v49, %v4148_v50 }
0x39ed   :  { %v5491_v53 = vmul.f32 -1.442695, %v4224_v52  ;;  %v5502_v52 = vld [vmem:[%s7468_s0 + $0x38] sm:$0xff] }
0x39ef   :  { %6538 = vpow2.f32 %v5491_v53 }
0x39f9   :  { %v6539_v56 = vpop.eup %6538 }
0x39fa   :  { %v4228_v57 = vadd.f32 1.0, %v6539_v56 }
0x39fc   :  { %6540 = vrcp.f32 %v4228_v57 }
0x3a06   :  { %v6541_v59 = vpop.eup %6540 }
0x3a07   :  { %v4242_v19 = vsub.f32 1.0, %v6541_v59 }
0x3a5d   :  { %v4233_v1 = vpop.permute.xlu0 %4232 }
0x3a5e   :  { %v4235_v3 = vmul.f32 %v6541_v59, %v4233_v1 }
0x3a60   :  { %4237 = vrot.lane.b32.xlu0 %v4235_v3, %s6580_s25 }
0x3a64   :  { %4248 = vrot.lane.b32.xlu0 %v7281_v45, %s6583_s15 }
0x3ad2   :  { %v4238_v4 = vpop.permute.xlu0 %4237 }
0x3ad3   :  { %v4240_v7 = vadd.f32 %v4238_v4, %v4148_v50 }
0x3ad5   :  { %6542 = vtanh.f32 %v4240_v7 }
0x3ad6   :  { %v4249_v18 = vpop.permute.xlu0 %4248 }
0x3ad7   :  { %v4251_v21 = vmul.f32 %v6541_v59, %v4249_v18 }
0x3adf   :  { %v6543_v15 = vpop.eup %6542 }
0x3ae0   :  { %4244 = vrot.lane.b32.xlu1 %v6543_v15, %s6581_s19 }
0x3b52   :  { %v4245_v35 = vpop.permute.xlu1 %4244 }
0x3b53   :  { %v4247_v23 = vmul.f32 %v4245_v35, %v4242_v19 }
0x3b55   :  { %v4252_v20 = vadd.f32 %v4251_v21, %v4247_v23 }
0x3b57   :  { %4254 = vrot.lane.b32.xlu0 %v4252_v20, %s6581_s19 }
0x3bc9   :  { %v4255_v24 = vpop.permute.xlu0 %4254 }
0x3bca   :  { %6149 = vmatmul.mubr.msk.f32.vlgmr.msra.gmra.mrb[50].mxu0 %vm172_vm2, %v4255_v24 }
0x3bcb   :  { %6416 = vmatpush3.bf16.msra.mxu0 %v6773_v54  ;;  %6170 = vmatprep.mubr.msk.f32.mxu0 %vm6578_vm0, %v6579_v8 }
0x3bcc   :  { %6417 = vmatprep.subr.bf16.mxu0 %v6577_v2 }
0x3bcf   :  { %6419 = vmatpush3.bf16.msra.mxu0 %v6792_v62 }
0x3bd0   :  { %6178 = vmatprep.subr.mxu0 %v6579_v8 }
0x3c9d   :  { %v4324_v25 = vpop.f32.mrb[50].mxu0 }
0x3c9e   :  { %v4325_v27 = vadd.f32 %v7210_v47, %v4324_v25  ;;  %v6150_v28 = vpop.f32.mrb[51].mxu0 }
0x3ca0   :  { %v4328_v29 = vmax.f32 %v4325_v27, 0.0 }
0x3ca2   :  { %6160 = vmatmul.mubr.msk.f32.vlgmr.msra.gmra.mrb[50].mxu1 %vm172_vm2, %v4328_v29 }
0x3ca3   :  { %6175 = vmatprep.mubr.msk.f32.mxu1 %vm6578_vm0, %v6579_v8 }
0x3d75   :  { %v4398_v30 = vpop.f32.mrb[50].mxu1 }
0x3d76   :  { %v4399_v31 = vadd.f32 %v7219_v17, %v4398_v30  ;;  %v6161_v32 = vpop.f32.mrb[51].mxu1 }
0x3d78   :  { %v4402_v33 = vmax.f32 %v4399_v31, 0.0 }
0x3d7a   :  { %6171 = vmatmul.mubr.msk.f32.vlgmr.msra.gmra.mrb[52].mxu0 %vm172_vm2, %v4402_v33 }
0x3d7b   :  { %6180 = vmatprep.mubr.msk.f32.mxu0 %vm6578_vm0, %v6579_v8 }
0x3e4d   :  { %v4472_v39 = vpop.f32.mrb[52].mxu0 }
0x3e4e   :  { %v4473_v40 = vadd.f32 %v7228_v0, %v4472_v39  ;;  %v6172_v41 = vpop.f32.mrb[53].mxu0 }
0x3e50   :  { %4477 = vrot.lane.b32.xlu0 %v4473_v40, %s6582_s22 }
0x3ec2   :  { %v4478_v43 = vpop.permute.xlu0 %4477 }
0x3ec3   :  { %6174 = vmatpush3.xpose.msk.msra.mxu1 %vm510_vm3, %v4478_v43 }
0x3ec4   :  { %6183 = vmatprep.subr.mxu1 %v6579_v8 }
0x3ec6   :  { %6176 = vmatmul.mubr.msk.f32.vlgmr.msra.gmra.mrb[52].mxu1 %vm510_vm3, %v4473_v40 }
0x3ec7   :  { %6184 = vmatpush3.msra.mxu1 %v4255_v24  ;;  %6185 = vmatprep.mubr.msk.f32.mxu1 %vm6578_vm0, %v6579_v8 }
0x3ec8   :  { %6420 = vmatprep.subr.bf16.mxu1 %v6577_v2 }
0x3f99   :  { %v4549_v55 = vpop.f32.mrb[52].mxu1 }
0x3f9a   :  { %v4553_v44 = vmul.f32 %v7241_v13, %v4549_v55  ;;  %v6177_v10 = vpop.f32.mrb[53].mxu1 }
0x3f9c   :  { %v4554_v63 = vmul.f32 %v4553_v44, %v4553_v44 }
0x3f9e   :  { %v4555_v6 = vsel %vm94_vm1, %v4554_v63, 0.0 }
0x3f9f   :  { %4556 = vadd.xlane.f32.xlu0 %v4555_v6 }
0x402c   :  { %v4557_v46 = vpop.xlane.xlu0 %4556 }
0x402d   :  { %6179 = vmatpush3.msra.mxu0 %v4557_v46 }
0x402e   :  { %6181 = vmatmul.mubr.msk.f32.vlgmr.msra.gmra.mrb[54].mxu0 %vm94_vm1, %v7241_v13  ;;  %6188 = vmatprep.subr.mxu0 %v6579_v8 }
0x402f   :  { %6189 = vmatpush3.msra.mxu0 %v7137_v11  ;;  %6190 = vmatprep.mubr.msk.f32.mxu0 %vm6578_vm0, %v6579_v8 }
0x4030   :  { %6426 = vmatprep.subr.bf16.mxu0 %v6577_v2 }
0x4101   :  { %v4624_v49 = vpop.f32.mrb[54].mxu0 }
0x4102   :  { %6544 = vrsqrt.f32 %v4624_v49  ;;  %v6182_v12 = vpop.f32.mrb[55].mxu0 }
0x410c   :  { %v6545_v50 = vpop.eup %6544 }
0x410d   :  { %4631 = vperm.xlu1 %6453, %v6545_v50  }
0x4111   :  { %4732 = vperm.xlu1 %6453, %v5502_v52  }
0x418c   :  { %v4632_v53 = vpop.permute.xlu1 %4631 }
0x418d   :  { %v4634_v56 = vmul.f32 %v4632_v53, %v4553_v44 }
0x418f   :  { %6546 = vtanh.f32 %v4634_v56 }
0x4190   :  { %v4733_v57 = vpop.permute.xlu1 %4732 }
0x4191   :  { %v4735_v11 = vmul.f32 %v7149_v58, %v4733_v57 }
0x4193   :  { %v4736_v59 = vadd.f32 %v7155_v61, %v4735_v11 }
0x4195   :  { %6191 = vmatmul.mubr.msk.f32.vlgmr.msra.gmra.mrb[56].mxu0 %vm94_vm1, %v4736_v59 }
0x4196   :  { %6428 = vmatpush3.bf16.msra.mxu0 %v6731_v36  ;;  %6212 = vmatprep.mubr.msk.f32.mxu0 %vm6578_vm0, %v6579_v8 }
0x4197   :  { %6429 = vmatprep.subr.bf16.mxu0 %v6577_v2 }
0x4199   :  { %v6547_v1 = vpop.eup %6546 }
0x419a   :  { %v4636_v3 = vand.u32 2147483647, %v6547_v1  ;;  %6431 = vmatpush3.bf16.msra.mxu0 %v6737_v38 }
0x419b   :  { %6438 = vmatprep.subr.bf16.mxu0 %v6577_v2 }
0x419c   :  { %v4637_v4 = vadd.f32 %v7267_v34, %v4636_v3 }
0x419e   :  { %v5498_v58 = vmul.f32 -1.442695, %v4637_v4 }
0x41a0   :  { %6548 = vpow2.f32 %v5498_v58 }
0x41aa   :  { %v6549_v61 = vpop.eup %6548 }
0x41ab   :  { %v4641_v7 = vadd.f32 1.0, %v6549_v61 }
0x41ad   :  { %6550 = vrcp.f32 %v4641_v7 }
0x41b7   :  { %v6551_v15 = vpop.eup %6550 }
0x41b8   :  { %v4644_v36 = vmul.f32 %v6551_v15, %v6547_v1  ;;  %v19_v1 = vstv %s7480_s11 }
0x41b9   :  { %20 = vst [vmem:[#allocation2] sm:$0x1] %v19_v1 }
0x41ba   :  { %6186 = vmatmul.mubr.msk.f32.vlgmr.msra.gmra.mrb[54].mxu1 %vm94_vm1, %v4644_v36  ;;  %5500 = vst.msk [vmem:[%s7478_s12 + $0x30] sm:$0xff] %vm94_vm1, %v4644_v36 }
0x41bb   :  { %6422 = vmatpush3.bf16.msra.mxu1 %v6664_v5  ;;  %6201 = vmatprep.mubr.msk.f32.mxu1 %vm6578_vm0, %v6579_v8 }
0x41bc   :  { %6423 = vmatprep.subr.bf16.mxu1 %v6577_v2 }
0x41bf   :  { %6425 = vmatpush3.bf16.msra.mxu1 %v6678_v9 }
0x41c0   :  { %6432 = vmatprep.subr.bf16.mxu1 %v6577_v2 }
0x4268   :  { %v4806_v38 = vpop.f32.mrb[56].mxu0 }
0x4269   :  { %v6192_v18 = vpop.f32.mrb[57].mxu0  ;;  %v4807_v23 = vadd.f32 %v7192_v26, %v4806_v38 }
0x428d   :  { %v7355_v19 = vpop.f32.mrb[54].mxu1 }
0x428e   :  { %v6187_v35 = vpop.f32.mrb[55].mxu1  ;;  %6202 = vmatmul.mubr.msk.f32.vlgmr.msra.gmra.mrb[56].mxu1 %vm172_vm2, %v7355_v19 }
0x428f   :  { %6434 = vmatpush3.bf16.msra.mxu1 %v6749_v42  ;;  %6223 = vmatprep.mubr.msk.f32.mxu1 %vm6578_vm0, %v6579_v8 }
0x4290   :  { %6435 = vmatprep.subr.bf16.mxu1 %v6577_v2 }
0x4293   :  { %6437 = vmatpush3.bf16.msra.mxu1 %v6763_v51 }
0x4294   :  { %6237 = vmatprep.subr.mxu1 %v6579_v8 }
0x4361   :  { %v4879_v5 = vpop.f32.mrb[56].mxu1 }
0x4362   :  { %v4880_v9 = vadd.f32 %v7096_v60, %v4879_v5  ;;  %v6203_v21 = vpop.f32.mrb[57].mxu1 }
0x4364   :  { %4891 = vrot.lane.b32.xlu1 %v4880_v9, %s6580_s25  ;;  %v4883_v20 = vadd.f32 %v4880_v9, %v4807_v23 }
0x4366   :  { %v5505_v24 = vmul.f32 -1.442695, %v4883_v20 }
0x4368   :  { %6552 = vpow2.f32 %v5505_v24 }
0x4372   :  { %v6553_v42 = vpop.eup %6552 }
0x4373   :  { %v4887_v25 = vadd.f32 1.0, %v6553_v42 }
0x4375   :  { %6554 = vrcp.f32 %v4887_v25 }
0x437f   :  { %v6555_v27 = vpop.eup %6554 }
0x4380   :  { %v4901_v31 = vsub.f32 1.0, %v6555_v27 }
0x43d6   :  { %v4892_v28 = vpop.permute.xlu1 %4891 }
0x43d7   :  { %v4894_v29 = vmul.f32 %v6555_v27, %v4892_v28 }
0x43d9   :  { %4896 = vrot.lane.b32.xlu1 %v4894_v29, %s6580_s25 }
0x444b   :  { %v4897_v51 = vpop.permute.xlu1 %4896 }
0x444c   :  { %v4899_v30 = vadd.f32 %v4897_v51, %v4807_v23 }
0x444e   :  { %6556 = vtanh.f32 %v4899_v30 }
0x4458   :  { %v6557_v60 = vpop.eup %6556 }
0x4459   :  { %4903 = vrot.lane.b32.xlu1 %v6557_v60, %s6581_s19 }
0x445d   :  { %4907 = vrot.lane.b32.xlu1 %v7355_v19, %s6583_s15 }
0x44cb   :  { %v4904_v26 = vpop.permute.xlu1 %4903 }
0x44cc   :  { %v4906_v33 = vmul.f32 %v4904_v26, %v4901_v31 }
0x44cf   :  { %v4908_v32 = vpop.permute.xlu1 %4907 }
0x44d0   :  { %v4910_v39 = vmul.f32 %v6555_v27, %v4908_v32 }
0x44d2   :  { %v4911_v40 = vadd.f32 %v4910_v39, %v4906_v33 }
0x44d4   :  { %4913 = vrot.lane.b32.xlu1 %v4911_v40, %s6581_s19 }
0x4546   :  { %v4914_v41 = vpop.permute.xlu1 %4913 }
0x4547   :  { %6213 = vmatmul.mubr.msk.f32.vlgmr.msra.gmra.mrb[58].mxu0 %vm172_vm2, %v4914_v41 }
0x4548   :  { %6440 = vmatpush3.bf16.msra.mxu0 %v6773_v54  ;;  %6234 = vmatprep.mubr.msk.f32.mxu0 %vm6578_vm0, %v6579_v8 }
0x4549   :  { %6441 = vmatprep.subr.bf16.mxu0 %v6577_v2 }
0x454c   :  { %6443 = vmatpush3.bf16.msra.mxu0 %v6792_v62 }
0x454d   :  { %6242 = vmatprep.subr.mxu0 %v6579_v8 }
0x461a   :  { %v4983_v43 = vpop.f32.mrb[58].mxu0 }
0x461b   :  { %v4984_v55 = vadd.f32 %v7210_v47, %v4983_v43  ;;  %v6214_v44 = vpop.f32.mrb[59].mxu0 }
0x461d   :  { %v4987_v10 = vmax.f32 %v4984_v55, 0.0 }
0x461f   :  { %6224 = vmatmul.mubr.msk.f32.vlgmr.msra.gmra.mrb[58].mxu1 %vm172_vm2, %v4987_v10 }
0x4620   :  { %6239 = vmatprep.mubr.msk.f32.mxu1 %vm6578_vm0, %v6579_v8 }
0x46f2   :  { %v5057_v54 = vpop.f32.mrb[58].mxu1 }
0x46f3   :  { %v5058_v63 = vadd.f32 %v7219_v17, %v5057_v54  ;;  %v6225_v6 = vpop.f32.mrb[59].mxu1 }
0x46f5   :  { %v5061_v46 = vmax.f32 %v5058_v63, 0.0 }
0x46f7   :  { %6235 = vmatmul.mubr.msk.f32.vlgmr.msra.gmra.mrb[60].mxu0 %vm172_vm2, %v5061_v46 }
0x46f8   :  { %6244 = vmatprep.mubr.msk.f32.mxu0 %vm6578_vm0, %v6579_v8 }
0x47ca   :  { %v5131_v2 = vpop.f32.mrb[60].mxu0 }
0x47cb   :  { %v5132_v62 = vadd.f32 %v7228_v0, %v5131_v2  ;;  %v6236_v47 = vpop.f32.mrb[61].mxu0  ;;  %v7399_v0 = vld [vmem:[%s7479_s10] ss:$0 sm:$0xff] }
0x47cc   :  { %v1426_v56 = vmul.f32 %v7399_v0, %v6935_v14  ;;  %v2744_v59 = vmul.f32 %v7399_v0, %v7083_v16  ;;  %v3403_v3 = vmul.f32 %v7399_v0, %v7177_v22  ;;  %v4062_v4 = vmul.f32 %v7399_v0, %v7281_v45  ;;  %v5417_v22 = vld [vmem:[#allocation2] ss:$0 sm:$0xff] }
0x47cd   :  { %5136 = vrot.lane.b32.xlu0 %v5132_v62, %s6582_s22  ;;  %v4721_v16 = vmul.f32 %v7399_v0, %v7355_v19  ;;  %v761_v25 = vmul.f32 %v7399_v0, %v6861_v48 }
0x47ce   :  { %v1427_v57 = vsel %vm172_vm2, %v1426_v56, 0.0  ;;  %v2745_v14 = vsel %vm172_vm2, %v2744_v59, 0.0  ;;  %v4063_v58 = vsel %vm172_vm2, %v4062_v4, 0.0 }
0x47cf   :  { %v4722_v61 = vsel %vm172_vm2, %v4721_v16, 0.0  ;;  %v762_v27 = vsel %vm172_vm2, %v761_v25, 0.0 }
0x483f   :  { %v5137_v49 = vpop.permute.xlu0 %5136 }
0x4840   :  { %6238 = vmatpush3.xpose.msk.msra.mxu1 %vm510_vm3, %v5137_v49 }
0x4841   :  { %6247 = vmatprep.subr.mxu1 %v6579_v8 }
0x4843   :  { %6240 = vmatmul.mubr.msk.f32.vlgmr.msra.gmra.mrb[60].mxu1 %vm510_vm3, %v5132_v62 }
0x4844   :  { %6248 = vmatpush3.msra.mxu1 %v4914_v41  ;;  %6249 = vmatprep.mubr.msk.f32.mxu1 %vm6578_vm0, %v6579_v8  ;;  %v2085_v8 = vmul.f32 %v7399_v0, %v7009_v37  ;;  %v3404_v37 = vsel %vm172_vm2, %v3403_v3, 0.0 }
0x4846   :  { %v2086_v11 = vsel %vm172_vm2, %v2085_v8, 0.0 }
0x4916   :  { %v5208_v17 = vpop.f32.mrb[60].mxu1 }
0x4917   :  { %v5212_v12 = vmul.f32 %v7241_v13, %v5208_v17  ;;  %v6241_v50 = vpop.f32.mrb[61].mxu1 }
0x4919   :  { %v5213_v52 = vmul.f32 %v5212_v12, %v5212_v12 }
0x491b   :  { %v5214_v53 = vsel %vm94_vm1, %v5213_v52, 0.0 }
0x491c   :  { %5215 = vadd.xlane.f32.xlu1 %v5214_v53 }
0x4920   :  { %1428 = vadd.xlane.f32.xlu1 %v1427_v57 }
0x4924   :  { %2087 = vadd.xlane.f32.xlu1 %v2086_v11 }
0x4928   :  { %2746 = vadd.xlane.f32.xlu1 %v2745_v14 }
0x492c   :  { %3405 = vadd.xlane.f32.xlu1 %v3404_v37 }
0x4930   :  { %4064 = vadd.xlane.f32.xlu1 %v4063_v58 }
0x4934   :  { %4723 = vadd.xlane.f32.xlu1 %v4722_v61 }
0x49a9   :  { %v5216_v7 = vpop.xlane.xlu1 %5215 }
0x49aa   :  { %6243 = vmatpush3.msra.mxu0 %v5216_v7 }
0x49ab   :  { %6245 = vmatmul.mubr.msk.f32.vlgmr.msra.gmra.mrb[62].mxu0 %vm94_vm1, %v7241_v13 }
0x49ad   :  { %v1429_v15 = vpop.xlane.xlu1 %1428 }
0x49ae   :  { %v1430_v36 = vadd.f32 %v5417_v22, %v1429_v15 }
0x49b0   :  { %5431 = vst.msk [vmem:[%s7481_s13 + $0x8] sm:$0xff] %vm772_vm4, %v1430_v36 }
0x49b1   :  { %v2088_v45 = vpop.xlane.xlu1 %2087 }
0x49b2   :  { %v2089_v38 = vadd.f32 %v5417_v22, %v2088_v45 }
0x49b4   :  { %5445 = vst.msk [vmem:[%s7481_s13 + $0x10] sm:$0xff] %vm772_vm4, %v2089_v38 }
0x49b5   :  { %v2747_v18 = vpop.xlane.xlu1 %2746 }
0x49b6   :  { %v2748_v19 = vadd.f32 %v5417_v22, %v2747_v18 }
0x49b8   :  { %5459 = vst.msk [vmem:[%s7481_s13 + $0x18] sm:$0xff] %vm772_vm4, %v2748_v19 }
0x49b9   :  { %v3406_v13 = vpop.xlane.xlu1 %3405 }
0x49ba   :  { %v3407_v35 = vadd.f32 %v5417_v22, %v3406_v13 }
0x49bc   :  { %5473 = vst.msk [vmem:[%s7481_s13 + $0x20] sm:$0xff] %vm772_vm4, %v3407_v35 }
0x49bd   :  { %v4065_v5 = vpop.xlane.xlu1 %4064 }
0x49be   :  { %v4066_v9 = vadd.f32 %v5417_v22, %v4065_v5 }
0x49c0   :  { %5487 = vst.msk [vmem:[%s7481_s13 + $0x28] sm:$0xff] %vm772_vm4, %v4066_v9 }
0x49c1   :  { %v4724_v21 = vpop.xlane.xlu1 %4723 }
0x49c2   :  { %v4725_v23 = vadd.f32 %v5417_v22, %v4724_v21 }
0x49c4   :  { %5501 = vst.msk [vmem:[%s7481_s13 + $0x30] sm:$0xff] %vm772_vm4, %v4725_v23 }
0x4a7e   :  { %v5283_v20 = vpop.f32.mrb[62].mxu0 }
0x4a7f   :  { %6558 = vrsqrt.f32 %v5283_v20  ;;  %v6246_v24 = vpop.f32.mrb[63].mxu0 }
0x4a89   :  { %v6559_v42 = vpop.eup %6558 }
0x4a8a   :  { %5290 = vperm.xlu0 %6452, %v6559_v42  }
0x4aa9   :  { %763 = vadd.xlane.f32.xlu0 %v762_v27 }
0x4b09   :  { %v5291_v28 = vpop.permute.xlu0 %5290 }
0x4b0a   :  { %v5293_v29 = vmul.f32 %v5291_v28, %v5212_v12 }
0x4b0c   :  { %6560 = vtanh.f32 %v5293_v29 }
0x4b16   :  { %v6561_v51 = vpop.eup %6560 }
0x4b17   :  { %v5295_v30 = vand.u32 2147483647, %v6561_v51 }
0x4b19   :  { %v5296_v60 = vadd.f32 %v7267_v34, %v5295_v30 }
0x4b1b   :  { %v5512_v26 = vmul.f32 -1.442695, %v5296_v60 }
0x4b1d   :  { %6562 = vpow2.f32 %v5512_v26 }
0x4b27   :  { %v6563_v31 = vpop.eup %6562 }
0x4b28   :  { %v5300_v32 = vadd.f32 1.0, %v6563_v31 }
0x4b2a   :  { %6564 = vrcp.f32 %v5300_v32 }
0x4b34   :  { %v6565_v33 = vpop.eup %6564 }
0x4b35   :  { %v5303_v39 = vmul.f32 %v6565_v33, %v6561_v51 }
0x4b36   :  { %v764_v40 = vpop.xlane.xlu0 %763 }
0x4b37   :  { %v771_v41 = vadd.f32 %v5417_v22, %v764_v40  ;;  %6250 = vmatmul.mubr.msk.f32.vlgmr.msra.gmra.mrb[62].mxu1 %vm94_vm1, %v5303_v39  ;;  %5514 = vst.msk [vmem:[%s7478_s12 + $0x38] sm:$0xff] %vm94_vm1, %v5303_v39 }
0x4b39   :  { %773 = vst.msk [vmem:[%s7481_s13] sm:$0xff] %vm772_vm4, %v771_v41 }
0x4c0a   :  { %v5374_v48 = vpop.f32.mrb[62].mxu1 }
0x4c0b   :  { %v5380_v34 = vmul.f32 %v7399_v0, %v5374_v48  ;;  %v6251_v43 = vpop.f32.mrb[63].mxu1 }
0x4c0d   :  { %v5381_v55 = vsel %vm172_vm2, %v5380_v34, 0.0 }
0x4c0e   :  { %5382 = vadd.xlane.f32.xlu0 %v5381_v55 }
0x4c9b   :  { %v5383_v44 = vpop.xlane.xlu0 %5382 }
0x4c9c   :  { %v5384_v10 = vadd.f32 %v5417_v22, %v5383_v44 }
0x4c9e   :  { %5515 = vst.msk [vmem:[%s7481_s13 + $0x38] sm:$0xff] %vm772_vm4, %v5384_v10 }

</bundles_post_ra>
